<compile_context>
chip_gen: v5e
topology: v5e:2x2
jax: 0.10.0
libtpu: 0.0.40
codegen_flags: <defaults>
</compile_context>

<pallas_src>
import functools
import math

import jax
import jax.numpy as jnp
import numpy as np
from jax import lax
from jax.experimental import pallas as pl
from jax.experimental.pallas import tpu as pltpu


# ----------------------------------------------------------------------------
# Blur FIR constants: make_kernel([1, 3, 3, 1])
# ----------------------------------------------------------------------------
def _make_blur_kernel():
    k1 = np.array([1.0, 3.0, 3.0, 1.0], dtype=np.float32)
    k2 = k1[None, :] * k1[:, None]
    return k2 / k2.sum()


_K2D = _make_blur_kernel()
_K2D_FLIP = np.flip(_K2D, (0, 1)).copy()   # upfirdn2d convolves with the flip


# ----------------------------------------------------------------------------
# Small helpers: generation-aware VMEM budget / tiling, constant-block specs
# ----------------------------------------------------------------------------
def _vmem_capacity_bytes():
    try:
        info = pltpu.get_tpu_info()
        cap = int(getattr(info, "vmem_capacity_bytes", 0))
        if cap > 0:
            return cap
    except Exception:
        pass
    return 64 * 1024 * 1024            # conservative default (v7x per-core)


def _pick_row_tile(n_rows, bytes_per_row, fixed_bytes, budget, batch,
                   max_tile=512):
    """Largest divisor of n_rows whose VMEM estimate fits the budget, while
    keeping at least 2 grid steps so both v7x TensorCores get work."""
    best = 1
    for t in range(1, min(n_rows, max_tile) + 1):
        if n_rows % t:
            continue
        if fixed_bytes + t * bytes_per_row <= budget:
            best = t
    while best > 1 and batch * (n_rows // best) < 2:
        best -= 1
        while n_rows % best:
            best -= 1
    return best


def _weight_spec(shape, index_map, single_buffered):
    """Spec for a grid-invariant (weight / bias) block.  Double-buffering a
    block whose index never changes only wastes VMEM, so request single
    buffering when this JAX build exposes pipeline_mode."""
    if single_buffered:
        try:
            return pl.BlockSpec(shape, index_map, pipeline_mode=pl.Buffered(1))
        except Exception:
            pass
    return pl.BlockSpec(shape, index_map)


# ----------------------------------------------------------------------------
# Kernel 1: conv1 (3x3 s1 EqualConv + bias + leaky*sqrt2) in 2x2 phase space
# ----------------------------------------------------------------------------
def _conv1_phase_kernel(xm_ref, xh_ref, w_ref, b_ref, o_ref):
    TOP = o_ref.shape[1]
    WO = o_ref.shape[2] - 2
    C4 = o_ref.shape[3]
    # bf16 tap extraction; one 1-row bottom halo stitched in VMEM.
    xf = jnp.concatenate([xm_ref[0], xh_ref[0]], axis=0)      # (TOP+1, Wo+1, C4)
    acc = jnp.zeros((TOP * WO, C4), jnp.float32)
    for a in range(2):                                        # per-tap MXU acc
        for b in range(2):
            tap = xf[a:a + TOP, b:b + WO, :].reshape(TOP * WO, C4)
            acc = acc + jnp.dot(tap, w_ref[a, b],
                                preferred_element_type=jnp.float32)
    acc = acc + b_ref[...]                                    # bias already *sqrt2
    acc = jnp.maximum(acc, 0.2 * acc)                         # leaky_relu(0.2)
    y = acc.reshape(TOP, WO, C4).astype(o_ref.dtype)
    # Bake the blur's 1-column zero border into the stored phase-space map.
    zcol = jnp.zeros((TOP, 1, C4), o_ref.dtype)
    o_ref[0] = jnp.concatenate([zcol, y, zcol], axis=1)


def _conv1_phase_call(xph, w1p, b1p, Ho, Wo, C4, TOP, vmem_limit, single_buf):
    B = xph.shape[0]
    return pl.pallas_call(
        _conv1_phase_kernel,
        out_shape=jax.ShapeDtypeStruct((B, Ho, Wo + 2, C4), jnp.bfloat16),
        grid=(B, Ho // TOP),
        in_specs=[
            pl.BlockSpec((1, TOP, Wo + 1, C4), lambda b, t: (b, t, 0, 0)),
            pl.BlockSpec((1, 1, Wo + 1, C4),                   # 1-row halo
                         lambda b, t: (b, (t + 1) * TOP, 0, 0)),
            _weight_spec((2, 2, C4, C4), lambda b, t: (0, 0, 0, 0), single_buf),
            _weight_spec((1, C4), lambda b, t: (0, 0), single_buf),
        ],
        out_specs=pl.BlockSpec((1, TOP, Wo + 2, C4), lambda b, t: (b, t, 0, 0)),
        compiler_params=pltpu.CompilerParams(
            dimension_semantics=("parallel", "parallel"),
            vmem_limit_bytes=vmem_limit),
    )(xph, xph, w1p, b1p)


# ----------------------------------------------------------------------------
# Kernel 2: fused downsample path
#   conv2 branch: 3x3 phase-space conv (== blur(pad=2) o 3x3 s2) + bias + leaky
#   skip  branch: 2x2 phase-space conv (== blur(pad=1) o 1x1 s2, * 1/sqrt2)
#   out = conv2_branch + skip_branch           (single bf16 HBM write)
# ----------------------------------------------------------------------------
def _down_kernel(ym_ref, yt_ref, yb_ref, xm_ref, xh_ref,
                 w2_ref, w3_ref, b2_ref, o_ref):
    TOD = o_ref.shape[1]
    WO = o_ref.shape[2]
    CO = o_ref.shape[3]
    C4 = ym_ref.shape[3]

    t = pl.program_id(1)
    nt = pl.num_programs(1)
    # Row zero-border of the padded y1 map: clamped halo blocks, masked here.
    ytop = jnp.where(t > 0, yt_ref[0], jnp.zeros_like(yt_ref[0]))
    ybot = jnp.where(t < nt - 1, yb_ref[0], jnp.zeros_like(yb_ref[0]))
    yf = jnp.concatenate([ytop, ym_ref[0], ybot], axis=0)     # (TOD+2, Wo+2, C4)

    acc = jnp.zeros((TOD * WO, CO), jnp.float32)
    for a in range(3):                                        # conv2: 9 taps
        for b in range(3):
            tap = yf[a:a + TOD, b:b + WO, :].reshape(TOD * WO, C4)
            acc = acc + jnp.dot(tap, w2_ref[a, b],
                                preferred_element_type=jnp.float32)
    acc = acc + b2_ref[...]
    acc = jnp.maximum(acc, 0.2 * acc)          # sqrt(2) * (1/sqrt(2)) == 1

    xf = jnp.concatenate([xm_ref[0], xh_ref[0]], axis=0)      # (TOD+1, Wo+1, C4)
    for a in range(2):                                        # skip: 4 taps
        for b in range(2):
            tap = xf[a:a + TOD, b:b + WO, :].reshape(TOD * WO, C4)
            acc = acc + jnp.dot(tap, w3_ref[a, b],
                                preferred_element_type=jnp.float32)

    o_ref[...] = acc.reshape(1, TOD, WO, CO).astype(o_ref.dtype)


def _down_call(yph, xph, w2p, w3p, b2v, Ho, Wo, Cout, TOD, vmem_limit,
               single_buf):
    B, _, _, C4 = yph.shape
    return pl.pallas_call(
        _down_kernel,
        out_shape=jax.ShapeDtypeStruct((B, Ho, Wo, Cout), jnp.bfloat16),
        grid=(B, Ho // TOD),
        in_specs=[
            pl.BlockSpec((1, TOD, Wo + 2, C4), lambda b, t: (b, t, 0, 0)),
            pl.BlockSpec((1, 1, Wo + 2, C4),                   # top halo (clamped)
                         lambda b, t: (b, jnp.maximum(t * TOD - 1, 0), 0, 0)),
            pl.BlockSpec((1, 1, Wo + 2, C4),                   # bottom halo (clamped)
                         lambda b, t: (b, jnp.minimum((t + 1) * TOD, Ho - 1), 0, 0)),
            pl.BlockSpec((1, TOD, Wo + 1, C4), lambda b, t: (b, t, 0, 0)),
            pl.BlockSpec((1, 1, Wo + 1, C4),                   # xph 1-row halo
                         lambda b, t: (b, (t + 1) * TOD, 0, 0)),
            _weight_spec((3, 3, C4, Cout), lambda b, t: (0, 0, 0, 0), single_buf),
            _weight_spec((2, 2, C4, Cout), lambda b, t: (0, 0, 0, 0), single_buf),
            _weight_spec((1, Cout), lambda b, t: (0, 0), single_buf),
        ],
        out_specs=pl.BlockSpec((1, TOD, Wo, Cout), lambda b, t: (b, t, 0, 0)),
        compiler_params=pltpu.CompilerParams(
            dimension_semantics=("parallel", "parallel"),
            vmem_limit_bytes=vmem_limit),
    )(yph, yph, yph, xph, xph, w2p, w3p, b2v)


# ----------------------------------------------------------------------------
# ResBlock forward (Pallas path)
# ----------------------------------------------------------------------------
def resblock_pallas(x_nchw, params, single_buffered_weights=True):
    B, Cin, H, W = x_nchw.shape
    Cout = params["w2"].shape[0]
    assert H % 2 == 0 and W % 2 == 0
    Ho, Wo = H // 2, W // 2
    C4 = 4 * Cin

    sqrt2 = math.sqrt(2.0)
    s1 = 1.0 / math.sqrt(Cin * 9)      # EqualConv2d 3x3 scale (conv1 & conv2)
    s3 = 1.0 / math.sqrt(Cin)          # EqualConv2d 1x1 scale (skip)
    kf = _K2D_FLIP                     # 4x4 blur FIR (symmetric)

    # ---- conv1 weights in stride-2 phase space ------------------------------
    # xph channels ordered (qy, qx, ci); yph channels ordered (py, px, co).
    w1s = params["w1"] * (s1 * sqrt2)                    # fold scale & sqrt2 gain
    w1_blocks = []
    for py in (0, 1):
        for px in (0, 1):
            g = jnp.pad(w1s, ((0, 0), (0, 0), (py, 1 - py), (px, 1 - px)))
            g = jnp.transpose(g.reshape(Cin, Cin, 2, 2, 2, 2), (2, 4, 3, 5, 1, 0))
            w1_blocks.append(g.reshape(2, 2, C4, Cin))   # (a, b, (qy,qx,ci), co)
    w1p = jnp.concatenate(w1_blocks, axis=-1).astype(jnp.bfloat16)  # (2,2,4Cin,4Cin)
    b1p = jnp.tile(params["b1"] * sqrt2, 4).reshape(1, C4).astype(jnp.float32)

    # ---- conv2: fold blur(pad=2) into the 3x3 stride-2 conv -> 6x6 ---------
    w2s = params["w2"] * s1             # the sqrt2 gain cancels the residual /sqrt2
    w2e = jnp.zeros((Cout, Cin, 6, 6), jnp.float32)
    for ay in range(4):
        for ax in range(4):
            w2e = w2e.at[:, :, ay:ay + 3, ax:ax + 3].add(float(kf[ay, ax]) * w2s)
    w2p = jnp.transpose(w2e.reshape(Cout, Cin, 3, 2, 3, 2), (2, 4, 3, 5, 1, 0))
    w2p = w2p.reshape(3, 3, C4, Cout).astype(jnp.bfloat16)   # (a, b, (py,px,ci), co)
    b2v = params["b2"].reshape(1, Cout).astype(jnp.float32)

    # ---- skip: fold blur(pad=1) into the 1x1 stride-2 conv -> 4x4, /sqrt2 ---
    w3e = jnp.asarray(kf)[None, None] * params["w3"][:, :, 0:1, 0:1] * (s3 / sqrt2)
    w3p = jnp.transpose(w3e.reshape(Cout, Cin, 2, 2, 2, 2), (2, 4, 3, 5, 1, 0))
    w3p = w3p.reshape(2, 2, C4, Cout).astype(jnp.bfloat16)   # (a, b, (qy,qx,ci), co)

    # ---- input prep: NCHW -> NHWC, pad 1, stride-2 phase split (one pass) ---
    # TODO(synk): in a full model keep activations NHWC / phase-stacked
    # end-to-end so this transpose+pad+split and the final transpose vanish.
    x = jnp.transpose(x_nchw, (0, 2, 3, 1))
    xp1 = jnp.pad(x, ((0, 0), (1, 1), (1, 1), (0, 0)))
    xph = jnp.concatenate(
        [xp1[:, qy::2, qx::2, :] for qy in (0, 1) for qx in (0, 1)],
        axis=-1).astype(jnp.bfloat16)                    # (B, Ho+1, Wo+1, 4Cin)

    # ---- generation-aware tiling / VMEM limit -------------------------------
    cap = _vmem_capacity_bytes()
    vmem_limit = int(min(cap // 2, 100 * 1024 * 1024))
    budget = int(vmem_limit * 0.75)

    c1_row = ((Wo + 1) * C4 * 2 * 2        # xph in (bf16, double-buffered)
              + (Wo + 2) * C4 * 2 * 2      # yph out (bf16, double-buffered)
              + Wo * C4 * 4                # f32 accumulator
              + Wo * C4 * 2 * 2)           # tap staging
    c1_fix = (4 * C4 * C4 + C4) * 2 * 2
    TOP = _pick_row_tile(Ho, c1_row, c1_fix, budget, B)

    dn_row = ((Wo + 2) * C4 * 2 * 2        # yph in
              + (Wo + 1) * C4 * 2 * 2      # xph in
              + Wo * Cout * 2 * 2          # out
              + Wo * Cout * 4              # f32 accumulator
              + Wo * C4 * 2 * 2)           # tap staging
    dn_fix = ((9 + 4) * C4 * Cout + Cout) * 2 * 2
    TOD = _pick_row_tile(Ho, dn_row, dn_fix, budget, B)

    # ---- conv1 (phase space) then fused conv2 + bias + leaky + skip ---------
    yph = _conv1_phase_call(xph, w1p, b1p, Ho, Wo, C4, TOP, vmem_limit,
                            single_buffered_weights)
    out = _down_call(yph, xph, w2p, w3p, b2v, Ho, Wo, Cout, TOD, vmem_limit,
                     single_buffered_weights)
    return jnp.transpose(out, (0, 3, 1, 2))              # bf16, NCHW


# ----------------------------------------------------------------------------
# Pure-JAX reference (mirrors the PyTorch CPU path) for a correctness check
# ----------------------------------------------------------------------------
def resblock_ref(x, params):
    Cin = x.shape[1]
    kflip = jnp.asarray(_K2D_FLIP)

    def blur_ref(z, pad):
        C = z.shape[1]
        zp = jnp.pad(z, ((0, 0), (0, 0), (pad, pad), (pad, pad)))
        rhs = jnp.tile(kflip[None, None], (C, 1, 1, 1))
        return lax.conv_general_dilated(
            zp, rhs, (1, 1), "VALID",
            dimension_numbers=("NCHW", "OIHW", "NCHW"),
            feature_group_count=C, precision=lax.Precision.HIGHEST)

    def lrelu(z):
        return jnp.where(z >= 0, z, 0.2 * z) * math.sqrt(2.0)

    s1 = 1.0 / math.sqrt(Cin * 9)
    y = lax.conv_general_dilated(
        x, params["w1"] * s1, (1, 1), ((1, 1), (1, 1)),
        dimension_numbers=("NCHW", "OIHW", "NCHW"),
        precision=lax.Precision.HIGHEST)
    y = lrelu(y + params["b1"][None, :, None, None])

    yb = blur_ref(y, 2)
    y2 = lax.conv_general_dilated(
        yb, params["w2"] * s1, (2, 2), "VALID",
        dimension_numbers=("NCHW", "OIHW", "NCHW"),
        precision=lax.Precision.HIGHEST)
    y2 = lrelu(y2 + params["b2"][None, :, None, None])

    xb = blur_ref(x, 1)
    s3 = 1.0 / math.sqrt(Cin)
    sk = lax.conv_general_dilated(
        xb, params["w3"] * s3, (2, 2), "VALID",
        dimension_numbers=("NCHW", "OIHW", "NCHW"),
        precision=lax.Precision.HIGHEST)

    return (y2 + sk) / math.sqrt(2.0)


# ----------------------------------------------------------------------------
if __name__ == "__main__":
    B, Cin, Cout, H, W = 2, 4, 8, 16, 16
    key = jax.random.PRNGKey(0)
    k1, k2, k3, k4, k5, k6 = jax.random.split(key, 6)

    x = jax.random.normal(k1, (B, Cin, H, W), dtype=jnp.float32)
    params = dict(
        w1=jax.random.normal(k2, (Cin, Cin, 3, 3), dtype=jnp.float32),   # EqualConv2d
        b1=0.1 * jax.random.normal(k5, (Cin,), dtype=jnp.float32),       # FusedLeakyReLU bias
        w2=jax.random.normal(k3, (Cout, Cin, 3, 3), dtype=jnp.float32),
        b2=0.1 * jax.random.normal(k6, (Cout,), dtype=jnp.float32),
        w3=jax.random.normal(k4, (Cout, Cin, 1, 1), dtype=jnp.float32),  # skip 1x1 weight
    )

    def _run(single_buffered):
        fwd = jax.jit(functools.partial(
            resblock_pallas, single_buffered_weights=single_buffered))
        return jax.block_until_ready(fwd(x, params))

    try:
        out = _run(True)
    except Exception:
        # pipeline_mode=pl.Buffered(1) not supported on this JAX build.
        out = _run(False)

    assert out.shape == (B, Cout, H // 2, W // 2), out.shape

    ref = jax.block_until_ready(resblock_ref(x, params))
    # bf16 activations/weights end-to-end with f32 accumulation -> relaxed tol.
    np.testing.assert_allclose(np.asarray(out, dtype=np.float32),
                               np.asarray(ref), rtol=3e-2, atol=3e-2)

    print("KERNEL_OK")
</pallas_src>

<mosaic_0001>
module attributes {stable_mosaic.version = 11 : i64} {
  func.func @_conv1_phase_kernel(%arg0: i32, %arg1: i32, %arg2: memref<1x8x9x16xbf16, #tpu.memory_space<vmem>>, %arg3: memref<1x1x9x16xbf16, #tpu.memory_space<vmem>>, %arg4: memref<2x2x16x16xbf16, #tpu.memory_space<vmem>>, %arg5: memref<1x16xf32, #tpu.memory_space<vmem>>, %arg6: memref<1x8x10x16xbf16, #tpu.memory_space<vmem>>) attributes {dimension_semantics = [#tpu.dimension_semantics<parallel>, #tpu.dimension_semantics<parallel>], iteration_bounds = array<i64: 2, 1>, scalar_prefetch = 0 : i64, scratch_operands = 0 : i64, tpu.core_type = #tpu.core_type<tc>, window_params = [{transform_indices = @transform_0, window_bounds = array<i64: 1, 8, 9, 16>}, {transform_indices = @transform_1, window_bounds = array<i64: 1, 1, 9, 16>}, {pipeline_mode = #tpu.pipeline_mode<synchronous>, transform_indices = @transform_2, window_bounds = array<i64: 2, 2, 16, 16>}, {pipeline_mode = #tpu.pipeline_mode<synchronous>, transform_indices = @transform_3, window_bounds = array<i64: 1, 16>}, {transform_indices = @transform_4, window_bounds = array<i64: 1, 8, 10, 16>}]} {
    %c0 = arith.constant 0 : index
    %c0_0 = arith.constant 0 : index
    %c0_1 = arith.constant 0 : index
    %c0_2 = arith.constant 0 : index
    %0 = vector.load %arg2[%c0, %c0_0, %c0_1, %c0_2] : memref<1x8x9x16xbf16, #tpu.memory_space<vmem>>, vector<1x8x9x16xbf16>
    %1 = vector.shape_cast %0 : vector<1x8x9x16xbf16> to vector<8x9x16xbf16>
    %c0_3 = arith.constant 0 : index
    %c0_4 = arith.constant 0 : index
    %c0_5 = arith.constant 0 : index
    %c0_6 = arith.constant 0 : index
    %2 = vector.load %arg3[%c0_3, %c0_4, %c0_5, %c0_6] : memref<1x1x9x16xbf16, #tpu.memory_space<vmem>>, vector<1x1x9x16xbf16>
    %3 = vector.shape_cast %2 : vector<1x1x9x16xbf16> to vector<1x9x16xbf16>
    %4 = tpu.concatenate %1, %3 in 0 : vector<8x9x16xbf16>, vector<1x9x16xbf16> -> vector<9x9x16xbf16>
    %cst = arith.constant 0.000000e+00 : f32
    %5 = vector.broadcast %cst : f32 to vector<64x16xf32>
    %6 = vector.extract_strided_slice %4 {offsets = [0, 0, 0], sizes = [8, 8, 16], strides = [1, 1, 1]} : vector<9x9x16xbf16> to vector<8x8x16xbf16>
    %7 = vector.shape_cast %6 : vector<8x8x16xbf16> to vector<64x16xbf16>
    %c0_7 = arith.constant 0 : index
    %c0_8 = arith.constant 0 : index
    %c0_9 = arith.constant 0 : index
    %c0_10 = arith.constant 0 : index
    %8 = vector.load %arg4[%c0_7, %c0_8, %c0_9, %c0_10] : memref<2x2x16x16xbf16, #tpu.memory_space<vmem>>, vector<1x1x16x16xbf16>
    %9 = vector.shape_cast %8 : vector<1x1x16x16xbf16> to vector<16x16xbf16>
    %cst_11 = arith.constant dense<0.000000e+00> : vector<64x16xf32>
    %10 = tpu.matmul %7, %9, %cst_11 {dimension_numbers = #tpu.dot_dimension_numbers<[1], [0], [0], [1], [0, 0, 1, 1], [], []>} : vector<64x16xbf16>, vector<16x16xbf16>, vector<64x16xf32> -> vector<64x16xf32>
    %11 = arith.addf %5, %10 : vector<64x16xf32>
    %12 = vector.extract_strided_slice %4 {offsets = [0, 1, 0], sizes = [8, 8, 16], strides = [1, 1, 1]} : vector<9x9x16xbf16> to vector<8x8x16xbf16>
    %13 = vector.shape_cast %12 : vector<8x8x16xbf16> to vector<64x16xbf16>
    %c0_12 = arith.constant 0 : index
    %c1 = arith.constant 1 : index
    %c0_13 = arith.constant 0 : index
    %c0_14 = arith.constant 0 : index
    %14 = vector.load %arg4[%c0_12, %c1, %c0_13, %c0_14] : memref<2x2x16x16xbf16, #tpu.memory_space<vmem>>, vector<1x1x16x16xbf16>
    %15 = vector.shape_cast %14 : vector<1x1x16x16xbf16> to vector<16x16xbf16>
    %cst_15 = arith.constant dense<0.000000e+00> : vector<64x16xf32>
    %16 = tpu.matmul %13, %15, %cst_15 {dimension_numbers = #tpu.dot_dimension_numbers<[1], [0], [0], [1], [0, 0, 1, 1], [], []>} : vector<64x16xbf16>, vector<16x16xbf16>, vector<64x16xf32> -> vector<64x16xf32>
    %17 = arith.addf %11, %16 : vector<64x16xf32>
    %18 = vector.extract_strided_slice %4 {offsets = [1, 0, 0], sizes = [8, 8, 16], strides = [1, 1, 1]} : vector<9x9x16xbf16> to vector<8x8x16xbf16>
    %19 = vector.shape_cast %18 : vector<8x8x16xbf16> to vector<64x16xbf16>
    %c1_16 = arith.constant 1 : index
    %c0_17 = arith.constant 0 : index
    %c0_18 = arith.constant 0 : index
    %c0_19 = arith.constant 0 : index
    %20 = vector.load %arg4[%c1_16, %c0_17, %c0_18, %c0_19] : memref<2x2x16x16xbf16, #tpu.memory_space<vmem>>, vector<1x1x16x16xbf16>
    %21 = vector.shape_cast %20 : vector<1x1x16x16xbf16> to vector<16x16xbf16>
    %cst_20 = arith.constant dense<0.000000e+00> : vector<64x16xf32>
    %22 = tpu.matmul %19, %21, %cst_20 {dimension_numbers = #tpu.dot_dimension_numbers<[1], [0], [0], [1], [0, 0, 1, 1], [], []>} : vector<64x16xbf16>, vector<16x16xbf16>, vector<64x16xf32> -> vector<64x16xf32>
    %23 = arith.addf %17, %22 : vector<64x16xf32>
    %24 = vector.extract_strided_slice %4 {offsets = [1, 1, 0], sizes = [8, 8, 16], strides = [1, 1, 1]} : vector<9x9x16xbf16> to vector<8x8x16xbf16>
    %25 = vector.shape_cast %24 : vector<8x8x16xbf16> to vector<64x16xbf16>
    %c1_21 = arith.constant 1 : index
    %c1_22 = arith.constant 1 : index
    %c0_23 = arith.constant 0 : index
    %c0_24 = arith.constant 0 : index
    %26 = vector.load %arg4[%c1_21, %c1_22, %c0_23, %c0_24] : memref<2x2x16x16xbf16, #tpu.memory_space<vmem>>, vector<1x1x16x16xbf16>
    %27 = vector.shape_cast %26 : vector<1x1x16x16xbf16> to vector<16x16xbf16>
    %cst_25 = arith.constant dense<0.000000e+00> : vector<64x16xf32>
    %28 = tpu.matmul %25, %27, %cst_25 {dimension_numbers = #tpu.dot_dimension_numbers<[1], [0], [0], [1], [0, 0, 1, 1], [], []>} : vector<64x16xbf16>, vector<16x16xbf16>, vector<64x16xf32> -> vector<64x16xf32>
    %29 = arith.addf %23, %28 : vector<64x16xf32>
    %c0_26 = arith.constant 0 : index
    %c0_27 = arith.constant 0 : index
    %30 = vector.load %arg5[%c0_26, %c0_27] : memref<1x16xf32, #tpu.memory_space<vmem>>, vector<1x16xf32>
    %31 = vector.broadcast %30 : vector<1x16xf32> to vector<64x16xf32>
    %32 = arith.addf %29, %31 : vector<64x16xf32>
    %cst_28 = arith.constant 2.000000e-01 : f32
    %33 = vector.broadcast %cst_28 : f32 to vector<64x16xf32>
    %34 = arith.mulf %33, %32 : vector<64x16xf32>
    %35 = arith.maximumf %32, %34 : vector<64x16xf32>
    %36 = vector.shape_cast %35 : vector<64x16xf32> to vector<8x8x16xf32>
    %37 = arith.truncf %36 : vector<8x8x16xf32> to vector<8x8x16xbf16>
    %cst_29 = arith.constant 0.000000e+00 : bf16
    %38 = vector.broadcast %cst_29 : bf16 to vector<8x1x16xbf16>
    %39 = tpu.concatenate %38, %37, %38 in 1 : vector<8x1x16xbf16>, vector<8x8x16xbf16>, vector<8x1x16xbf16> -> vector<8x10x16xbf16>
    %c0_30 = arith.constant 0 : index
    %c0_31 = arith.constant 0 : index
    %c0_32 = arith.constant 0 : index
    %c0_33 = arith.constant 0 : index
    %40 = vector.load %arg6[%c0_30, %c0_31, %c0_32, %c0_33] : memref<1x8x10x16xbf16, #tpu.memory_space<vmem>>, vector<1x8x10x16xbf16>
    %41 = vector.shape_cast %40 : vector<1x8x10x16xbf16> to vector<8x10x16xbf16>
    %42 = vector.shape_cast %39 : vector<8x10x16xbf16> to vector<1x8x10x16xbf16>
    tpu.vector_store %arg6[%c0_30, %c0_31, %c0_32, %c0_33], %42 {strides = array<i32>} : memref<1x8x10x16xbf16, #tpu.memory_space<vmem>>, vector<1x8x10x16xbf16>,
    return
  }
  func.func @transform_0(%arg0: i32, %arg1: i32) -> (i32, i32, i32, i32) {
    %c0_i32 = arith.constant 0 : i32
    %c0_i32_0 = arith.constant 0 : i32
    %c0_i32_1 = arith.constant 0 : i32
    return %arg0, %arg1, %c0_i32, %c0_i32_0 : i32, i32, i32, i32
  }
  func.func @transform_1(%arg0: i32, %arg1: i32) -> (i32, i32, i32, i32) {
    %c1_i32 = arith.constant 1 : i32
    %0 = arith.addi %arg1, %c1_i32 : i32
    %c8_i32 = arith.constant 8 : i32
    %1 = arith.muli %0, %c8_i32 : i32
    %c0_i32 = arith.constant 0 : i32
    %c0_i32_0 = arith.constant 0 : i32
    %c0_i32_1 = arith.constant 0 : i32
    return %arg0, %1, %c0_i32, %c0_i32_0 : i32, i32, i32, i32
  }
  func.func @transform_2(%arg0: i32, %arg1: i32) -> (i32, i32, i32, i32) {
    %c0_i32 = arith.constant 0 : i32
    %c0_i32_0 = arith.constant 0 : i32
    %c0_i32_1 = arith.constant 0 : i32
    %c0_i32_2 = arith.constant 0 : i32
    %c0_i32_3 = arith.constant 0 : i32
    return %c0_i32, %c0_i32_0, %c0_i32_1, %c0_i32_2 : i32, i32, i32, i32
  }
  func.func @transform_3(%arg0: i32, %arg1: i32) -> (i32, i32) {
    %c0_i32 = arith.constant 0 : i32
    %c0_i32_0 = arith.constant 0 : i32
    %c0_i32_1 = arith.constant 0 : i32
    return %c0_i32, %c0_i32_0 : i32, i32
  }
  func.func @transform_4(%arg0: i32, %arg1: i32) -> (i32, i32, i32, i32) {
    %c0_i32 = arith.constant 0 : i32
    %c0_i32_0 = arith.constant 0 : i32
    %c0_i32_1 = arith.constant 0 : i32
    return %arg0, %arg1, %c0_i32, %c0_i32_0 : i32, i32, i32, i32
  }
}

module attributes {stable_mosaic.version = 11 : i64} {
  func.func @_down_kernel(%arg0: i32, %arg1: i32, %arg2: memref<1x8x10x16xbf16, #tpu.memory_space<vmem>>, %arg3: memref<1x1x10x16xbf16, #tpu.memory_space<vmem>>, %arg4: memref<1x1x10x16xbf16, #tpu.memory_space<vmem>>, %arg5: memref<1x8x9x16xbf16, #tpu.memory_space<vmem>>, %arg6: memref<1x1x9x16xbf16, #tpu.memory_space<vmem>>, %arg7: memref<3x3x16x8xbf16, #tpu.memory_space<vmem>>, %arg8: memref<2x2x16x8xbf16, #tpu.memory_space<vmem>>, %arg9: memref<1x8xf32, #tpu.memory_space<vmem>>, %arg10: memref<1x8x8x8xbf16, #tpu.memory_space<vmem>>) attributes {dimension_semantics = [#tpu.dimension_semantics<parallel>, #tpu.dimension_semantics<parallel>], iteration_bounds = array<i64: 2, 1>, scalar_prefetch = 0 : i64, scratch_operands = 0 : i64, tpu.core_type = #tpu.core_type<tc>, window_params = [{transform_indices = @transform_0, window_bounds = array<i64: 1, 8, 10, 16>}, {transform_indices = @transform_1, window_bounds = array<i64: 1, 1, 10, 16>}, {transform_indices = @transform_2, window_bounds = array<i64: 1, 1, 10, 16>}, {transform_indices = @transform_3, window_bounds = array<i64: 1, 8, 9, 16>}, {transform_indices = @transform_4, window_bounds = array<i64: 1, 1, 9, 16>}, {pipeline_mode = #tpu.pipeline_mode<synchronous>, transform_indices = @transform_5, window_bounds = array<i64: 3, 3, 16, 8>}, {pipeline_mode = #tpu.pipeline_mode<synchronous>, transform_indices = @transform_6, window_bounds = array<i64: 2, 2, 16, 8>}, {pipeline_mode = #tpu.pipeline_mode<synchronous>, transform_indices = @transform_7, window_bounds = array<i64: 1, 8>}, {transform_indices = @transform_8, window_bounds = array<i64: 1, 8, 8, 8>}]} {
    %c0_i32 = arith.constant 0 : i32
    %0 = arith.cmpi sgt, %arg1, %c0_i32 : i32
    %c0 = arith.constant 0 : index
    %c0_0 = arith.constant 0 : index
    %c0_1 = arith.constant 0 : index
    %c0_2 = arith.constant 0 : index
    %1 = vector.load %arg3[%c0, %c0_0, %c0_1, %c0_2] : memref<1x1x10x16xbf16, #tpu.memory_space<vmem>>, vector<1x1x10x16xbf16>
    %2 = vector.shape_cast %1 : vector<1x1x10x16xbf16> to vector<1x10x16xbf16>
    %cst = arith.constant 0.000000e+00 : bf16
    %3 = vector.broadcast %cst : bf16 to vector<1x10x16xbf16>
    %4 = arith.select %0, %2, %3 : vector<1x10x16xbf16>
    %c0_i32_3 = arith.constant 0 : i32
    %5 = arith.cmpi slt, %arg1, %c0_i32_3 : i32
    %c0_4 = arith.constant 0 : index
    %c0_5 = arith.constant 0 : index
    %c0_6 = arith.constant 0 : index
    %c0_7 = arith.constant 0 : index
    %6 = vector.load %arg4[%c0_4, %c0_5, %c0_6, %c0_7] : memref<1x1x10x16xbf16, #tpu.memory_space<vmem>>, vector<1x1x10x16xbf16>
    %7 = vector.shape_cast %6 : vector<1x1x10x16xbf16> to vector<1x10x16xbf16>
    %cst_8 = arith.constant 0.000000e+00 : bf16
    %8 = vector.broadcast %cst_8 : bf16 to vector<1x10x16xbf16>
    %9 = arith.select %5, %7, %8 : vector<1x10x16xbf16>
    %c0_9 = arith.constant 0 : index
    %c0_10 = arith.constant 0 : index
    %c0_11 = arith.constant 0 : index
    %c0_12 = arith.constant 0 : index
    %10 = vector.load %arg2[%c0_9, %c0_10, %c0_11, %c0_12] : memref<1x8x10x16xbf16, #tpu.memory_space<vmem>>, vector<1x8x10x16xbf16>
    %11 = vector.shape_cast %10 : vector<1x8x10x16xbf16> to vector<8x10x16xbf16>
    %12 = tpu.concatenate %4, %11, %9 in 0 : vector<1x10x16xbf16>, vector<8x10x16xbf16>, vector<1x10x16xbf16> -> vector<10x10x16xbf16>
    %cst_13 = arith.constant 0.000000e+00 : f32
    %13 = vector.broadcast %cst_13 : f32 to vector<64x8xf32>
    %14 = vector.extract_strided_slice %12 {offsets = [0, 0, 0], sizes = [8, 8, 16], strides = [1, 1, 1]} : vector<10x10x16xbf16> to vector<8x8x16xbf16>
    %15 = vector.shape_cast %14 : vector<8x8x16xbf16> to vector<64x16xbf16>
    %c0_14 = arith.constant 0 : index
    %c0_15 = arith.constant 0 : index
    %c0_16 = arith.constant 0 : index
    %c0_17 = arith.constant 0 : index
    %16 = vector.load %arg7[%c0_14, %c0_15, %c0_16, %c0_17] : memref<3x3x16x8xbf16, #tpu.memory_space<vmem>>, vector<1x1x16x8xbf16>
    %17 = vector.shape_cast %16 : vector<1x1x16x8xbf16> to vector<16x8xbf16>
    %cst_18 = arith.constant dense<0.000000e+00> : vector<64x8xf32>
    %18 = tpu.matmul %15, %17, %cst_18 {dimension_numbers = #tpu.dot_dimension_numbers<[1], [0], [0], [1], [0, 0, 1, 1], [], []>} : vector<64x16xbf16>, vector<16x8xbf16>, vector<64x8xf32> -> vector<64x8xf32>
    %19 = arith.addf %13, %18 : vector<64x8xf32>
    %20 = vector.extract_strided_slice %12 {offsets = [0, 1, 0], sizes = [8, 8, 16], strides = [1, 1, 1]} : vector<10x10x16xbf16> to vector<8x8x16xbf16>
    %21 = vector.shape_cast %20 : vector<8x8x16xbf16> to vector<64x16xbf16>
    %c0_19 = arith.constant 0 : index
    %c1 = arith.constant 1 : index
    %c0_20 = arith.constant 0 : index
    %c0_21 = arith.constant 0 : index
    %22 = vector.load %arg7[%c0_19, %c1, %c0_20, %c0_21] : memref<3x3x16x8xbf16, #tpu.memory_space<vmem>>, vector<1x1x16x8xbf16>
    %23 = vector.shape_cast %22 : vector<1x1x16x8xbf16> to vector<16x8xbf16>
    %cst_22 = arith.constant dense<0.000000e+00> : vector<64x8xf32>
    %24 = tpu.matmul %21, %23, %cst_22 {dimension_numbers = #tpu.dot_dimension_numbers<[1], [0], [0], [1], [0, 0, 1, 1], [], []>} : vector<64x16xbf16>, vector<16x8xbf16>, vector<64x8xf32> -> vector<64x8xf32>
    %25 = arith.addf %19, %24 : vector<64x8xf32>
    %26 = vector.extract_strided_slice %12 {offsets = [0, 2, 0], sizes = [8, 8, 16], strides = [1, 1, 1]} : vector<10x10x16xbf16> to vector<8x8x16xbf16>
    %27 = vector.shape_cast %26 : vector<8x8x16xbf16> to vector<64x16xbf16>
    %c0_23 = arith.constant 0 : index
    %c2 = arith.constant 2 : index
    %c0_24 = arith.constant 0 : index
    %c0_25 = arith.constant 0 : index
    %28 = vector.load %arg7[%c0_23, %c2, %c0_24, %c0_25] : memref<3x3x16x8xbf16, #tpu.memory_space<vmem>>, vector<1x1x16x8xbf16>
    %29 = vector.shape_cast %28 : vector<1x1x16x8xbf16> to vector<16x8xbf16>
    %cst_26 = arith.constant dense<0.000000e+00> : vector<64x8xf32>
    %30 = tpu.matmul %27, %29, %cst_26 {dimension_numbers = #tpu.dot_dimension_numbers<[1], [0], [0], [1], [0, 0, 1, 1], [], []>} : vector<64x16xbf16>, vector<16x8xbf16>, vector<64x8xf32> -> vector<64x8xf32>
    %31 = arith.addf %25, %30 : vector<64x8xf32>
    %32 = vector.extract_strided_slice %12 {offsets = [1, 0, 0], sizes = [8, 8, 16], strides = [1, 1, 1]} : vector<10x10x16xbf16> to vector<8x8x16xbf16>
    %33 = vector.shape_cast %32 : vector<8x8x16xbf16> to vector<64x16xbf16>
    %c1_27 = arith.constant 1 : index
    %c0_28 = arith.constant 0 : index
    %c0_29 = arith.constant 0 : index
    %c0_30 = arith.constant 0 : index
    %34 = vector.load %arg7[%c1_27, %c0_28, %c0_29, %c0_30] : memref<3x3x16x8xbf16, #tpu.memory_space<vmem>>, vector<1x1x16x8xbf16>
    %35 = vector.shape_cast %34 : vector<1x1x16x8xbf16> to vector<16x8xbf16>
    %cst_31 = arith.constant dense<0.000000e+00> : vector<64x8xf32>
    %36 = tpu.matmul %33, %35, %cst_31 {dimension_numbers = #tpu.dot_dimension_numbers<[1], [0], [0], [1], [0, 0, 1, 1], [], []>} : vector<64x16xbf16>, vector<16x8xbf16>, vector<64x8xf32> -> vector<64x8xf32>
    %37 = arith.addf %31, %36 : vector<64x8xf32>
    %38 = vector.extract_strided_slice %12 {offsets = [1, 1, 0], sizes = [8, 8, 16], strides = [1, 1, 1]} : vector<10x10x16xbf16> to vector<8x8x16xbf16>
    %39 = vector.shape_cast %38 : vector<8x8x16xbf16> to vector<64x16xbf16>
    %c1_32 = arith.constant 1 : index
    %c1_33 = arith.constant 1 : index
    %c0_34 = arith.constant 0 : index
    %c0_35 = arith.constant 0 : index
    %40 = vector.load %arg7[%c1_32, %c1_33, %c0_34, %c0_35] : memref<3x3x16x8xbf16, #tpu.memory_space<vmem>>, vector<1x1x16x8xbf16>
    %41 = vector.shape_cast %40 : vector<1x1x16x8xbf16> to vector<16x8xbf16>
    %cst_36 = arith.constant dense<0.000000e+00> : vector<64x8xf32>
    %42 = tpu.matmul %39, %41, %cst_36 {dimension_numbers = #tpu.dot_dimension_numbers<[1], [0], [0], [1], [0, 0, 1, 1], [], []>} : vector<64x16xbf16>, vector<16x8xbf16>, vector<64x8xf32> -> vector<64x8xf32>
    %43 = arith.addf %37, %42 : vector<64x8xf32>
    %44 = vector.extract_strided_slice %12 {offsets = [1, 2, 0], sizes = [8, 8, 16], strides = [1, 1, 1]} : vector<10x10x16xbf16> to vector<8x8x16xbf16>
    %45 = vector.shape_cast %44 : vector<8x8x16xbf16> to vector<64x16xbf16>
    %c1_37 = arith.constant 1 : index
    %c2_38 = arith.constant 2 : index
    %c0_39 = arith.constant 0 : index
    %c0_40 = arith.constant 0 : index
    %46 = vector.load %arg7[%c1_37, %c2_38, %c0_39, %c0_40] : memref<3x3x16x8xbf16, #tpu.memory_space<vmem>>, vector<1x1x16x8xbf16>
    %47 = vector.shape_cast %46 : vector<1x1x16x8xbf16> to vector<16x8xbf16>
    %cst_41 = arith.constant dense<0.000000e+00> : vector<64x8xf32>
    %48 = tpu.matmul %45, %47, %cst_41 {dimension_numbers = #tpu.dot_dimension_numbers<[1], [0], [0], [1], [0, 0, 1, 1], [], []>} : vector<64x16xbf16>, vector<16x8xbf16>, vector<64x8xf32> -> vector<64x8xf32>
    %49 = arith.addf %43, %48 : vector<64x8xf32>
    %50 = vector.extract_strided_slice %12 {offsets = [2, 0, 0], sizes = [8, 8, 16], strides = [1, 1, 1]} : vector<10x10x16xbf16> to vector<8x8x16xbf16>
    %51 = vector.shape_cast %50 : vector<8x8x16xbf16> to vector<64x16xbf16>
    %c2_42 = arith.constant 2 : index
    %c0_43 = arith.constant 0 : index
    %c0_44 = arith.constant 0 : index
    %c0_45 = arith.constant 0 : index
    %52 = vector.load %arg7[%c2_42, %c0_43, %c0_44, %c0_45] : memref<3x3x16x8xbf16, #tpu.memory_space<vmem>>, vector<1x1x16x8xbf16>
    %53 = vector.shape_cast %52 : vector<1x1x16x8xbf16> to vector<16x8xbf16>
    %cst_46 = arith.constant dense<0.000000e+00> : vector<64x8xf32>
    %54 = tpu.matmul %51, %53, %cst_46 {dimension_numbers = #tpu.dot_dimension_numbers<[1], [0], [0], [1], [0, 0, 1, 1], [], []>} : vector<64x16xbf16>, vector<16x8xbf16>, vector<64x8xf32> -> vector<64x8xf32>
    %55 = arith.addf %49, %54 : vector<64x8xf32>
    %56 = vector.extract_strided_slice %12 {offsets = [2, 1, 0], sizes = [8, 8, 16], strides = [1, 1, 1]} : vector<10x10x16xbf16> to vector<8x8x16xbf16>
    %57 = vector.shape_cast %56 : vector<8x8x16xbf16> to vector<64x16xbf16>
    %c2_47 = arith.constant 2 : index
    %c1_48 = arith.constant 1 : index
    %c0_49 = arith.constant 0 : index
    %c0_50 = arith.constant 0 : index
    %58 = vector.load %arg7[%c2_47, %c1_48, %c0_49, %c0_50] : memref<3x3x16x8xbf16, #tpu.memory_space<vmem>>, vector<1x1x16x8xbf16>
    %59 = vector.shape_cast %58 : vector<1x1x16x8xbf16> to vector<16x8xbf16>
    %cst_51 = arith.constant dense<0.000000e+00> : vector<64x8xf32>
    %60 = tpu.matmul %57, %59, %cst_51 {dimension_numbers = #tpu.dot_dimension_numbers<[1], [0], [0], [1], [0, 0, 1, 1], [], []>} : vector<64x16xbf16>, vector<16x8xbf16>, vector<64x8xf32> -> vector<64x8xf32>
    %61 = arith.addf %55, %60 : vector<64x8xf32>
    %62 = vector.extract_strided_slice %12 {offsets = [2, 2, 0], sizes = [8, 8, 16], strides = [1, 1, 1]} : vector<10x10x16xbf16> to vector<8x8x16xbf16>
    %63 = vector.shape_cast %62 : vector<8x8x16xbf16> to vector<64x16xbf16>
    %c2_52 = arith.constant 2 : index
    %c2_53 = arith.constant 2 : index
    %c0_54 = arith.constant 0 : index
    %c0_55 = arith.constant 0 : index
    %64 = vector.load %arg7[%c2_52, %c2_53, %c0_54, %c0_55] : memref<3x3x16x8xbf16, #tpu.memory_space<vmem>>, vector<1x1x16x8xbf16>
    %65 = vector.shape_cast %64 : vector<1x1x16x8xbf16> to vector<16x8xbf16>
    %cst_56 = arith.constant dense<0.000000e+00> : vector<64x8xf32>
    %66 = tpu.matmul %63, %65, %cst_56 {dimension_numbers = #tpu.dot_dimension_numbers<[1], [0], [0], [1], [0, 0, 1, 1], [], []>} : vector<64x16xbf16>, vector<16x8xbf16>, vector<64x8xf32> -> vector<64x8xf32>
    %67 = arith.addf %61, %66 : vector<64x8xf32>
    %c0_57 = arith.constant 0 : index
    %c0_58 = arith.constant 0 : index
    %68 = vector.load %arg9[%c0_57, %c0_58] : memref<1x8xf32, #tpu.memory_space<vmem>>, vector<1x8xf32>
    %69 = vector.broadcast %68 : vector<1x8xf32> to vector<64x8xf32>
    %70 = arith.addf %67, %69 : vector<64x8xf32>
    %cst_59 = arith.constant 2.000000e-01 : f32
    %71 = vector.broadcast %cst_59 : f32 to vector<64x8xf32>
    %72 = arith.mulf %71, %70 : vector<64x8xf32>
    %73 = arith.maximumf %70, %72 : vector<64x8xf32>
    %c0_60 = arith.constant 0 : index
    %c0_61 = arith.constant 0 : index
    %c0_62 = arith.constant 0 : index
    %c0_63 = arith.constant 0 : index
    %74 = vector.load %arg5[%c0_60, %c0_61, %c0_62, %c0_63] : memref<1x8x9x16xbf16, #tpu.memory_space<vmem>>, vector<1x8x9x16xbf16>
    %75 = vector.shape_cast %74 : vector<1x8x9x16xbf16> to vector<8x9x16xbf16>
    %c0_64 = arith.constant 0 : index
    %c0_65 = arith.constant 0 : index
    %c0_66 = arith.constant 0 : index
    %c0_67 = arith.constant 0 : index
    %76 = vector.load %arg6[%c0_64, %c0_65, %c0_66, %c0_67] : memref<1x1x9x16xbf16, #tpu.memory_space<vmem>>, vector<1x1x9x16xbf16>
    %77 = vector.shape_cast %76 : vector<1x1x9x16xbf16> to vector<1x9x16xbf16>
    %78 = tpu.concatenate %75, %77 in 0 : vector<8x9x16xbf16>, vector<1x9x16xbf16> -> vector<9x9x16xbf16>
    %79 = vector.extract_strided_slice %78 {offsets = [0, 0, 0], sizes = [8, 8, 16], strides = [1, 1, 1]} : vector<9x9x16xbf16> to vector<8x8x16xbf16>
    %80 = vector.shape_cast %79 : vector<8x8x16xbf16> to vector<64x16xbf16>
    %c0_68 = arith.constant 0 : index
    %c0_69 = arith.constant 0 : index
    %c0_70 = arith.constant 0 : index
    %c0_71 = arith.constant 0 : index
    %81 = vector.load %arg8[%c0_68, %c0_69, %c0_70, %c0_71] : memref<2x2x16x8xbf16, #tpu.memory_space<vmem>>, vector<1x1x16x8xbf16>
    %82 = vector.shape_cast %81 : vector<1x1x16x8xbf16> to vector<16x8xbf16>
    %cst_72 = arith.constant dense<0.000000e+00> : vector<64x8xf32>
    %83 = tpu.matmul %80, %82, %cst_72 {dimension_numbers = #tpu.dot_dimension_numbers<[1], [0], [0], [1], [0, 0, 1, 1], [], []>} : vector<64x16xbf16>, vector<16x8xbf16>, vector<64x8xf32> -> vector<64x8xf32>
    %84 = arith.addf %73, %83 : vector<64x8xf32>
    %85 = vector.extract_strided_slice %78 {offsets = [0, 1, 0], sizes = [8, 8, 16], strides = [1, 1, 1]} : vector<9x9x16xbf16> to vector<8x8x16xbf16>
    %86 = vector.shape_cast %85 : vector<8x8x16xbf16> to vector<64x16xbf16>
    %c0_73 = arith.constant 0 : index
    %c1_74 = arith.constant 1 : index
    %c0_75 = arith.constant 0 : index
    %c0_76 = arith.constant 0 : index
    %87 = vector.load %arg8[%c0_73, %c1_74, %c0_75, %c0_76] : memref<2x2x16x8xbf16, #tpu.memory_space<vmem>>, vector<1x1x16x8xbf16>
    %88 = vector.shape_cast %87 : vector<1x1x16x8xbf16> to vector<16x8xbf16>
    %cst_77 = arith.constant dense<0.000000e+00> : vector<64x8xf32>
    %89 = tpu.matmul %86, %88, %cst_77 {dimension_numbers = #tpu.dot_dimension_numbers<[1], [0], [0], [1], [0, 0, 1, 1], [], []>} : vector<64x16xbf16>, vector<16x8xbf16>, vector<64x8xf32> -> vector<64x8xf32>
    %90 = arith.addf %84, %89 : vector<64x8xf32>
    %91 = vector.extract_strided_slice %78 {offsets = [1, 0, 0], sizes = [8, 8, 16], strides = [1, 1, 1]} : vector<9x9x16xbf16> to vector<8x8x16xbf16>
    %92 = vector.shape_cast %91 : vector<8x8x16xbf16> to vector<64x16xbf16>
    %c1_78 = arith.constant 1 : index
    %c0_79 = arith.constant 0 : index
    %c0_80 = arith.constant 0 : index
    %c0_81 = arith.constant 0 : index
    %93 = vector.load %arg8[%c1_78, %c0_79, %c0_80, %c0_81] : memref<2x2x16x8xbf16, #tpu.memory_space<vmem>>, vector<1x1x16x8xbf16>
    %94 = vector.shape_cast %93 : vector<1x1x16x8xbf16> to vector<16x8xbf16>
    %cst_82 = arith.constant dense<0.000000e+00> : vector<64x8xf32>
    %95 = tpu.matmul %92, %94, %cst_82 {dimension_numbers = #tpu.dot_dimension_numbers<[1], [0], [0], [1], [0, 0, 1, 1], [], []>} : vector<64x16xbf16>, vector<16x8xbf16>, vector<64x8xf32> -> vector<64x8xf32>
    %96 = arith.addf %90, %95 : vector<64x8xf32>
    %97 = vector.extract_strided_slice %78 {offsets = [1, 1, 0], sizes = [8, 8, 16], strides = [1, 1, 1]} : vector<9x9x16xbf16> to vector<8x8x16xbf16>
    %98 = vector.shape_cast %97 : vector<8x8x16xbf16> to vector<64x16xbf16>
    %c1_83 = arith.constant 1 : index
    %c1_84 = arith.constant 1 : index
    %c0_85 = arith.constant 0 : index
    %c0_86 = arith.constant 0 : index
    %99 = vector.load %arg8[%c1_83, %c1_84, %c0_85, %c0_86] : memref<2x2x16x8xbf16, #tpu.memory_space<vmem>>, vector<1x1x16x8xbf16>
    %100 = vector.shape_cast %99 : vector<1x1x16x8xbf16> to vector<16x8xbf16>
    %cst_87 = arith.constant dense<0.000000e+00> : vector<64x8xf32>
    %101 = tpu.matmul %98, %100, %cst_87 {dimension_numbers = #tpu.dot_dimension_numbers<[1], [0], [0], [1], [0, 0, 1, 1], [], []>} : vector<64x16xbf16>, vector<16x8xbf16>, vector<64x8xf32> -> vector<64x8xf32>
    %102 = arith.addf %96, %101 : vector<64x8xf32>
    %103 = vector.shape_cast %102 : vector<64x8xf32> to vector<1x8x8x8xf32>
    %104 = arith.truncf %103 : vector<1x8x8x8xf32> to vector<1x8x8x8xbf16>
    %c0_88 = arith.constant 0 : index
    %c0_89 = arith.constant 0 : index
    %c0_90 = arith.constant 0 : index
    %c0_91 = arith.constant 0 : index
    %105 = vector.load %arg10[%c0_88, %c0_89, %c0_90, %c0_91] : memref<1x8x8x8xbf16, #tpu.memory_space<vmem>>, vector<1x8x8x8xbf16>
    tpu.vector_store %arg10[%c0_88, %c0_89, %c0_90, %c0_91], %104 {strides = array<i32>} : memref<1x8x8x8xbf16, #tpu.memory_space<vmem>>, vector<1x8x8x8xbf16>,
    return
  }
  func.func @transform_0(%arg0: i32, %arg1: i32) -> (i32, i32, i32, i32) {
    %c0_i32 = arith.constant 0 : i32
    %c0_i32_0 = arith.constant 0 : i32
    %c0_i32_1 = arith.constant 0 : i32
    return %arg0, %arg1, %c0_i32, %c0_i32_0 : i32, i32, i32, i32
  }
  func.func @transform_1(%arg0: i32, %arg1: i32) -> (i32, i32, i32, i32) {
    %c8_i32 = arith.constant 8 : i32
    %0 = arith.muli %arg1, %c8_i32 : i32
    %c1_i32 = arith.constant 1 : i32
    %1 = arith.subi %0, %c1_i32 : i32
    %c0_i32 = arith.constant 0 : i32
    %2 = arith.maxsi %1, %c0_i32 : i32
    %c0_i32_0 = arith.constant 0 : i32
    %c0_i32_1 = arith.constant 0 : i32
    %c0_i32_2 = arith.constant 0 : i32
    return %arg0, %2, %c0_i32_0, %c0_i32_1 : i32, i32, i32, i32
  }
  func.func @transform_2(%arg0: i32, %arg1: i32) -> (i32, i32, i32, i32) {
    %c1_i32 = arith.constant 1 : i32
    %0 = arith.addi %arg1, %c1_i32 : i32
    %c8_i32 = arith.constant 8 : i32
    %1 = arith.muli %0, %c8_i32 : i32
    %c7_i32 = arith.constant 7 : i32
    %2 = arith.minsi %1, %c7_i32 : i32
    %c0_i32 = arith.constant 0 : i32
    %c0_i32_0 = arith.constant 0 : i32
    %c0_i32_1 = arith.constant 0 : i32
    return %arg0, %2, %c0_i32, %c0_i32_0 : i32, i32, i32, i32
  }
  func.func @transform_3(%arg0: i32, %arg1: i32) -> (i32, i32, i32, i32) {
    %c0_i32 = arith.constant 0 : i32
    %c0_i32_0 = arith.constant 0 : i32
    %c0_i32_1 = arith.constant 0 : i32
    return %arg0, %arg1, %c0_i32, %c0_i32_0 : i32, i32, i32, i32
  }
  func.func @transform_4(%arg0: i32, %arg1: i32) -> (i32, i32, i32, i32) {
    %c1_i32 = arith.constant 1 : i32
    %0 = arith.addi %arg1, %c1_i32 : i32
    %c8_i32 = arith.constant 8 : i32
    %1 = arith.muli %0, %c8_i32 : i32
    %c0_i32 = arith.constant 0 : i32
    %c0_i32_0 = arith.constant 0 : i32
    %c0_i32_1 = arith.constant 0 : i32
    return %arg0, %1, %c0_i32, %c0_i32_0 : i32, i32, i32, i32
  }
  func.func @transform_5(%arg0: i32, %arg1: i32) -> (i32, i32, i32, i32) {
    %c0_i32 = arith.constant 0 : i32
    %c0_i32_0 = arith.constant 0 : i32
    %c0_i32_1 = arith.constant 0 : i32
    %c0_i32_2 = arith.constant 0 : i32
    %c0_i32_3 = arith.constant 0 : i32
    return %c0_i32, %c0_i32_0, %c0_i32_1, %c0_i32_2 : i32, i32, i32, i32
  }
  func.func @transform_6(%arg0: i32, %arg1: i32) -> (i32, i32, i32, i32) {
    %c0_i32 = arith.constant 0 : i32
    %c0_i32_0 = arith.constant 0 : i32
    %c0_i32_1 = arith.constant 0 : i32
    %c0_i32_2 = arith.constant 0 : i32
    %c0_i32_3 = arith.constant 0 : i32
    return %c0_i32, %c0_i32_0, %c0_i32_1, %c0_i32_2 : i32, i32, i32, i32
  }
  func.func @transform_7(%arg0: i32, %arg1: i32) -> (i32, i32) {
    %c0_i32 = arith.constant 0 : i32
    %c0_i32_0 = arith.constant 0 : i32
    %c0_i32_1 = arith.constant 0 : i32
    return %c0_i32, %c0_i32_0 : i32, i32
  }
  func.func @transform_8(%arg0: i32, %arg1: i32) -> (i32, i32, i32, i32) {
    %c0_i32 = arith.constant 0 : i32
    %c0_i32_0 = arith.constant 0 : i32
    %c0_i32_1 = arith.constant 0 : i32
    return %arg0, %arg1, %c0_i32, %c0_i32_0 : i32, i32, i32, i32
  }
}

module attributes {stable_mosaic.version = 11 : i64} {
  func.func @_conv1_phase_kernel(%arg0: i32, %arg1: i32, %arg2: memref<1x8x9x16xbf16, #tpu.memory_space<vmem>>, %arg3: memref<1x1x9x16xbf16, #tpu.memory_space<vmem>>, %arg4: memref<2x2x16x16xbf16, #tpu.memory_space<vmem>>, %arg5: memref<1x16xf32, #tpu.memory_space<vmem>>, %arg6: memref<1x8x10x16xbf16, #tpu.memory_space<vmem>>) attributes {dimension_semantics = [#tpu.dimension_semantics<parallel>, #tpu.dimension_semantics<parallel>], iteration_bounds = array<i64: 2, 1>, scalar_prefetch = 0 : i64, scratch_operands = 0 : i64, tpu.core_type = #tpu.core_type<tc>, window_params = [{transform_indices = @transform_0, window_bounds = array<i64: 1, 8, 9, 16>}, {transform_indices = @transform_1, window_bounds = array<i64: 1, 1, 9, 16>}, {pipeline_mode = #tpu.pipeline_mode<synchronous>, transform_indices = @transform_2, window_bounds = array<i64: 2, 2, 16, 16>}, {pipeline_mode = #tpu.pipeline_mode<synchronous>, transform_indices = @transform_3, window_bounds = array<i64: 1, 16>}, {transform_indices = @transform_4, window_bounds = array<i64: 1, 8, 10, 16>}]} {
    %c0 = arith.constant 0 : index
    %c0_0 = arith.constant 0 : index
    %c0_1 = arith.constant 0 : index
    %c0_2 = arith.constant 0 : index
    %0 = vector.load %arg2[%c0, %c0_0, %c0_1, %c0_2] : memref<1x8x9x16xbf16, #tpu.memory_space<vmem>>, vector<1x8x9x16xbf16>
    %1 = vector.shape_cast %0 : vector<1x8x9x16xbf16> to vector<8x9x16xbf16>
    %c0_3 = arith.constant 0 : index
    %c0_4 = arith.constant 0 : index
    %c0_5 = arith.constant 0 : index
    %c0_6 = arith.constant 0 : index
    %2 = vector.load %arg3[%c0_3, %c0_4, %c0_5, %c0_6] : memref<1x1x9x16xbf16, #tpu.memory_space<vmem>>, vector<1x1x9x16xbf16>
    %3 = vector.shape_cast %2 : vector<1x1x9x16xbf16> to vector<1x9x16xbf16>
    %4 = tpu.concatenate %1, %3 in 0 : vector<8x9x16xbf16>, vector<1x9x16xbf16> -> vector<9x9x16xbf16>
    %cst = arith.constant 0.000000e+00 : f32
    %5 = vector.broadcast %cst : f32 to vector<64x16xf32>
    %6 = vector.extract_strided_slice %4 {offsets = [0, 0, 0], sizes = [8, 8, 16], strides = [1, 1, 1]} : vector<9x9x16xbf16> to vector<8x8x16xbf16>
    %7 = vector.shape_cast %6 : vector<8x8x16xbf16> to vector<64x16xbf16>
    %c0_7 = arith.constant 0 : index
    %c0_8 = arith.constant 0 : index
    %c0_9 = arith.constant 0 : index
    %c0_10 = arith.constant 0 : index
    %8 = vector.load %arg4[%c0_7, %c0_8, %c0_9, %c0_10] : memref<2x2x16x16xbf16, #tpu.memory_space<vmem>>, vector<1x1x16x16xbf16>
    %9 = vector.shape_cast %8 : vector<1x1x16x16xbf16> to vector<16x16xbf16>
    %cst_11 = arith.constant dense<0.000000e+00> : vector<64x16xf32>
    %10 = tpu.matmul %7, %9, %cst_11 {dimension_numbers = #tpu.dot_dimension_numbers<[1], [0], [0], [1], [0, 0, 1, 1], [], []>} : vector<64x16xbf16>, vector<16x16xbf16>, vector<64x16xf32> -> vector<64x16xf32>
    %11 = arith.addf %5, %10 : vector<64x16xf32>
    %12 = vector.extract_strided_slice %4 {offsets = [0, 1, 0], sizes = [8, 8, 16], strides = [1, 1, 1]} : vector<9x9x16xbf16> to vector<8x8x16xbf16>
    %13 = vector.shape_cast %12 : vector<8x8x16xbf16> to vector<64x16xbf16>
    %c0_12 = arith.constant 0 : index
    %c1 = arith.constant 1 : index
    %c0_13 = arith.constant 0 : index
    %c0_14 = arith.constant 0 : index
    %14 = vector.load %arg4[%c0_12, %c1, %c0_13, %c0_14] : memref<2x2x16x16xbf16, #tpu.memory_space<vmem>>, vector<1x1x16x16xbf16>
    %15 = vector.shape_cast %14 : vector<1x1x16x16xbf16> to vector<16x16xbf16>
    %cst_15 = arith.constant dense<0.000000e+00> : vector<64x16xf32>
    %16 = tpu.matmul %13, %15, %cst_15 {dimension_numbers = #tpu.dot_dimension_numbers<[1], [0], [0], [1], [0, 0, 1, 1], [], []>} : vector<64x16xbf16>, vector<16x16xbf16>, vector<64x16xf32> -> vector<64x16xf32>
    %17 = arith.addf %11, %16 : vector<64x16xf32>
    %18 = vector.extract_strided_slice %4 {offsets = [1, 0, 0], sizes = [8, 8, 16], strides = [1, 1, 1]} : vector<9x9x16xbf16> to vector<8x8x16xbf16>
    %19 = vector.shape_cast %18 : vector<8x8x16xbf16> to vector<64x16xbf16>
    %c1_16 = arith.constant 1 : index
    %c0_17 = arith.constant 0 : index
    %c0_18 = arith.constant 0 : index
    %c0_19 = arith.constant 0 : index
    %20 = vector.load %arg4[%c1_16, %c0_17, %c0_18, %c0_19] : memref<2x2x16x16xbf16, #tpu.memory_space<vmem>>, vector<1x1x16x16xbf16>
    %21 = vector.shape_cast %20 : vector<1x1x16x16xbf16> to vector<16x16xbf16>
    %cst_20 = arith.constant dense<0.000000e+00> : vector<64x16xf32>
    %22 = tpu.matmul %19, %21, %cst_20 {dimension_numbers = #tpu.dot_dimension_numbers<[1], [0], [0], [1], [0, 0, 1, 1], [], []>} : vector<64x16xbf16>, vector<16x16xbf16>, vector<64x16xf32> -> vector<64x16xf32>
    %23 = arith.addf %17, %22 : vector<64x16xf32>
    %24 = vector.extract_strided_slice %4 {offsets = [1, 1, 0], sizes = [8, 8, 16], strides = [1, 1, 1]} : vector<9x9x16xbf16> to vector<8x8x16xbf16>
    %25 = vector.shape_cast %24 : vector<8x8x16xbf16> to vector<64x16xbf16>
    %c1_21 = arith.constant 1 : index
    %c1_22 = arith.constant 1 : index
    %c0_23 = arith.constant 0 : index
    %c0_24 = arith.constant 0 : index
    %26 = vector.load %arg4[%c1_21, %c1_22, %c0_23, %c0_24] : memref<2x2x16x16xbf16, #tpu.memory_space<vmem>>, vector<1x1x16x16xbf16>
    %27 = vector.shape_cast %26 : vector<1x1x16x16xbf16> to vector<16x16xbf16>
    %cst_25 = arith.constant dense<0.000000e+00> : vector<64x16xf32>
    %28 = tpu.matmul %25, %27, %cst_25 {dimension_numbers = #tpu.dot_dimension_numbers<[1], [0], [0], [1], [0, 0, 1, 1], [], []>} : vector<64x16xbf16>, vector<16x16xbf16>, vector<64x16xf32> -> vector<64x16xf32>
    %29 = arith.addf %23, %28 : vector<64x16xf32>
    %c0_26 = arith.constant 0 : index
    %c0_27 = arith.constant 0 : index
    %30 = vector.load %arg5[%c0_26, %c0_27] : memref<1x16xf32, #tpu.memory_space<vmem>>, vector<1x16xf32>
    %31 = vector.broadcast %30 : vector<1x16xf32> to vector<64x16xf32>
    %32 = arith.addf %29, %31 : vector<64x16xf32>
    %cst_28 = arith.constant 2.000000e-01 : f32
    %33 = vector.broadcast %cst_28 : f32 to vector<64x16xf32>
    %34 = arith.mulf %33, %32 : vector<64x16xf32>
    %35 = arith.maximumf %32, %34 : vector<64x16xf32>
    %36 = vector.shape_cast %35 : vector<64x16xf32> to vector<8x8x16xf32>
    %37 = arith.truncf %36 : vector<8x8x16xf32> to vector<8x8x16xbf16>
    %cst_29 = arith.constant 0.000000e+00 : bf16
    %38 = vector.broadcast %cst_29 : bf16 to vector<8x1x16xbf16>
    %39 = tpu.concatenate %38, %37, %38 in 1 : vector<8x1x16xbf16>, vector<8x8x16xbf16>, vector<8x1x16xbf16> -> vector<8x10x16xbf16>
    %c0_30 = arith.constant 0 : index
    %c0_31 = arith.constant 0 : index
    %c0_32 = arith.constant 0 : index
    %c0_33 = arith.constant 0 : index
    %40 = vector.load %arg6[%c0_30, %c0_31, %c0_32, %c0_33] : memref<1x8x10x16xbf16, #tpu.memory_space<vmem>>, vector<1x8x10x16xbf16>
    %41 = vector.shape_cast %40 : vector<1x8x10x16xbf16> to vector<8x10x16xbf16>
    %42 = vector.shape_cast %39 : vector<8x10x16xbf16> to vector<1x8x10x16xbf16>
    tpu.vector_store %arg6[%c0_30, %c0_31, %c0_32, %c0_33], %42 {strides = array<i32>} : memref<1x8x10x16xbf16, #tpu.memory_space<vmem>>, vector<1x8x10x16xbf16>,
    return
  }
  func.func @transform_0(%arg0: i32, %arg1: i32) -> (i32, i32, i32, i32) {
    %c0_i32 = arith.constant 0 : i32
    %c0_i32_0 = arith.constant 0 : i32
    %c0_i32_1 = arith.constant 0 : i32
    return %arg0, %arg1, %c0_i32, %c0_i32_0 : i32, i32, i32, i32
  }
  func.func @transform_1(%arg0: i32, %arg1: i32) -> (i32, i32, i32, i32) {
    %c1_i32 = arith.constant 1 : i32
    %0 = arith.addi %arg1, %c1_i32 : i32
    %c8_i32 = arith.constant 8 : i32
    %1 = arith.muli %0, %c8_i32 : i32
    %c0_i32 = arith.constant 0 : i32
    %c0_i32_0 = arith.constant 0 : i32
    %c0_i32_1 = arith.constant 0 : i32
    return %arg0, %1, %c0_i32, %c0_i32_0 : i32, i32, i32, i32
  }
  func.func @transform_2(%arg0: i32, %arg1: i32) -> (i32, i32, i32, i32) {
    %c0_i32 = arith.constant 0 : i32
    %c0_i32_0 = arith.constant 0 : i32
    %c0_i32_1 = arith.constant 0 : i32
    %c0_i32_2 = arith.constant 0 : i32
    %c0_i32_3 = arith.constant 0 : i32
    return %c0_i32, %c0_i32_0, %c0_i32_1, %c0_i32_2 : i32, i32, i32, i32
  }
  func.func @transform_3(%arg0: i32, %arg1: i32) -> (i32, i32) {
    %c0_i32 = arith.constant 0 : i32
    %c0_i32_0 = arith.constant 0 : i32
    %c0_i32_1 = arith.constant 0 : i32
    return %c0_i32, %c0_i32_0 : i32, i32
  }
  func.func @transform_4(%arg0: i32, %arg1: i32) -> (i32, i32, i32, i32) {
    %c0_i32 = arith.constant 0 : i32
    %c0_i32_0 = arith.constant 0 : i32
    %c0_i32_1 = arith.constant 0 : i32
    return %arg0, %arg1, %c0_i32, %c0_i32_0 : i32, i32, i32, i32
  }
}

module attributes {stable_mosaic.version = 11 : i64} {
  func.func @_down_kernel(%arg0: i32, %arg1: i32, %arg2: memref<1x8x10x16xbf16, #tpu.memory_space<vmem>>, %arg3: memref<1x1x10x16xbf16, #tpu.memory_space<vmem>>, %arg4: memref<1x1x10x16xbf16, #tpu.memory_space<vmem>>, %arg5: memref<1x8x9x16xbf16, #tpu.memory_space<vmem>>, %arg6: memref<1x1x9x16xbf16, #tpu.memory_space<vmem>>, %arg7: memref<3x3x16x8xbf16, #tpu.memory_space<vmem>>, %arg8: memref<2x2x16x8xbf16, #tpu.memory_space<vmem>>, %arg9: memref<1x8xf32, #tpu.memory_space<vmem>>, %arg10: memref<1x8x8x8xbf16, #tpu.memory_space<vmem>>) attributes {dimension_semantics = [#tpu.dimension_semantics<parallel>, #tpu.dimension_semantics<parallel>], iteration_bounds = array<i64: 2, 1>, scalar_prefetch = 0 : i64, scratch_operands = 0 : i64, tpu.core_type = #tpu.core_type<tc>, window_params = [{transform_indices = @transform_0, window_bounds = array<i64: 1, 8, 10, 16>}, {transform_indices = @transform_1, window_bounds = array<i64: 1, 1, 10, 16>}, {transform_indices = @transform_2, window_bounds = array<i64: 1, 1, 10, 16>}, {transform_indices = @transform_3, window_bounds = array<i64: 1, 8, 9, 16>}, {transform_indices = @transform_4, window_bounds = array<i64: 1, 1, 9, 16>}, {pipeline_mode = #tpu.pipeline_mode<synchronous>, transform_indices = @transform_5, window_bounds = array<i64: 3, 3, 16, 8>}, {pipeline_mode = #tpu.pipeline_mode<synchronous>, transform_indices = @transform_6, window_bounds = array<i64: 2, 2, 16, 8>}, {pipeline_mode = #tpu.pipeline_mode<synchronous>, transform_indices = @transform_7, window_bounds = array<i64: 1, 8>}, {transform_indices = @transform_8, window_bounds = array<i64: 1, 8, 8, 8>}]} {
    %c0_i32 = arith.constant 0 : i32
    %0 = arith.cmpi sgt, %arg1, %c0_i32 : i32
    %c0 = arith.constant 0 : index
    %c0_0 = arith.constant 0 : index
    %c0_1 = arith.constant 0 : index
    %c0_2 = arith.constant 0 : index
    %1 = vector.load %arg3[%c0, %c0_0, %c0_1, %c0_2] : memref<1x1x10x16xbf16, #tpu.memory_space<vmem>>, vector<1x1x10x16xbf16>
    %2 = vector.shape_cast %1 : vector<1x1x10x16xbf16> to vector<1x10x16xbf16>
    %cst = arith.constant 0.000000e+00 : bf16
    %3 = vector.broadcast %cst : bf16 to vector<1x10x16xbf16>
    %4 = arith.select %0, %2, %3 : vector<1x10x16xbf16>
    %c0_i32_3 = arith.constant 0 : i32
    %5 = arith.cmpi slt, %arg1, %c0_i32_3 : i32
    %c0_4 = arith.constant 0 : index
    %c0_5 = arith.constant 0 : index
    %c0_6 = arith.constant 0 : index
    %c0_7 = arith.constant 0 : index
    %6 = vector.load %arg4[%c0_4, %c0_5, %c0_6, %c0_7] : memref<1x1x10x16xbf16, #tpu.memory_space<vmem>>, vector<1x1x10x16xbf16>
    %7 = vector.shape_cast %6 : vector<1x1x10x16xbf16> to vector<1x10x16xbf16>
    %cst_8 = arith.constant 0.000000e+00 : bf16
    %8 = vector.broadcast %cst_8 : bf16 to vector<1x10x16xbf16>
    %9 = arith.select %5, %7, %8 : vector<1x10x16xbf16>
    %c0_9 = arith.constant 0 : index
    %c0_10 = arith.constant 0 : index
    %c0_11 = arith.constant 0 : index
    %c0_12 = arith.constant 0 : index
    %10 = vector.load %arg2[%c0_9, %c0_10, %c0_11, %c0_12] : memref<1x8x10x16xbf16, #tpu.memory_space<vmem>>, vector<1x8x10x16xbf16>
    %11 = vector.shape_cast %10 : vector<1x8x10x16xbf16> to vector<8x10x16xbf16>
    %12 = tpu.concatenate %4, %11, %9 in 0 : vector<1x10x16xbf16>, vector<8x10x16xbf16>, vector<1x10x16xbf16> -> vector<10x10x16xbf16>
    %cst_13 = arith.constant 0.000000e+00 : f32
    %13 = vector.broadcast %cst_13 : f32 to vector<64x8xf32>
    %14 = vector.extract_strided_slice %12 {offsets = [0, 0, 0], sizes = [8, 8, 16], strides = [1, 1, 1]} : vector<10x10x16xbf16> to vector<8x8x16xbf16>
    %15 = vector.shape_cast %14 : vector<8x8x16xbf16> to vector<64x16xbf16>
    %c0_14 = arith.constant 0 : index
    %c0_15 = arith.constant 0 : index
    %c0_16 = arith.constant 0 : index
    %c0_17 = arith.constant 0 : index
    %16 = vector.load %arg7[%c0_14, %c0_15, %c0_16, %c0_17] : memref<3x3x16x8xbf16, #tpu.memory_space<vmem>>, vector<1x1x16x8xbf16>
    %17 = vector.shape_cast %16 : vector<1x1x16x8xbf16> to vector<16x8xbf16>
    %cst_18 = arith.constant dense<0.000000e+00> : vector<64x8xf32>
    %18 = tpu.matmul %15, %17, %cst_18 {dimension_numbers = #tpu.dot_dimension_numbers<[1], [0], [0], [1], [0, 0, 1, 1], [], []>} : vector<64x16xbf16>, vector<16x8xbf16>, vector<64x8xf32> -> vector<64x8xf32>
    %19 = arith.addf %13, %18 : vector<64x8xf32>
    %20 = vector.extract_strided_slice %12 {offsets = [0, 1, 0], sizes = [8, 8, 16], strides = [1, 1, 1]} : vector<10x10x16xbf16> to vector<8x8x16xbf16>
    %21 = vector.shape_cast %20 : vector<8x8x16xbf16> to vector<64x16xbf16>
    %c0_19 = arith.constant 0 : index
    %c1 = arith.constant 1 : index
    %c0_20 = arith.constant 0 : index
    %c0_21 = arith.constant 0 : index
    %22 = vector.load %arg7[%c0_19, %c1, %c0_20, %c0_21] : memref<3x3x16x8xbf16, #tpu.memory_space<vmem>>, vector<1x1x16x8xbf16>
    %23 = vector.shape_cast %22 : vector<1x1x16x8xbf16> to vector<16x8xbf16>
    %cst_22 = arith.constant dense<0.000000e+00> : vector<64x8xf32>
    %24 = tpu.matmul %21, %23, %cst_22 {dimension_numbers = #tpu.dot_dimension_numbers<[1], [0], [0], [1], [0, 0, 1, 1], [], []>} : vector<64x16xbf16>, vector<16x8xbf16>, vector<64x8xf32> -> vector<64x8xf32>
    %25 = arith.addf %19, %24 : vector<64x8xf32>
    %26 = vector.extract_strided_slice %12 {offsets = [0, 2, 0], sizes = [8, 8, 16], strides = [1, 1, 1]} : vector<10x10x16xbf16> to vector<8x8x16xbf16>
    %27 = vector.shape_cast %26 : vector<8x8x16xbf16> to vector<64x16xbf16>
    %c0_23 = arith.constant 0 : index
    %c2 = arith.constant 2 : index
    %c0_24 = arith.constant 0 : index
    %c0_25 = arith.constant 0 : index
    %28 = vector.load %arg7[%c0_23, %c2, %c0_24, %c0_25] : memref<3x3x16x8xbf16, #tpu.memory_space<vmem>>, vector<1x1x16x8xbf16>
    %29 = vector.shape_cast %28 : vector<1x1x16x8xbf16> to vector<16x8xbf16>
    %cst_26 = arith.constant dense<0.000000e+00> : vector<64x8xf32>
    %30 = tpu.matmul %27, %29, %cst_26 {dimension_numbers = #tpu.dot_dimension_numbers<[1], [0], [0], [1], [0, 0, 1, 1], [], []>} : vector<64x16xbf16>, vector<16x8xbf16>, vector<64x8xf32> -> vector<64x8xf32>
    %31 = arith.addf %25, %30 : vector<64x8xf32>
    %32 = vector.extract_strided_slice %12 {offsets = [1, 0, 0], sizes = [8, 8, 16], strides = [1, 1, 1]} : vector<10x10x16xbf16> to vector<8x8x16xbf16>
    %33 = vector.shape_cast %32 : vector<8x8x16xbf16> to vector<64x16xbf16>
    %c1_27 = arith.constant 1 : index
    %c0_28 = arith.constant 0 : index
    %c0_29 = arith.constant 0 : index
    %c0_30 = arith.constant 0 : index
    %34 = vector.load %arg7[%c1_27, %c0_28, %c0_29, %c0_30] : memref<3x3x16x8xbf16, #tpu.memory_space<vmem>>, vector<1x1x16x8xbf16>
    %35 = vector.shape_cast %34 : vector<1x1x16x8xbf16> to vector<16x8xbf16>
    %cst_31 = arith.constant dense<0.000000e+00> : vector<64x8xf32>
    %36 = tpu.matmul %33, %35, %cst_31 {dimension_numbers = #tpu.dot_dimension_numbers<[1], [0], [0], [1], [0, 0, 1, 1], [], []>} : vector<64x16xbf16>, vector<16x8xbf16>, vector<64x8xf32> -> vector<64x8xf32>
    %37 = arith.addf %31, %36 : vector<64x8xf32>
    %38 = vector.extract_strided_slice %12 {offsets = [1, 1, 0], sizes = [8, 8, 16], strides = [1, 1, 1]} : vector<10x10x16xbf16> to vector<8x8x16xbf16>
    %39 = vector.shape_cast %38 : vector<8x8x16xbf16> to vector<64x16xbf16>
    %c1_32 = arith.constant 1 : index
    %c1_33 = arith.constant 1 : index
    %c0_34 = arith.constant 0 : index
    %c0_35 = arith.constant 0 : index
    %40 = vector.load %arg7[%c1_32, %c1_33, %c0_34, %c0_35] : memref<3x3x16x8xbf16, #tpu.memory_space<vmem>>, vector<1x1x16x8xbf16>
    %41 = vector.shape_cast %40 : vector<1x1x16x8xbf16> to vector<16x8xbf16>
    %cst_36 = arith.constant dense<0.000000e+00> : vector<64x8xf32>
    %42 = tpu.matmul %39, %41, %cst_36 {dimension_numbers = #tpu.dot_dimension_numbers<[1], [0], [0], [1], [0, 0, 1, 1], [], []>} : vector<64x16xbf16>, vector<16x8xbf16>, vector<64x8xf32> -> vector<64x8xf32>
    %43 = arith.addf %37, %42 : vector<64x8xf32>
    %44 = vector.extract_strided_slice %12 {offsets = [1, 2, 0], sizes = [8, 8, 16], strides = [1, 1, 1]} : vector<10x10x16xbf16> to vector<8x8x16xbf16>
    %45 = vector.shape_cast %44 : vector<8x8x16xbf16> to vector<64x16xbf16>
    %c1_37 = arith.constant 1 : index
    %c2_38 = arith.constant 2 : index
    %c0_39 = arith.constant 0 : index
    %c0_40 = arith.constant 0 : index
    %46 = vector.load %arg7[%c1_37, %c2_38, %c0_39, %c0_40] : memref<3x3x16x8xbf16, #tpu.memory_space<vmem>>, vector<1x1x16x8xbf16>
    %47 = vector.shape_cast %46 : vector<1x1x16x8xbf16> to vector<16x8xbf16>
    %cst_41 = arith.constant dense<0.000000e+00> : vector<64x8xf32>
    %48 = tpu.matmul %45, %47, %cst_41 {dimension_numbers = #tpu.dot_dimension_numbers<[1], [0], [0], [1], [0, 0, 1, 1], [], []>} : vector<64x16xbf16>, vector<16x8xbf16>, vector<64x8xf32> -> vector<64x8xf32>
    %49 = arith.addf %43, %48 : vector<64x8xf32>
    %50 = vector.extract_strided_slice %12 {offsets = [2, 0, 0], sizes = [8, 8, 16], strides = [1, 1, 1]} : vector<10x10x16xbf16> to vector<8x8x16xbf16>
    %51 = vector.shape_cast %50 : vector<8x8x16xbf16> to vector<64x16xbf16>
    %c2_42 = arith.constant 2 : index
    %c0_43 = arith.constant 0 : index
    %c0_44 = arith.constant 0 : index
    %c0_45 = arith.constant 0 : index
    %52 = vector.load %arg7[%c2_42, %c0_43, %c0_44, %c0_45] : memref<3x3x16x8xbf16, #tpu.memory_space<vmem>>, vector<1x1x16x8xbf16>
    %53 = vector.shape_cast %52 : vector<1x1x16x8xbf16> to vector<16x8xbf16>
    %cst_46 = arith.constant dense<0.000000e+00> : vector<64x8xf32>
    %54 = tpu.matmul %51, %53, %cst_46 {dimension_numbers = #tpu.dot_dimension_numbers<[1], [0], [0], [1], [0, 0, 1, 1], [], []>} : vector<64x16xbf16>, vector<16x8xbf16>, vector<64x8xf32> -> vector<64x8xf32>
    %55 = arith.addf %49, %54 : vector<64x8xf32>
    %56 = vector.extract_strided_slice %12 {offsets = [2, 1, 0], sizes = [8, 8, 16], strides = [1, 1, 1]} : vector<10x10x16xbf16> to vector<8x8x16xbf16>
    %57 = vector.shape_cast %56 : vector<8x8x16xbf16> to vector<64x16xbf16>
    %c2_47 = arith.constant 2 : index
    %c1_48 = arith.constant 1 : index
    %c0_49 = arith.constant 0 : index
    %c0_50 = arith.constant 0 : index
    %58 = vector.load %arg7[%c2_47, %c1_48, %c0_49, %c0_50] : memref<3x3x16x8xbf16, #tpu.memory_space<vmem>>, vector<1x1x16x8xbf16>
    %59 = vector.shape_cast %58 : vector<1x1x16x8xbf16> to vector<16x8xbf16>
    %cst_51 = arith.constant dense<0.000000e+00> : vector<64x8xf32>
    %60 = tpu.matmul %57, %59, %cst_51 {dimension_numbers = #tpu.dot_dimension_numbers<[1], [0], [0], [1], [0, 0, 1, 1], [], []>} : vector<64x16xbf16>, vector<16x8xbf16>, vector<64x8xf32> -> vector<64x8xf32>
    %61 = arith.addf %55, %60 : vector<64x8xf32>
    %62 = vector.extract_strided_slice %12 {offsets = [2, 2, 0], sizes = [8, 8, 16], strides = [1, 1, 1]} : vector<10x10x16xbf16> to vector<8x8x16xbf16>
    %63 = vector.shape_cast %62 : vector<8x8x16xbf16> to vector<64x16xbf16>
    %c2_52 = arith.constant 2 : index
    %c2_53 = arith.constant 2 : index
    %c0_54 = arith.constant 0 : index
    %c0_55 = arith.constant 0 : index
    %64 = vector.load %arg7[%c2_52, %c2_53, %c0_54, %c0_55] : memref<3x3x16x8xbf16, #tpu.memory_space<vmem>>, vector<1x1x16x8xbf16>
    %65 = vector.shape_cast %64 : vector<1x1x16x8xbf16> to vector<16x8xbf16>
    %cst_56 = arith.constant dense<0.000000e+00> : vector<64x8xf32>
    %66 = tpu.matmul %63, %65, %cst_56 {dimension_numbers = #tpu.dot_dimension_numbers<[1], [0], [0], [1], [0, 0, 1, 1], [], []>} : vector<64x16xbf16>, vector<16x8xbf16>, vector<64x8xf32> -> vector<64x8xf32>
    %67 = arith.addf %61, %66 : vector<64x8xf32>
    %c0_57 = arith.constant 0 : index
    %c0_58 = arith.constant 0 : index
    %68 = vector.load %arg9[%c0_57, %c0_58] : memref<1x8xf32, #tpu.memory_space<vmem>>, vector<1x8xf32>
    %69 = vector.broadcast %68 : vector<1x8xf32> to vector<64x8xf32>
    %70 = arith.addf %67, %69 : vector<64x8xf32>
    %cst_59 = arith.constant 2.000000e-01 : f32
    %71 = vector.broadcast %cst_59 : f32 to vector<64x8xf32>
    %72 = arith.mulf %71, %70 : vector<64x8xf32>
    %73 = arith.maximumf %70, %72 : vector<64x8xf32>
    %c0_60 = arith.constant 0 : index
    %c0_61 = arith.constant 0 : index
    %c0_62 = arith.constant 0 : index
    %c0_63 = arith.constant 0 : index
    %74 = vector.load %arg5[%c0_60, %c0_61, %c0_62, %c0_63] : memref<1x8x9x16xbf16, #tpu.memory_space<vmem>>, vector<1x8x9x16xbf16>
    %75 = vector.shape_cast %74 : vector<1x8x9x16xbf16> to vector<8x9x16xbf16>
    %c0_64 = arith.constant 0 : index
    %c0_65 = arith.constant 0 : index
    %c0_66 = arith.constant 0 : index
    %c0_67 = arith.constant 0 : index
    %76 = vector.load %arg6[%c0_64, %c0_65, %c0_66, %c0_67] : memref<1x1x9x16xbf16, #tpu.memory_space<vmem>>, vector<1x1x9x16xbf16>
    %77 = vector.shape_cast %76 : vector<1x1x9x16xbf16> to vector<1x9x16xbf16>
    %78 = tpu.concatenate %75, %77 in 0 : vector<8x9x16xbf16>, vector<1x9x16xbf16> -> vector<9x9x16xbf16>
    %79 = vector.extract_strided_slice %78 {offsets = [0, 0, 0], sizes = [8, 8, 16], strides = [1, 1, 1]} : vector<9x9x16xbf16> to vector<8x8x16xbf16>
    %80 = vector.shape_cast %79 : vector<8x8x16xbf16> to vector<64x16xbf16>
    %c0_68 = arith.constant 0 : index
    %c0_69 = arith.constant 0 : index
    %c0_70 = arith.constant 0 : index
    %c0_71 = arith.constant 0 : index
    %81 = vector.load %arg8[%c0_68, %c0_69, %c0_70, %c0_71] : memref<2x2x16x8xbf16, #tpu.memory_space<vmem>>, vector<1x1x16x8xbf16>
    %82 = vector.shape_cast %81 : vector<1x1x16x8xbf16> to vector<16x8xbf16>
    %cst_72 = arith.constant dense<0.000000e+00> : vector<64x8xf32>
    %83 = tpu.matmul %80, %82, %cst_72 {dimension_numbers = #tpu.dot_dimension_numbers<[1], [0], [0], [1], [0, 0, 1, 1], [], []>} : vector<64x16xbf16>, vector<16x8xbf16>, vector<64x8xf32> -> vector<64x8xf32>
    %84 = arith.addf %73, %83 : vector<64x8xf32>
    %85 = vector.extract_strided_slice %78 {offsets = [0, 1, 0], sizes = [8, 8, 16], strides = [1, 1, 1]} : vector<9x9x16xbf16> to vector<8x8x16xbf16>
    %86 = vector.shape_cast %85 : vector<8x8x16xbf16> to vector<64x16xbf16>
    %c0_73 = arith.constant 0 : index
    %c1_74 = arith.constant 1 : index
    %c0_75 = arith.constant 0 : index
    %c0_76 = arith.constant 0 : index
    %87 = vector.load %arg8[%c0_73, %c1_74, %c0_75, %c0_76] : memref<2x2x16x8xbf16, #tpu.memory_space<vmem>>, vector<1x1x16x8xbf16>
    %88 = vector.shape_cast %87 : vector<1x1x16x8xbf16> to vector<16x8xbf16>
    %cst_77 = arith.constant dense<0.000000e+00> : vector<64x8xf32>
    %89 = tpu.matmul %86, %88, %cst_77 {dimension_numbers = #tpu.dot_dimension_numbers<[1], [0], [0], [1], [0, 0, 1, 1], [], []>} : vector<64x16xbf16>, vector<16x8xbf16>, vector<64x8xf32> -> vector<64x8xf32>
    %90 = arith.addf %84, %89 : vector<64x8xf32>
    %91 = vector.extract_strided_slice %78 {offsets = [1, 0, 0], sizes = [8, 8, 16], strides = [1, 1, 1]} : vector<9x9x16xbf16> to vector<8x8x16xbf16>
    %92 = vector.shape_cast %91 : vector<8x8x16xbf16> to vector<64x16xbf16>
    %c1_78 = arith.constant 1 : index
    %c0_79 = arith.constant 0 : index
    %c0_80 = arith.constant 0 : index
    %c0_81 = arith.constant 0 : index
    %93 = vector.load %arg8[%c1_78, %c0_79, %c0_80, %c0_81] : memref<2x2x16x8xbf16, #tpu.memory_space<vmem>>, vector<1x1x16x8xbf16>
    %94 = vector.shape_cast %93 : vector<1x1x16x8xbf16> to vector<16x8xbf16>
    %cst_82 = arith.constant dense<0.000000e+00> : vector<64x8xf32>
    %95 = tpu.matmul %92, %94, %cst_82 {dimension_numbers = #tpu.dot_dimension_numbers<[1], [0], [0], [1], [0, 0, 1, 1], [], []>} : vector<64x16xbf16>, vector<16x8xbf16>, vector<64x8xf32> -> vector<64x8xf32>
    %96 = arith.addf %90, %95 : vector<64x8xf32>
    %97 = vector.extract_strided_slice %78 {offsets = [1, 1, 0], sizes = [8, 8, 16], strides = [1, 1, 1]} : vector<9x9x16xbf16> to vector<8x8x16xbf16>
    %98 = vector.shape_cast %97 : vector<8x8x16xbf16> to vector<64x16xbf16>
    %c1_83 = arith.constant 1 : index
    %c1_84 = arith.constant 1 : index
    %c0_85 = arith.constant 0 : index
    %c0_86 = arith.constant 0 : index
    %99 = vector.load %arg8[%c1_83, %c1_84, %c0_85, %c0_86] : memref<2x2x16x8xbf16, #tpu.memory_space<vmem>>, vector<1x1x16x8xbf16>
    %100 = vector.shape_cast %99 : vector<1x1x16x8xbf16> to vector<16x8xbf16>
    %cst_87 = arith.constant dense<0.000000e+00> : vector<64x8xf32>
    %101 = tpu.matmul %98, %100, %cst_87 {dimension_numbers = #tpu.dot_dimension_numbers<[1], [0], [0], [1], [0, 0, 1, 1], [], []>} : vector<64x16xbf16>, vector<16x8xbf16>, vector<64x8xf32> -> vector<64x8xf32>
    %102 = arith.addf %96, %101 : vector<64x8xf32>
    %103 = vector.shape_cast %102 : vector<64x8xf32> to vector<1x8x8x8xf32>
    %104 = arith.truncf %103 : vector<1x8x8x8xf32> to vector<1x8x8x8xbf16>
    %c0_88 = arith.constant 0 : index
    %c0_89 = arith.constant 0 : index
    %c0_90 = arith.constant 0 : index
    %c0_91 = arith.constant 0 : index
    %105 = vector.load %arg10[%c0_88, %c0_89, %c0_90, %c0_91] : memref<1x8x8x8xbf16, #tpu.memory_space<vmem>>, vector<1x8x8x8xbf16>
    tpu.vector_store %arg10[%c0_88, %c0_89, %c0_90, %c0_91], %104 {strides = array<i32>} : memref<1x8x8x8xbf16, #tpu.memory_space<vmem>>, vector<1x8x8x8xbf16>,
    return
  }
  func.func @transform_0(%arg0: i32, %arg1: i32) -> (i32, i32, i32, i32) {
    %c0_i32 = arith.constant 0 : i32
    %c0_i32_0 = arith.constant 0 : i32
    %c0_i32_1 = arith.constant 0 : i32
    return %arg0, %arg1, %c0_i32, %c0_i32_0 : i32, i32, i32, i32
  }
  func.func @transform_1(%arg0: i32, %arg1: i32) -> (i32, i32, i32, i32) {
    %c8_i32 = arith.constant 8 : i32
    %0 = arith.muli %arg1, %c8_i32 : i32
    %c1_i32 = arith.constant 1 : i32
    %1 = arith.subi %0, %c1_i32 : i32
    %c0_i32 = arith.constant 0 : i32
    %2 = arith.maxsi %1, %c0_i32 : i32
    %c0_i32_0 = arith.constant 0 : i32
    %c0_i32_1 = arith.constant 0 : i32
    %c0_i32_2 = arith.constant 0 : i32
    return %arg0, %2, %c0_i32_0, %c0_i32_1 : i32, i32, i32, i32
  }
  func.func @transform_2(%arg0: i32, %arg1: i32) -> (i32, i32, i32, i32) {
    %c1_i32 = arith.constant 1 : i32
    %0 = arith.addi %arg1, %c1_i32 : i32
    %c8_i32 = arith.constant 8 : i32
    %1 = arith.muli %0, %c8_i32 : i32
    %c7_i32 = arith.constant 7 : i32
    %2 = arith.minsi %1, %c7_i32 : i32
    %c0_i32 = arith.constant 0 : i32
    %c0_i32_0 = arith.constant 0 : i32
    %c0_i32_1 = arith.constant 0 : i32
    return %arg0, %2, %c0_i32, %c0_i32_0 : i32, i32, i32, i32
  }
  func.func @transform_3(%arg0: i32, %arg1: i32) -> (i32, i32, i32, i32) {
    %c0_i32 = arith.constant 0 : i32
    %c0_i32_0 = arith.constant 0 : i32
    %c0_i32_1 = arith.constant 0 : i32
    return %arg0, %arg1, %c0_i32, %c0_i32_0 : i32, i32, i32, i32
  }
  func.func @transform_4(%arg0: i32, %arg1: i32) -> (i32, i32, i32, i32) {
    %c1_i32 = arith.constant 1 : i32
    %0 = arith.addi %arg1, %c1_i32 : i32
    %c8_i32 = arith.constant 8 : i32
    %1 = arith.muli %0, %c8_i32 : i32
    %c0_i32 = arith.constant 0 : i32
    %c0_i32_0 = arith.constant 0 : i32
    %c0_i32_1 = arith.constant 0 : i32
    return %arg0, %1, %c0_i32, %c0_i32_0 : i32, i32, i32, i32
  }
  func.func @transform_5(%arg0: i32, %arg1: i32) -> (i32, i32, i32, i32) {
    %c0_i32 = arith.constant 0 : i32
    %c0_i32_0 = arith.constant 0 : i32
    %c0_i32_1 = arith.constant 0 : i32
    %c0_i32_2 = arith.constant 0 : i32
    %c0_i32_3 = arith.constant 0 : i32
    return %c0_i32, %c0_i32_0, %c0_i32_1, %c0_i32_2 : i32, i32, i32, i32
  }
  func.func @transform_6(%arg0: i32, %arg1: i32) -> (i32, i32, i32, i32) {
    %c0_i32 = arith.constant 0 : i32
    %c0_i32_0 = arith.constant 0 : i32
    %c0_i32_1 = arith.constant 0 : i32
    %c0_i32_2 = arith.constant 0 : i32
    %c0_i32_3 = arith.constant 0 : i32
    return %c0_i32, %c0_i32_0, %c0_i32_1, %c0_i32_2 : i32, i32, i32, i32
  }
  func.func @transform_7(%arg0: i32, %arg1: i32) -> (i32, i32) {
    %c0_i32 = arith.constant 0 : i32
    %c0_i32_0 = arith.constant 0 : i32
    %c0_i32_1 = arith.constant 0 : i32
    return %c0_i32, %c0_i32_0 : i32, i32
  }
  func.func @transform_8(%arg0: i32, %arg1: i32) -> (i32, i32, i32, i32) {
    %c0_i32 = arith.constant 0 : i32
    %c0_i32_0 = arith.constant 0 : i32
    %c0_i32_1 = arith.constant 0 : i32
    return %arg0, %arg1, %c0_i32, %c0_i32_0 : i32, i32, i32, i32
  }
}

</mosaic_0001>

<bundles_post_ra>
// kernel: tile.8
= control target key start
LH: loop header
LB: loop body
LE: loop exit
PB: predicated region body
PF: predicated region fallthrough
CT: control target
= control target key end

     0   :  { %s22_s0 = inlined_call_operand.vmem [shape: f32[4], index: 0, kind: input, shape index: {}]   ;;  %s23_s1 = inlined_call_operand.vmem [shape: f32[4,4], index: 1, kind: output, shape index: {}]  }
   0x1   :  { %v4_v0 = vld [vmem:[%s22_s0] ss:$0 sm:$0xff] }
   0x2   :  { %5 = vst [vmem:[%s23_s1] sm:$0xf] %v4_v0 }

// kernel: tile.9
= control target key start
LH: loop header
LB: loop body
LE: loop exit
PB: predicated region body
PF: predicated region fallthrough
CT: control target
= control target key end

     0   :  { %s37_s8 = smov 4   ;;  %s38_s9 = smov 8   ;;  %vm7_vm0 = vcmask 31744   ;;  %vm13_vm1 = vcmask 130144   ;;  %vm19_vm2 = vcmask 97344   ;;  %vm25_vm3 = vcmask 64544   ;;  %s55_s0 = inlined_call_operand.vmem [shape: f32[4,4], index: 0, kind: input, shape index: {}]   ;;  %s56_s1 = inlined_call_operand.vmem [shape: f32[1,16], index: 1, kind: output, shape index: {}]  }
   0x1   :  { %v4_v0 = vld [vmem:[%s55_s0] sm:$0xf]  ;;  %s36_s0 = smov 12  }
   0x2   :  { %5 = vst [vmem:[#allocation1] sm:$0xf] %v4_v0 }
   0x9   :  { %v10_v1 = vld [vmem:[#allocation1 + $0x3] sm:$0x1]   ;;  %v22_v2 = vld [vmem:[#allocation1 + $0x1] sm:$0x1]   ;;  %v16_v3 = vld [vmem:[#allocation1 + $0x2] sm:$0x1]  }
   0xa   :  { %11 = vrot.lane.b32.xlu0 %v10_v1, %s36_s0  ;;  %23 = vrot.lane.b32.xlu1 %v22_v2, %s37_s8  ;;  %v6_v4 = vld [vmem:[#allocation1] sm:$0x1]  }
   0xb   :  { %8 = vst.msk [vmem:[#allocation0] sm:$0x1] %vm7_vm0, %v6_v4  }
  0x12   :  { %17 = vrot.lane.b32.xlu0 %v16_v3, %s38_s9 }
  0x7c   :  { %v12_v5 = vpop.permute.xlu0 %11   ;;  %v24_v6 = vpop.permute.xlu1 %23  }
  0x7d   :  { %14 = vst.msk [vmem:[#allocation0] sm:$0x1] %vm13_vm1, %v12_v5  }
  0x84   :  { %v18_v7 = vpop.permute.xlu0 %17  }
  0x85   :  { %20 = vst.msk [vmem:[#allocation0] sm:$0x1] %vm19_vm2, %v18_v7  }
  0x86   :  { %26 = vst.msk [vmem:[#allocation0] sm:$0x1] %vm25_vm3, %v24_v6  }
  0x8d   :  { %v29_v8 = vld [vmem:[#allocation0] sm:$0x1] }
  0x8e   :  { %32 = vst [vmem:[%s56_s1] sm:$0x1] %v29_v8 }

// kernel: resblock_pallas.2
= control target key start
LH: loop header
LB: loop body
LE: loop exit
PB: predicated region body
PF: predicated region fallthrough
CT: control target
= control target key end

     0   :  { %s1192_s15 = smov 0   ;;  %s1194_s16 = smov 0   ;;  %s1412_s0 = inlined_call_operand.vmem [shape: bf16[2,9,9,16], index: 0, kind: input, shape index: {}, may-alias: {0,1}]   ;;  %s1413_s1 = inlined_call_operand.vmem [shape: bf16[2,9,9,16], index: 1, kind: input, shape index: {}, may-alias: {0,1}]   ;;  %s1414_s2 = inlined_call_operand.vmem [shape: bf16[2,2,16,16], index: 2, kind: input, shape index: {}]   ;;  %s1415_s3 = inlined_call_operand.vmem [shape: f32[1,16], index: 3, kind: input, shape index: {}]   ;;  %s1416_s4 = inlined_call_operand.vmem [shape: bf16[2,8,10,16], index: 4, kind: output, shape index: {}]  }
   0x1   :  { %s1196_s17 = smov 0  }
   0x2 LB: > { %s26_s18 = sadd.s32 1, %s1161_s16  ;;  %p1063_p0 = scmp.ge.s32.totalorder %s1165_s17, 1  ;;  %s1165_s17 = sphi %s1196_s17, %s14_s17   ;;  %s1161_s16 = sphi %s1194_s16, %s1424_s16   ;;  %s1157_s15 = sphi %s1192_s15, %s1423_s15  }
   0x3   : > { %p28_p1 = scmp.ge.s32.totalorder %s26_s18, 2  ;;  %p218_p2 = scmp.lt.s32.totalorder %s1165_s17, 3 }
   0x5   : > { %s1426_s18 = smov (%p28_p1, %s26_s18), 0  ;;  %p219_p3 = pnand %p1063_p0, %p218_p2 }
   0x6   : > { %p276_p4 = scmp.lt.s32.totalorder (!%p219_p3), %s1157_s15, 1 }
   0x7   : > { %222 = sbr.rel (%p219_p3) target bundleno = 247 (0xf7), region = 36 }
   0xc   : > { %v1113_v0 = vld [vmem:[%s1414_s2 + $0x10] sm:$0xff]  ;;  %v1111_v1 = vld [vmem:[%s1414_s2] sm:$0xff]  ;;  %v1112_v2 = vld [vmem:[%s1414_s2 + $0x8] sm:$0xff]  ;;  %s1428_s15 = smov (!%p276_p4, %s1157_s15), 1  ;;  %vm472_vm0 = vcmask 130048   ;;  %vm846_vm4 = vcmask 1040384  }
   0xd   : > { %v1114_v3 = vld [vmem:[%s1414_s2 + $0x18] sm:$0xff]  ;;  %615 = vmatpush.bf16.msra.mxu2 %v1113_v0  ;;  %559 = vmatpush.bf16.msra.mxu1 %v1111_v1  ;;  %s1115_s27 = smul.u32 72, %s1428_s15  ;;  %vm336_vm1 = vsmask.f32 3328  ;;  %vm337_vm2 = vsmask.f32 7440 }
   0xe   : > { %492 = vmatpush.bf16.msra.mxu0 %v1112_v2  ;;  %692 = vmatpush.bf16.msra.mxu3 %v1114_v3  ;;  %vm1249_vm3 = vmor %vm336_vm1, %vm337_vm2  ;;  %vm847_vm5 = vsmask.f32 256  ;;  %vm857_vm6 = vcmask 1044480   ;;  %vm858_vm7 = vsmask.f32 4352  ;;  %s1110_s11 = sshll.u32 %s1428_s15, 6 }
   0xf   : > { %s1230_s30 = scalar_lea.vmem %s1412_s0, %s1115_s27  ;;  %s1109_s5 = sadd.s32 64, %s1115_s27  ;;  %vm1319_vm8 = vmand %vm846_vm4, %vm847_vm5  ;;  %vm924_vm10 = vcmask 125952   ;;  %vm926_vm11 = vcmask 122880  }
  0x10   : > { %v318_v4 = vld [vmem:[%s1230_s30 + $0x8] sm:$0xf]  ;;  %v1234_v5 = vld [vmem:[%s1230_s30 + $0x10] sm:$0xf]  ;;  %v316_v6 = vld [vmem:[%s1230_s30] sm:$0xf]  ;;  %s301_s8 = scalar_lea.vmem %s1413_s1, %s1109_s5  ;;  %s1336_s14 = scalar_lea.vmem %s1416_s4, %s1110_s11 }
  0x11   : > { %v354_v7 = vshrl.u32 %v318_v4, 16  ;;  %v357_v8 = vshll.u32 %v318_v4, 16  ;;  %v368_v9 = vshrl.u32 %v1234_v5, 16  ;;  %v371_v10 = vshll.u32 %v1234_v5, 16  ;;  %v317_v11 = vld [vmem:[%s1230_s30 + $0x4] sm:$0x1]  ;;  %vm1323_vm9 = vmand %vm857_vm6, %vm858_vm7 }
  0x12   : > { %v523_v12 = vunpack.c.l.b16 %v318_v4  ;;  %v524_v13 = vunpack.c.l.b16 %v1234_v5  ;;  %v340_v14 = vshrl.u32 %v316_v6, 16  ;;  %v343_v15 = vshll.u32 %v316_v6, 16  ;;  %v319_v16 = vld [vmem:[%s1230_s30 + $0xc] sm:$0x1]  ;;  %v321_v17 = vld [vmem:[%s1230_s30 + $0x14] sm:$0x1] }
  0x13   : > { %v356_v18 = vrot.slane %v354_v7, 4  ;;  %v359_v19 = vrot.slane %v357_v8, 5  ;;  %v370_v20 = vrot.slane %v368_v9, 4  ;;  %v373_v21 = vrot.slane %v371_v10, 5  ;;  %v322_v22 = vld [vmem:[%s1230_s30 + $0x18] sm:$0xf] }
  0x14   : > { %v586_v23 = vpack.c.b16 %v524_v13, %v523_v12  ;;  %v342_v24 = vrot.slane %v340_v14, 4  ;;  %v345_v25 = vrot.slane %v343_v15, 5  ;;  %v522_v26 = vunpack.c.l.b16 %v316_v6  ;;  %v1254_v35 = vld [vmem:[%s1230_s30 + $0x20] sm:$0xf]  ;;  %v323_v48 = vld [vmem:[%s1230_s30 + $0x1c] sm:$0x1] }
  0x15   : > { %v349_v27 = vshll.u32 %v317_v11, 16  ;;  %v360_v28 = vor.u32 %v359_v19, %v356_v18  ;;  %v363_v29 = vshll.u32 %v319_v16, 16  ;;  %v374_v30 = vor.u32 %v373_v21, %v370_v20  ;;  %v325_v53 = vld [vmem:[%s1230_s30 + $0x24] sm:$0x1]  ;;  %v326_v7 = vld [vmem:[%s1230_s30 + $0x28] sm:$0xf] }
  0x16   : > { %1092 = vmatmul.msk.bf16.vlgmr.msra.gmra.mxu2 %vm472_vm0, %v586_v23  ;;  %v530_v31 = vpack.c.b16 %v523_v12, %v522_v26  ;;  %v346_v33 = vor.u32 %v345_v25, %v342_v24  ;;  %v377_v34 = vshll.u32 %v321_v17, 16  ;;  %v382_v36 = vshrl.u32 %v322_v22, 16  ;;  %v1272_v8 = vld [vmem:[%s1230_s30 + $0x30] sm:$0xf]  ;;  %v329_v23 = vld [vmem:[%s1230_s30 + $0x34] sm:$0x1] }
  0x17   : > { %v351_v37 = vrot.slane %v349_v27, 5  ;;  %v361_v38 = vrot.slane %v360_v28, 4  ;;  %v365_v39 = vrot.slane %v363_v29, 5  ;;  %v375_v40 = vrot.slane %v374_v30, 4 }
  0x18   : > { %1082 = vmatmul.msk.bf16.vlgmr.msra.gmra.mxu1 %vm472_vm0, %v530_v31  ;;  %v347_v41 = vrot.slane %v346_v33, 4  ;;  %v379_v42 = vrot.slane %v377_v34, 5  ;;  %v384_v43 = vrot.slane %v382_v36, 4  ;;  %v385_v44 = vshll.u32 %v322_v22, 16 }
  0x19   : > { %v366_v45 = vsel %vm1249_vm3, %v361_v38, %v365_v39  ;;  %v396_v46 = vshrl.u32 %v1254_v35, 16  ;;  %v399_v47 = vshll.u32 %v1254_v35, 16  ;;  %v391_v59 = vshll.u32 %v323_v48, 16  ;;  %v332_v38 = vld [vmem:[%s301_s8] sm:$0xf] }
  0x1a   : > { %v352_v49 = vsel %vm1249_vm3, %v347_v41, %v351_v37  ;;  %v455_v50 = vunpack.c.l.b16 %v366_v45  ;;  %v380_v51 = vsel %vm1249_vm3, %v375_v40, %v379_v42  ;;  %v387_v52 = vrot.slane %v385_v44, 5  ;;  %v330_v37 = vld [vmem:[%s1230_s30 + $0x38] sm:$0xf] }
  0x1b   : > { %v454_v54 = vunpack.c.l.b16 %v352_v49  ;;  %v456_v55 = vunpack.c.l.b16 %v380_v51  ;;  %v398_v56 = vrot.slane %v396_v46, 4  ;;  %v401_v57 = vrot.slane %v399_v47, 5 }
  0x1c   : > { %v388_v58 = vor.u32 %v387_v52, %v384_v43  ;;  %v405_v63 = vshll.u32 %v325_v53, 16  ;;  %v525_v0 = vunpack.c.l.b16 %v322_v22  ;;  %v526_v1 = vunpack.c.l.b16 %v1254_v35  ;;  %v327_v22 = vld [vmem:[%s1230_s30 + $0x2c] sm:$0x1]  ;;  %v333_v53 = vld [vmem:[%s301_s8 + $0x4] sm:$0x1] }
  0x1d   : > { %v462_v60 = vpack.c.b16 %v455_v50, %v454_v54  ;;  %v663_v61 = vpack.c.b16 %v456_v55, %v455_v50  ;;  %v402_v62 = vor.u32 %v401_v57, %v398_v56  ;;  %v393_v3 = vrot.slane %v391_v59, 5  ;;  %v331_v54 = vld [vmem:[%s1230_s30 + $0x3c] sm:$0x1] }
  0x1e   : > { %v389_v2 = vrot.slane %v388_v58, 4  ;;  %v407_v6 = vrot.slane %v405_v63, 5  ;;  %v587_v9 = vpack.c.b16 %v526_v1, %v525_v0  ;;  %v531_v10 = vpack.c.b16 %v525_v0, %v524_v13 }
  0x1f   : > { %1074 = vmatmul.msk.bf16.vlgmr.msra.gmra.mxu0 %vm472_vm0, %v462_v60  ;;  %1102 = vmatmul.msk.bf16.vlgmr.msra.gmra.mxu3 %vm472_vm0, %v663_v61  ;;  %v403_v4 = vrot.slane %v402_v62, 4  ;;  %v410_v11 = vshrl.u32 %v326_v7, 16  ;;  %v413_v12 = vshll.u32 %v326_v7, 16  ;;  %v424_v16 = vshrl.u32 %v1272_v8, 16 }
  0x20   : > { %v394_v14 = vsel %vm1249_vm3, %v389_v2, %v393_v3  ;;  %v427_v17 = vshll.u32 %v1272_v8, 16  ;;  %v419_v27 = vshll.u32 %v327_v22, 16  ;;  %v433_v29 = vshll.u32 %v329_v23, 16 }
  0x21   : > { %v408_v15 = vsel %vm1249_vm3, %v403_v4, %v407_v6  ;;  %v457_v18 = vunpack.c.l.b16 %v394_v14  ;;  %v412_v13 = vrot.slane %v410_v11, 4  ;;  %v415_v19 = vrot.slane %v413_v12, 5 }
  0x22   : > { %v458_v5 = vunpack.c.l.b16 %v408_v15  ;;  %v426_v20 = vrot.slane %v424_v16, 4  ;;  %v429_v21 = vrot.slane %v427_v17, 5  ;;  %v527_v30 = vunpack.c.l.b16 %v326_v7 }
  0x23   : > { %v463_v24 = vpack.c.b16 %v457_v18, %v456_v55  ;;  %v416_v26 = vor.u32 %v415_v19, %v412_v13  ;;  %v528_v31 = vunpack.c.l.b16 %v1272_v8  ;;  %v421_v34 = vrot.slane %v419_v27, 5 }
  0x24   : > { %v664_v25 = vpack.c.b16 %v458_v5, %v457_v18  ;;  %v430_v28 = vor.u32 %v429_v21, %v426_v20  ;;  %v435_v36 = vrot.slane %v433_v29, 5  ;;  %v532_v40 = vpack.c.b16 %v527_v30, %v526_v1 }
  0x25   : > { %v417_v33 = vrot.slane %v416_v26, 4  ;;  %v588_v39 = vpack.c.b16 %v528_v31, %v527_v30  ;;  %v438_v41 = vshrl.u32 %v330_v37, 16  ;;  %v441_v42 = vshll.u32 %v330_v37, 16 }
  0x26   : > { %1093 = vmatmul.msk.bf16.gmra.mxu2 %vm472_vm0, %v587_v9  ;;  %v431_v35 = vrot.slane %v430_v28, 4  ;;  %v646_v45 = vshrl.u32 %v332_v38, 16  ;;  %v649_v46 = vshll.u32 %v332_v38, 16  ;;  %v655_v57 = vshll.u32 %v333_v53, 16 }
  0x27   : > { %v422_v43 = vsel %vm1249_vm3, %v417_v33, %v421_v34  ;;  %v440_v49 = vrot.slane %v438_v41, 4  ;;  %v443_v50 = vrot.slane %v441_v42, 5  ;;  %v447_v59 = vshll.u32 %v331_v54, 16 }
  0x28   : > { %1083 = vmatmul.msk.bf16.gmra.mxu1 %vm472_vm0, %v531_v10  ;;  %v436_v44 = vsel %vm1249_vm3, %v431_v35, %v435_v36  ;;  %v459_v47 = vunpack.c.l.b16 %v422_v43  ;;  %v648_v51 = vrot.slane %v646_v45, 4  ;;  %v651_v52 = vrot.slane %v649_v46, 5 }
  0x29   : > { %v460_v48 = vunpack.c.l.b16 %v436_v44  ;;  %v444_v58 = vor.u32 %v443_v50, %v440_v49  ;;  %v529_v61 = vunpack.c.l.b16 %v330_v37  ;;  %v585_v62 = vunpack.c.l.b16 %v332_v38 }
  0x2a   : > { %v464_v55 = vpack.c.b16 %v459_v47, %v458_v5  ;;  %v652_v60 = vor.u32 %v651_v52, %v648_v51  ;;  %v449_v0 = vrot.slane %v447_v59, 5  ;;  %v657_v2 = vrot.slane %v655_v57, 5  ;;  %v1315_v5 = vld [vmem:[%s1415_s3] ss:$0 sm:$0xff] }
  0x2b   : > { %v665_v56 = vpack.c.b16 %v460_v48, %v459_v47  ;;  %v445_v63 = vrot.slane %v444_v58, 4  ;;  %v589_v3 = vpack.c.b16 %v585_v62, %v529_v61  ;;  %v533_v4 = vpack.c.b16 %v529_v61, %v528_v31 }
  0x2c   : > { %v653_v1 = vrot.slane %v652_v60, 4 }
  0x2d   : > { %v450_v6 = vsel %vm1249_vm3, %v445_v63, %v449_v0 }
  0x2e   : > { %v658_v7 = vsel %vm1249_vm3, %v653_v1, %v657_v2  ;;  %v461_v8 = vunpack.c.l.b16 %v450_v6 }
  0x2f   : > { %1075 = vmatmul.msk.bf16.gmra.mxu0 %vm472_vm0, %v463_v24  ;;  %1103 = vmatmul.msk.bf16.gmra.mxu3 %vm472_vm0, %v664_v25  ;;  %v662_v9 = vunpack.c.l.b16 %v658_v7 }
  0x30   : > { %v465_v10 = vpack.c.b16 %v461_v8, %v460_v48 }
  0x31   : > { %v666_v11 = vpack.c.b16 %v662_v9, %v461_v8 }
  0x36   : > { %1094 = vmatmul.msk.bf16.gmra.mxu2 %vm472_vm0, %v588_v39 }
  0x38   : > { %1084 = vmatmul.msk.bf16.gmra.mxu1 %vm472_vm0, %v532_v40 }
  0x3f   : > { %1076 = vmatmul.msk.bf16.gmra.mxu0 %vm472_vm0, %v464_v55  ;;  %1104 = vmatmul.msk.bf16.gmra.mxu3 %vm472_vm0, %v665_v56 }
  0x46   : > { %1095 = vmatmul.msk.bf16.gmra.mxu2 %vm472_vm0, %v589_v3 }
  0x48   : > { %1085 = vmatmul.msk.bf16.gmra.mxu1 %vm472_vm0, %v533_v4 }
  0x4f   : > { %1077 = vmatmul.msk.bf16.gmra.mxu0 %vm472_vm0, %v465_v10  ;;  %1105 = vmatmul.msk.bf16.gmra.mxu3 %vm472_vm0, %v666_v11 }
  0x95   : > { %v561_v12 = vpop.f32.mrf.mxu1 }
  0x99   : > { %v617_v14 = vpop.f32.mrf.mxu2 }
  0x9c   : > { %v494_v15 = vpop.f32.mrf.mxu0 }
  0x9d   : > { %v562_v16 = vadd.f32 %v561_v12, %v494_v15  ;;  %v563_v17 = vpop.f32.mrf.mxu1 }
  0x9f   : > { %v637_v18 = vadd.f32 %v617_v14, %v562_v16 }
  0xa1   : > { %v619_v32 = vpop.f32.mrf.mxu2 }
  0xa2   : > { %v694_v13 = vpop.f32.mrf.mxu3 }
  0xa3   : > { %v714_v19 = vadd.f32 %v694_v13, %v637_v18 }
  0xa4   : > { %v496_v20 = vpop.f32.mrf.mxu0 }
  0xa5   : > { %v726_v21 = vadd.f32 %v1315_v5, %v714_v19  ;;  %v564_v22 = vadd.f32 %v563_v17, %v496_v20  ;;  %v566_v23 = vpop.f32.mrf.mxu1 }
  0xa7   : > { %v734_v24 = vmul.f32 0.2, %v726_v21  ;;  %v638_v27 = vadd.f32 %v619_v32, %v564_v22 }
  0xa9   : > { %v742_v25 = vmax.f32 %v726_v21, %v734_v24  ;;  %v622_v26 = vpop.f32.mrf.mxu2 }
  0xaa   : > { %v696_v28 = vpop.f32.mrf.mxu3 }
  0xab   : > { %v750_v29 = vpack.c.bf16 %v742_v25, %v742_v25  ;;  %v715_v30 = vadd.f32 %v696_v28, %v638_v27 }
  0xac   : > { %v499_v31 = vpop.f32.mrf.mxu0 }
  0xad   : > { %v766_v33 = vunpack.c.l.b16 %v750_v29  ;;  %v727_v34 = vadd.f32 %v1315_v5, %v715_v30  ;;  %v567_v35 = vadd.f32 %v566_v23, %v499_v31  ;;  %v568_v36 = vpop.f32.mrf.mxu1 }
  0xaf   : > { %v774_v37 = vpack.c.b16 %v766_v33, %v766_v33  ;;  %v735_v38 = vmul.f32 0.2, %v727_v34  ;;  %v639_v39 = vadd.f32 %v622_v26, %v567_v35 }
  0xb1   : > { %v783_v40 = vshrl.u32 %v774_v37, 16  ;;  %v743_v41 = vmax.f32 %v727_v34, %v735_v38  ;;  %v624_v42 = vpop.f32.mrf.mxu2  ;;  %v786_v45 = vshll.u32 %v774_v37, 16 }
  0xb2   : > { %v699_v43 = vpop.f32.mrf.mxu3 }
  0xb3   : > { %v785_v44 = vrot.slane %v783_v40, 7  ;;  %v751_v46 = vpack.c.bf16 %v743_v41, %v743_v41  ;;  %v716_v47 = vadd.f32 %v699_v43, %v639_v39 }
  0xb4   : > { %v501_v49 = vpop.f32.mrf.mxu0 }
  0xb5   : > { %v788_v50 = vor.u32 %v786_v45, %v785_v44  ;;  %v767_v52 = vunpack.c.l.b16 %v751_v46  ;;  %v728_v53 = vadd.f32 %v1315_v5, %v716_v47  ;;  %v569_v54 = vadd.f32 %v568_v36, %v501_v49  ;;  %v571_v55 = vpop.f32.mrf.mxu1 }
  0xb7   : > { %v849_v56 = vsel %vm1319_vm8, 0, %v788_v50  ;;  %v775_v57 = vpack.c.b16 %v767_v52, %v767_v52  ;;  %v736_v58 = vmul.f32 0.2, %v728_v53  ;;  %v640_v63 = vadd.f32 %v624_v42, %v569_v54 }
  0xb8   : > { %v860_v59 = vsel %vm1323_vm9, %v849_v56, 0 }
  0xb9   : > { %v876_v60 = vunpack.c.l.b16 %v860_v59  ;;  %v877_v61 = vunpack.c.h.b16 %v860_v59  ;;  %v790_v62 = vshrl.u32 %v775_v57, 16  ;;  %v793_v0 = vshll.u32 %v775_v57, 16  ;;  %v627_v2 = vpop.f32.mrf.mxu2 }
  0xba   : > { %v744_v1 = vmax.f32 %v728_v53, %v736_v58  ;;  %v701_v3 = vpop.f32.mrf.mxu3 }
  0xbb   : > { %v892_v4 = vpack.c.b16 %v876_v60, %v876_v60  ;;  %v893_v6 = vpack.c.b16 %v877_v61, %v877_v61  ;;  %v792_v7 = vrot.slane %v790_v62, 7  ;;  %v717_v8 = vadd.f32 %v701_v3, %v640_v63 }
  0xbc   : > { %v752_v9 = vpack.c.bf16 %v744_v1, %v744_v1  ;;  %v504_v10 = vpop.f32.mrf.mxu0 }
  0xbd   : > { %925 = vst.msk [vmem:[%s1336_s14] sm:$0xf] %vm924_vm10, %v892_v4  ;;  %v795_v11 = vor.u32 %v793_v0, %v792_v7  ;;  %v729_v12 = vadd.f32 %v1315_v5, %v717_v8  ;;  %v572_v14 = vadd.f32 %v571_v55, %v504_v10  ;;  %v573_v19 = vpop.f32.mrf.mxu1 }
  0xbe   : > { %927 = vst.msk [vmem:[%s1336_s14 + $0x4] sm:$0x1] %vm926_vm11, %v893_v6  ;;  %v768_v15 = vunpack.c.l.b16 %v752_v9 }
  0xbf   : > { %v850_v16 = vsel %vm1319_vm8, 0, %v795_v11  ;;  %v737_v17 = vmul.f32 0.2, %v729_v12  ;;  %v641_v18 = vadd.f32 %v627_v2, %v572_v14 }
  0xc0   : > { %v861_v32 = vsel %vm1323_vm9, %v850_v16, 0  ;;  %v776_v13 = vpack.c.b16 %v768_v15, %v768_v15 }
  0xc1   : > { %v878_v20 = vunpack.c.l.b16 %v861_v32  ;;  %v879_v21 = vunpack.c.h.b16 %v861_v32  ;;  %v745_v22 = vmax.f32 %v729_v12, %v737_v17  ;;  %v629_v31 = vpop.f32.mrf.mxu2 }
  0xc2   : > { %v797_v23 = vshrl.u32 %v776_v13, 16  ;;  %v704_v24 = vpop.f32.mrf.mxu3  ;;  %v800_v30 = vshll.u32 %v776_v13, 16 }
  0xc3   : > { %v894_v25 = vpack.c.b16 %v878_v20, %v878_v20  ;;  %v895_v26 = vpack.c.b16 %v879_v21, %v879_v21  ;;  %v753_v27 = vpack.c.bf16 %v745_v22, %v745_v22  ;;  %v718_v28 = vadd.f32 %v704_v24, %v641_v18 }
  0xc4   : > { %v799_v29 = vrot.slane %v797_v23, 7  ;;  %v506_v33 = vpop.f32.mrf.mxu0 }
  0xc5   : > { %928 = vst.msk [vmem:[%s1336_s14 + $0x8] sm:$0xf] %vm924_vm10, %v894_v25  ;;  %v769_v34 = vunpack.c.l.b16 %v753_v27  ;;  %v730_v35 = vadd.f32 %v1315_v5, %v718_v28  ;;  %v574_v36 = vadd.f32 %v573_v19, %v506_v33  ;;  %v576_v47 = vpop.f32.mrf.mxu1 }
  0xc6   : > { %929 = vst.msk [vmem:[%s1336_s14 + $0xc] sm:$0x1] %vm926_vm11, %v895_v26  ;;  %v802_v37 = vor.u32 %v800_v30, %v799_v29 }
  0xc7   : > { %v777_v38 = vpack.c.b16 %v769_v34, %v769_v34  ;;  %v738_v39 = vmul.f32 0.2, %v730_v35  ;;  %v642_v44 = vadd.f32 %v629_v31, %v574_v36 }
  0xc8   : > { %v851_v40 = vsel %vm1319_vm8, 0, %v802_v37 }
  0xc9   : > { %v862_v41 = vsel %vm1323_vm9, %v851_v40, 0  ;;  %v804_v42 = vshrl.u32 %v777_v38, 16  ;;  %v746_v43 = vmax.f32 %v730_v35, %v738_v39  ;;  %v807_v52 = vshll.u32 %v777_v38, 16  ;;  %v632_v62 = vpop.f32.mrf.mxu2 }
  0xca   : > { %v880_v45 = vunpack.c.l.b16 %v862_v41  ;;  %v881_v46 = vunpack.c.h.b16 %v862_v41  ;;  %v706_v49 = vpop.f32.mrf.mxu3 }
  0xcb   : > { %v806_v50 = vrot.slane %v804_v42, 7  ;;  %v754_v53 = vpack.c.bf16 %v746_v43, %v746_v43  ;;  %v719_v54 = vadd.f32 %v706_v49, %v642_v44 }
  0xcc   : > { %v896_v55 = vpack.c.b16 %v880_v45, %v880_v45  ;;  %v897_v56 = vpack.c.b16 %v881_v46, %v881_v46  ;;  %v509_v57 = vpop.f32.mrf.mxu0 }
  0xcd   : > { %v809_v58 = vor.u32 %v807_v52, %v806_v50  ;;  %v770_v59 = vunpack.c.l.b16 %v754_v53  ;;  %v731_v60 = vadd.f32 %v1315_v5, %v719_v54  ;;  %v577_v61 = vadd.f32 %v576_v47, %v509_v57  ;;  %v578_v17 = vpop.f32.mrf.mxu1 }
  0xce   : > { %930 = vst.msk [vmem:[%s1336_s14 + $0x10] sm:$0xf] %vm924_vm10, %v896_v55 }
  0xcf   : > { %931 = vst.msk [vmem:[%s1336_s14 + $0x14] sm:$0x1] %vm926_vm11, %v897_v56  ;;  %v852_v63 = vsel %vm1319_vm8, 0, %v809_v58  ;;  %v778_v0 = vpack.c.b16 %v770_v59, %v770_v59  ;;  %v739_v1 = vmul.f32 0.2, %v731_v60  ;;  %v643_v2 = vadd.f32 %v632_v62, %v577_v61 }
  0xd0   : > { %v863_v3 = vsel %vm1323_vm9, %v852_v63, 0 }
  0xd1   : > { %v882_v4 = vunpack.c.l.b16 %v863_v3  ;;  %v883_v6 = vunpack.c.h.b16 %v863_v3  ;;  %v811_v7 = vshrl.u32 %v778_v0, 16  ;;  %v814_v8 = vshll.u32 %v778_v0, 16  ;;  %v634_v25 = vpop.f32.mrf.mxu2 }
  0xd2   : > { %v747_v9 = vmax.f32 %v731_v60, %v739_v1  ;;  %v709_v10 = vpop.f32.mrf.mxu3 }
  0xd3   : > { %v898_v11 = vpack.c.b16 %v882_v4, %v882_v4  ;;  %v899_v12 = vpack.c.b16 %v883_v6, %v883_v6  ;;  %v813_v14 = vrot.slane %v811_v7, 7  ;;  %v720_v15 = vadd.f32 %v709_v10, %v643_v2 }
  0xd4   : > { %v755_v16 = vpack.c.bf16 %v747_v9, %v747_v9  ;;  %v511_v18 = vpop.f32.mrf.mxu0 }
  0xd5   : > { %932 = vst.msk [vmem:[%s1336_s14 + $0x18] sm:$0xf] %vm924_vm10, %v898_v11  ;;  %v816_v32 = vor.u32 %v814_v8, %v813_v14  ;;  %v732_v13 = vadd.f32 %v1315_v5, %v720_v15  ;;  %v579_v19 = vadd.f32 %v578_v17, %v511_v18 }
  0xd6   : > { %933 = vst.msk [vmem:[%s1336_s14 + $0x1c] sm:$0x1] %vm926_vm11, %v899_v12  ;;  %v771_v20 = vunpack.c.l.b16 %v755_v16 }
  0xd7   : > { %v853_v21 = vsel %vm1319_vm8, 0, %v816_v32  ;;  %v740_v22 = vmul.f32 0.2, %v732_v13  ;;  %v644_v29 = vadd.f32 %v634_v25, %v579_v19 }
  0xd8   : > { %v864_v23 = vsel %vm1323_vm9, %v853_v21, 0  ;;  %v779_v24 = vpack.c.b16 %v771_v20, %v771_v20 }
  0xd9   : > { %v884_v26 = vunpack.c.l.b16 %v864_v23  ;;  %v885_v27 = vunpack.c.h.b16 %v864_v23  ;;  %v748_v28 = vmax.f32 %v732_v13, %v740_v22 }
  0xda   : > { %v818_v30 = vshrl.u32 %v779_v24, 16  ;;  %v711_v31 = vpop.f32.mrf.mxu3  ;;  %v821_v38 = vshll.u32 %v779_v24, 16 }
  0xdb   : > { %v900_v33 = vpack.c.b16 %v884_v26, %v884_v26  ;;  %v901_v34 = vpack.c.b16 %v885_v27, %v885_v27  ;;  %v756_v35 = vpack.c.bf16 %v748_v28, %v748_v28  ;;  %v721_v36 = vadd.f32 %v711_v31, %v644_v29 }
  0xdc   : > { %v820_v37 = vrot.slane %v818_v30, 7 }
  0xdd   : > { %934 = vst.msk [vmem:[%s1336_s14 + $0x20] sm:$0xf] %vm924_vm10, %v900_v33  ;;  %v772_v39 = vunpack.c.l.b16 %v756_v35  ;;  %v733_v40 = vadd.f32 %v1315_v5, %v721_v36 }
  0xde   : > { %935 = vst.msk [vmem:[%s1336_s14 + $0x24] sm:$0x1] %vm926_vm11, %v901_v34  ;;  %v823_v41 = vor.u32 %v821_v38, %v820_v37 }
  0xdf   : > { %v780_v42 = vpack.c.b16 %v772_v39, %v772_v39  ;;  %v741_v43 = vmul.f32 0.2, %v733_v40 }
  0xe0   : > { %v854_v44 = vsel %vm1319_vm8, 0, %v823_v41 }
  0xe1   : > { %v865_v45 = vsel %vm1323_vm9, %v854_v44, 0  ;;  %v825_v46 = vshrl.u32 %v780_v42, 16  ;;  %v749_v47 = vmax.f32 %v733_v40, %v741_v43  ;;  %v828_v53 = vshll.u32 %v780_v42, 16 }
  0xe2   : > { %v886_v49 = vunpack.c.l.b16 %v865_v45  ;;  %v887_v50 = vunpack.c.h.b16 %v865_v45 }
  0xe3   : > { %v827_v52 = vrot.slane %v825_v46, 7  ;;  %v757_v5 = vpack.c.bf16 %v749_v47, %v749_v47 }
  0xe4   : > { %v902_v54 = vpack.c.b16 %v886_v49, %v886_v49  ;;  %v903_v55 = vpack.c.b16 %v887_v50, %v887_v50 }
  0xe5   : > { %v830_v56 = vor.u32 %v828_v53, %v827_v52  ;;  %v773_v57 = vunpack.c.l.b16 %v757_v5 }
  0xe6   : > { %936 = vst.msk [vmem:[%s1336_s14 + $0x28] sm:$0xf] %vm924_vm10, %v902_v54 }
  0xe7   : > { %937 = vst.msk [vmem:[%s1336_s14 + $0x2c] sm:$0x1] %vm926_vm11, %v903_v55  ;;  %v855_v58 = vsel %vm1319_vm8, 0, %v830_v56  ;;  %v781_v59 = vpack.c.b16 %v773_v57, %v773_v57 }
  0xe8   : > { %v866_v60 = vsel %vm1323_vm9, %v855_v58, 0 }
  0xe9   : > { %v888_v61 = vunpack.c.l.b16 %v866_v60  ;;  %v889_v62 = vunpack.c.h.b16 %v866_v60  ;;  %v832_v63 = vshrl.u32 %v781_v59, 16  ;;  %v835_v3 = vshll.u32 %v781_v59, 16 }
  0xeb   : > { %v904_v0 = vpack.c.b16 %v888_v61, %v888_v61  ;;  %v905_v1 = vpack.c.b16 %v889_v62, %v889_v62  ;;  %v834_v2 = vrot.slane %v832_v63, 7 }
  0xed   : > { %938 = vst.msk [vmem:[%s1336_s14 + $0x30] sm:$0xf] %vm924_vm10, %v904_v0  ;;  %v837_v4 = vor.u32 %v835_v3, %v834_v2 }
  0xee   : > { %939 = vst.msk [vmem:[%s1336_s14 + $0x34] sm:$0x1] %vm926_vm11, %v905_v1 }
  0xef   : > { %v856_v6 = vsel %vm1319_vm8, 0, %v837_v4 }
  0xf0   : > { %v867_v7 = vsel %vm1323_vm9, %v856_v6, 0 }
  0xf1   : > { %v890_v8 = vunpack.c.l.b16 %v867_v7  ;;  %v891_v9 = vunpack.c.h.b16 %v867_v7 }
  0xf3   : > { %v906_v10 = vpack.c.b16 %v890_v8, %v890_v8  ;;  %v907_v11 = vpack.c.b16 %v891_v9, %v891_v9 }
  0xf5   : > { %940 = vst.msk [vmem:[%s1336_s14 + $0x38] sm:$0xf] %vm924_vm10, %v906_v10 }
  0xf6   : > { %941 = vst.msk [vmem:[%s1336_s14 + $0x3c] sm:$0x1] %vm926_vm11, %v907_v11 }
  0xf7 PF: > { %s14_s17 = sadd.s32 1, %s1165_s17   ;;  %s1423_s15 = smov %s1161_s16 }
  0xf8   : > { %p11_p5 = scmp.ge.s32.totalorder %s14_s17, 4   ;;  %s1424_s16 = smov %s1426_s18 }
  0xfa   :  { %13 = sbr.rel (!%p11_p5) target bundleno = 2 (0x2), region = 72 }

// kernel: resblock_pallas.3
= control target key start
LH: loop header
LB: loop body
LE: loop exit
PB: predicated region body
PF: predicated region fallthrough
CT: control target
= control target key end

     0   :  { %s2271_s26 = smov 0   ;;  %s2273_s2 = smov 0   ;;  %s2832_s0 = inlined_call_operand.vmem [shape: bf16[2,8,10,16], index: 0, kind: input, shape index: {}, may-alias: {0,1,2}]   ;;  %s2833_s1 = inlined_call_operand.vmem [shape: bf16[2,8,10,16], index: 1, kind: input, shape index: {}, may-alias: {0,1,2}]   ;;  %s2834_s2 = inlined_call_operand.vmem [shape: bf16[2,8,10,16], index: 2, kind: input, shape index: {}, may-alias: {0,1,2}]   ;;  %s2835_s3 = inlined_call_operand.vmem [shape: bf16[2,9,9,16], index: 3, kind: input, shape index: {}, may-alias: {3,4}]   ;;  %s2836_s4 = inlined_call_operand.vmem [shape: bf16[2,9,9,16], index: 4, kind: input, shape index: {}, may-alias: {3,4}]   ;;  %s2837_s5 = inlined_call_operand.vmem [shape: bf16[3,3,16,8], index: 5, kind: input, shape index: {}]   ;;  %s2838_s6 = inlined_call_operand.vmem [shape: bf16[2,2,16,8], index: 6, kind: input, shape index: {}]   ;;  %s2839_s7 = inlined_call_operand.vmem [shape: f32[1,8], index: 7, kind: input, shape index: {}]   ;;  %s2840_s8 = inlined_call_operand.vmem [shape: bf16[2,8,8,8], index: 8, kind: output, shape index: {}]  }
   0x1   :  { %s2275_s27 = smov 0  }
   0x2 LB: > { %s30_s28 = sadd.s32 1, %s2219_s2  ;;  %p2000_p0 = scmp.ge.s32.totalorder %s2223_s27, 1  ;;  %s2223_s27 = sphi %s2275_s27, %s18_s27   ;;  %s2219_s2 = sphi %s2273_s2, %s2846_s2   ;;  %s2215_s26 = sphi %s2271_s26, %s2845_s26  }
   0x3   : > { %p32_p1 = scmp.ge.s32.totalorder %s30_s28, 2  ;;  %p400_p2 = scmp.lt.s32.totalorder %s2223_s27, 3 }
   0x5   : > { %s2848_s28 = smov (%p32_p1, %s30_s28), 0  ;;  %p401_p3 = pnand %p2000_p0, %p400_p2 }
   0x6   : > { %p496_p4 = scmp.lt.s32.totalorder (!%p401_p3), %s2215_s26, 1 }
   0x7   : > { %404 = sbr.rel (%p401_p3) target bundleno = 379 (0x17b), region = 52 }
   0xc   : > { %v2157_v0 = vld [vmem:[%s2837_s5 + $0x8] sm:$0xff]  ;;  %v2158_v1 = vld [vmem:[%s2837_s5 + $0x10] sm:$0xff]  ;;  %s2850_s26 = smov (!%p496_p4, %s2215_s26), 1  ;;  %v2159_v2 = vld [vmem:[%s2837_s5 + $0x18] sm:$0xff]  ;;  %v2225_v5 = vmov 0   ;;  %vm755_vm2 = vcmask 130048  }
   0xd   : > { %2169 = vmatpush.bf16.msra.mxu1 %v2157_v0  ;;  %2170 = vmatpush.bf16.msra.mxu2 %v2157_v0  ;;  %v2156_v3 = vld [vmem:[%s2837_s5] sm:$0xff]  ;;  %s2149_s17 = sshll.u32 %s2850_s26, 6  ;;  %v2308_v6 = vrot.slane %v2225_v5, 4  ;;  %v2311_v7 = vrot.slane %v2225_v5, 5  ;;  %vm619_vm0 = vsmask.f32 3328 }
   0xe   : > { %v2160_v4 = vld [vmem:[%s2837_s5 + $0x20] sm:$0xff]  ;;  %2171 = vmatpush.bf16.msra.mxu3 %v2157_v0  ;;  %775 = vmatpush.bf16.msra.mxu0 %v2157_v0  ;;  %s2316_s20 = scalar_lea.vmem %s2832_s0, %s2149_s17  ;;  %vm620_vm1 = vsmask.f32 7440  ;;  %vm872_vm4 = vcmask 1042432   ;;  %vm873_vm5 = vcmask 1046532   ;;  %s2172_s17 = smul.u32 72, %s2850_s26 }
   0xf   : > { %v2319_v8 = vld [vmem:[%s2316_s20 + $0x8] sm:$0xf]  ;;  %v2322_v9 = vld [vmem:[%s2316_s20 + $0xc] sm:$0x1]  ;;  %v2325_v10 = vld [vmem:[%s2316_s20 + $0x10] sm:$0xf]  ;;  %v629_v20 = vor.u32 %v2311_v7, %v2308_v6 }
  0x10   : > { %v2328_v11 = vld [vmem:[%s2316_s20 + $0x14] sm:$0x1]  ;;  %v651_v12 = vshrl.u32 %v2319_v8, 16  ;;  %v654_v13 = vshll.u32 %v2319_v8, 16  ;;  %v660_v14 = vshll.u32 %v2322_v9, 16  ;;  %v665_v15 = vshrl.u32 %v2325_v10, 16  ;;  %vm2360_vm3 = vmor %vm619_vm0, %vm620_vm1 }
  0x11   : > { %947 = vmatpush.bf16.msrb.mxu2 %v2158_v1  ;;  %842 = vmatpush.bf16.msrb.mxu1 %v2156_v3  ;;  %v668_v16 = vshll.u32 %v2325_v10, 16  ;;  %v674_v17 = vshll.u32 %v2328_v11, 16  ;;  %v2337_v18 = vld [vmem:[%s2316_s20 + $0x18] sm:$0xf]  ;;  %v2340_v19 = vld [vmem:[%s2316_s20 + $0x1c] sm:$0x1]  ;;  %vm2430_vm6 = vmor %vm872_vm4, %vm873_vm5 }
  0x12   : > { %1011 = vmatpush.bf16.msrb.mxu3 %v2159_v2  ;;  %1088 = vmatpush.bf16.msrb.mxu0 %v2160_v4  ;;  %v653_v21 = vrot.slane %v651_v12, 4  ;;  %v656_v22 = vrot.slane %v654_v13, 5  ;;  %v662_v23 = vrot.slane %v660_v14, 5  ;;  %v667_v24 = vrot.slane %v665_v15, 4  ;;  %v2345_v25 = vld [vmem:[%s2316_s20 + $0x20] sm:$0xf] }
  0x13   : > { %v670_v26 = vrot.slane %v668_v16, 5  ;;  %v676_v27 = vrot.slane %v674_v17, 5  ;;  %v2348_v28 = vld [vmem:[%s2316_s20 + $0x24] sm:$0x1]  ;;  %v679_v29 = vshrl.u32 %v2337_v18, 16  ;;  %v682_v30 = vshll.u32 %v2337_v18, 16 }
  0x14   : > { %v657_v31 = vor.u32 %v656_v22, %v653_v21  ;;  %v688_v32 = vshll.u32 %v2340_v19, 16  ;;  %v693_v33 = vshrl.u32 %v2345_v25, 16  ;;  %v696_v34 = vshll.u32 %v2345_v25, 16  ;;  %v2356_v35 = vld [vmem:[%s2316_s20 + $0x28] sm:$0xf]  ;;  %s2154_s21 = sadd.s32 64, %s2172_s17 }
  0x15   : > { %v671_v37 = vor.u32 %v670_v26, %v667_v24  ;;  %v681_v38 = vrot.slane %v679_v29, 4  ;;  %v684_v39 = vrot.slane %v682_v30, 5  ;;  %v702_v40 = vshll.u32 %v2348_v28, 16  ;;  %v2366_v41 = vld [vmem:[%s2316_s20 + $0x2c] sm:$0x1]  ;;  %v2162_v29 = vld [vmem:[%s2837_s5 + $0x30] sm:$0xff]  ;;  %s2703_s24 = scalar_lea.vmem %s2836_s4, %s2154_s21 }
  0x16   : > { %v658_v42 = vrot.slane %v657_v31, 4  ;;  %v690_v43 = vrot.slane %v688_v32, 5  ;;  %v695_v44 = vrot.slane %v693_v33, 4  ;;  %v698_v45 = vrot.slane %v696_v34, 5  ;;  %v2372_v52 = vld [vmem:[%s2316_s20 + $0x30] sm:$0xf] }
  0x17   : > { %v672_v46 = vrot.slane %v671_v37, 4  ;;  %v685_v47 = vor.u32 %v684_v39, %v681_v38  ;;  %v704_v48 = vrot.slane %v702_v40, 5  ;;  %v707_v49 = vshrl.u32 %v2356_v35, 16  ;;  %v2375_v53 = vld [vmem:[%s2316_s20 + $0x34] sm:$0x1]  ;;  %v2161_v6 = vld [vmem:[%s2837_s5 + $0x28] sm:$0xff] }
  0x18   : > { %v663_v50 = vsel %vm2360_vm3, %v658_v42, %v662_v23  ;;  %v699_v51 = vor.u32 %v698_v45, %v695_v44  ;;  %v710_v54 = vshll.u32 %v2356_v35, 16  ;;  %v716_v55 = vshll.u32 %v2366_v41, 16  ;;  %v2391_v4 = vld [vmem:[%s2316_s20] sm:$0xf]  ;;  %v602_v16 = vld [vmem:[%s2316_s20 + $0x4] sm:$0x1] }
  0x19   : > { %v677_v56 = vsel %vm2360_vm3, %v672_v46, %v676_v27  ;;  %v2381_v57 = vunpack.c.l.b16 %v663_v50  ;;  %v686_v58 = vrot.slane %v685_v47, 4  ;;  %v709_v59 = vrot.slane %v707_v49, 4  ;;  %s2155_s29 = sshll.u32 %s2850_s26, 5 }
  0x1a   : > { %v2383_v60 = vunpack.c.l.b16 %v677_v56  ;;  %v700_v61 = vrot.slane %v699_v51, 4  ;;  %v712_v62 = vrot.slane %v710_v54, 5  ;;  %v718_v63 = vrot.slane %v716_v55, 5  ;;  %v2163_v56 = vld [vmem:[%s2837_s5 + $0x38] sm:$0xff]  ;;  %s2784_s10 = scalar_lea.vmem %s2840_s8, %s2155_s29 }
  0x1b   : > { %v691_v0 = vsel %vm2360_vm3, %v686_v58, %v690_v43  ;;  %v721_v1 = vshrl.u32 %v2372_v52, 16  ;;  %v724_v2 = vshll.u32 %v2372_v52, 16  ;;  %v730_v3 = vshll.u32 %v2375_v53, 16 }
  0x1c   : > { %v2398_v12 = vpack.c.b16 %v2383_v60, %v2381_v57  ;;  %v705_v13 = vsel %vm2360_vm3, %v700_v61, %v704_v48  ;;  %v2402_v14 = vunpack.c.l.b16 %v691_v0  ;;  %v713_v15 = vor.u32 %v712_v62, %v709_v59 }
  0x1d   : > { %v2405_v17 = vunpack.c.l.b16 %v705_v13  ;;  %v723_v21 = vrot.slane %v721_v1, 4  ;;  %v726_v22 = vrot.slane %v724_v2, 5  ;;  %v630_v24 = vrot.slane %v629_v20, 4 }
  0x1e   : > { %2018 = vmatmul.msk.bf16.vlgmr.msra.gmra.mxu1 %vm755_vm2, %v2398_v12  ;;  %v714_v23 = vrot.slane %v713_v15, 4  ;;  %v637_v26 = vshrl.u32 %v2391_v4, 16  ;;  %v640_v27 = vshll.u32 %v2391_v4, 16  ;;  %v732_v32 = vrot.slane %v730_v3, 5 }
  0x1f   : > { %v2416_v30 = vpack.c.b16 %v2405_v17, %v2402_v14  ;;  %v727_v31 = vor.u32 %v726_v22, %v723_v21  ;;  %v646_v33 = vshll.u32 %v602_v16, 16  ;;  %1156 = vmatpush.bf16.msra.mxu1 %v2161_v6  ;;  %v635_v39 = vsel %vm2360_vm3, %v630_v24, %v2311_v7 }
  0x20   : > { %v719_v34 = vsel %vm2360_vm3, %v714_v23, %v718_v63  ;;  %v639_v20 = vrot.slane %v637_v26, 4  ;;  %v642_v37 = vrot.slane %v640_v27, 5  ;;  %v881_v40 = vrot.slane %v602_v16, 5  ;;  %v2505_v27 = vld [vmem:[%s2316_s20 + $0x38] sm:$0xf] }
  0x21   : > { %2019 = vmatmul.msk.bf16.vlgmr.msra.gmra.mxu2 %vm755_vm2, %v2416_v30  ;;  %v728_v38 = vrot.slane %v727_v31, 4  ;;  %v2029_v42 = vrot.slane %v2225_v5, 9  ;;  %v2426_v43 = vunpack.c.l.b16 %v719_v34  ;;  %v648_v45 = vrot.slane %v646_v33, 5  ;;  %v2517_v34 = vld [vmem:[%s2316_s20 + $0x3c] sm:$0x1]  ;;  %s2597_s20 = scalar_lea.vmem %s2835_s3, %s2172_s17 }
  0x22   : > { %v643_v44 = vor.u32 %v642_v37, %v639_v20  ;;  %v2030_v47 = vrot.slane %v2391_v4, 9  ;;  %1208 = vmatpush.bf16.msra.mxu2 %v2162_v29  ;;  %v2439_v51 = vunpack.c.l.b16 %v635_v39  ;;  %v2442_v54 = vunpack.c.l.b16 %v2225_v5 }
  0x23   : > { %v733_v48 = vsel %vm2360_vm3, %v728_v38, %v732_v32  ;;  %v878_v55 = vsel %vm2430_vm6, %v2029_v42, %v2311_v7  ;;  %v806_v61 = vunpack.c.l.b16 %v2391_v4  ;;  %v2164_v7 = vld [vmem:[%s2837_s5 + $0x40] sm:$0xff]  ;;  %v807_v4 = vunpack.c.l.b16 %v2319_v8 }
  0x24   : > { %v2437_v49 = vunpack.c.l.b16 %v733_v48  ;;  %v644_v50 = vrot.slane %v643_v44, 4  ;;  %v2459_v5 = vsel %vm2430_vm6, %v2030_v47, %v881_v40  ;;  %v2467_v0 = vunpack.c.l.b16 %v878_v55 }
  0x25   : > { %v911_v1 = vunpack.c.l.b16 %v2459_v5  ;;  %v813_v2 = vpack.c.b16 %v806_v61, %v2442_v54  ;;  %v2031_v6 = vrot.slane %v2319_v8, 9  ;;  %v885_v13 = vrot.slane %v2322_v9, 5 }
  0x26   : > { %v2452_v58 = vpack.c.b16 %v2437_v49, %v2426_v43  ;;  %v649_v59 = vsel %vm2360_vm3, %v644_v50, %v648_v45  ;;  %v2032_v15 = vrot.slane %v2325_v10, 9  ;;  %v889_v16 = vrot.slane %v2328_v11, 5 }
  0x27   : > { %v738_v62 = vunpack.c.l.b16 %v649_v59  ;;  %v918_v3 = vpack.c.b16 %v911_v1, %v2467_v0  ;;  %v982_v21 = vpack.c.b16 %v807_v4, %v806_v61  ;;  %v808_v22 = vunpack.c.l.b16 %v2325_v10 }
  0x28   : > { %2020 = vmatmul.msk.bf16.vlgmr.msra.gmra.mxu3 %vm755_vm2, %v2452_v58  ;;  %v2485_v23 = vsel %vm2430_vm6, %v2031_v6, %v885_v13  ;;  %v2489_v24 = vsel %vm2430_vm6, %v2032_v15, %v889_v16  ;;  %v1045_v29 = vshll.u32 %v2505_v27, 16  ;;  %v809_v31 = vunpack.c.l.b16 %v2337_v18 }
  0x29   : > { %v745_v63 = vpack.c.b16 %v738_v62, %v2439_v51  ;;  %1273 = vmatpush.bf16.msra.mxu3 %v2163_v56  ;;  %v1059_v8 = vpack.c.b16 %v2381_v57, %v738_v62  ;;  %v912_v9 = vunpack.c.l.b16 %v2485_v23  ;;  %v913_v11 = vunpack.c.l.b16 %v2489_v24  ;;  %v2602_v23 = vld [vmem:[%s2597_s20 + $0x8] sm:$0xf] }
  0x2a   : > { %v2495_v26 = vpack.c.b16 %v808_v22, %v807_v4  ;;  %v1042_v57 = vshrl.u32 %v2505_v27, 16  ;;  %v2033_v32 = vrot.slane %v2337_v18, 9  ;;  %v893_v33 = vrot.slane %v2340_v19, 5 }
  0x2b   : > { %2017 = vmatmul.msk.bf16.vlgmr.msra.gmra.mxu0 %vm755_vm2, %v745_v63  ;;  %v2502_v10 = vpack.c.b16 %v913_v11, %v912_v9  ;;  %v2034_v37 = vrot.slane %v2345_v25, 9  ;;  %v897_v38 = vrot.slane %v2348_v28, 5  ;;  %v1047_v39 = vrot.slane %v1045_v29, 5 }
  0x2c   : > { %1329 = vmatpush.bf16.msra.mxu0 %v2164_v7  ;;  %v1044_v20 = vrot.slane %v1042_v57, 4  ;;  %v1051_v40 = vshll.u32 %v2517_v34, 16  ;;  %v983_v42 = vpack.c.b16 %v809_v31, %v808_v22  ;;  %v810_v47 = vunpack.c.l.b16 %v2345_v25 }
  0x2d   : > { %v894_v18 = vsel %vm2430_vm6, %v2033_v32, %v893_v33  ;;  %v898_v19 = vsel %vm2430_vm6, %v2034_v37, %v897_v38  ;;  %v1060_v50 = vpack.c.b16 %v2402_v14, %v2383_v60  ;;  %v811_v60 = vunpack.c.l.b16 %v2356_v35  ;;  %v1390_v37 = vld [vmem:[%s2597_s20 + $0xc] sm:$0x1] }
  0x2e   : > { %2025 = vmatmul.msk.bf16.vlgmr.msrb.gmra.mxu1 %vm755_vm2, %v813_v2  ;;  %v1048_v44 = vor.u32 %v1047_v39, %v1044_v20  ;;  %v1053_v45 = vrot.slane %v1051_v40, 5  ;;  %v914_v55 = vunpack.c.l.b16 %v894_v18  ;;  %v915_v56 = vunpack.c.l.b16 %v898_v19  ;;  %v1388_v20 = vld [vmem:[%s2597_s20 + $0x4] sm:$0x1] }
  0x2f   : > { %v815_v25 = vpack.c.b16 %v810_v47, %v809_v31  ;;  %v2035_v14 = vrot.slane %v2356_v35, 9  ;;  %v901_v7 = vrot.slane %v2366_v41, 5  ;;  %v2036_v63 = vrot.slane %v2372_v52, 9  ;;  %v2166_v35 = vld [vmem:[%s2838_s6 + $0x8] sm:$0xff] }
  0x30   : > { %v1049_v48 = vrot.slane %v1048_v44, 4  ;;  %v920_v62 = vpack.c.b16 %v915_v56, %v914_v55  ;;  %v905_v2 = vrot.slane %v2375_v53, 5  ;;  %v812_v4 = vunpack.c.l.b16 %v2372_v52  ;;  %v2167_v52 = vld [vmem:[%s2838_s6 + $0x10] sm:$0xff] }
  0x31   : > { %2043 = vmatmul.msk.bf16.vlgmr.msrb.gmra.mxu2 %vm755_vm2, %v918_v3  ;;  %v984_v3 = vpack.c.b16 %v811_v60, %v810_v47  ;;  %v1061_v13 = vpack.c.b16 %v2426_v43, %v2405_v17  ;;  %v2165_v17 = vld [vmem:[%s2838_s6] sm:$0xff]  ;;  %v2168_v43 = vld [vmem:[%s2838_s6 + $0x18] sm:$0xff]  ;;  %v1128_v57 = vpack.c.b16 %v914_v55, %v913_v11  ;;  %v1492_v40 = vshll.u32 %v1388_v20, 16 }
  0x32   : > { %v1054_v28 = vsel %vm2360_vm3, %v1049_v48, %v1053_v45  ;;  %v906_v6 = vsel %vm2430_vm6, %v2036_v63, %v905_v2  ;;  %v816_v15 = vpack.c.b16 %v812_v4, %v811_v60  ;;  %1634 = vmatpush.bf16.msrb.mxu2 %v2166_v35  ;;  %1452 = vmatpush.bf16.msrb.mxu1 %v2165_v17  ;;  %v1506_v44 = vshll.u32 %v1390_v37, 16  ;;  %v2617_v45 = vld [vmem:[%s2597_s20 + $0x10] sm:$0xf]  ;;  %v1394_v17 = vld [vmem:[%s2597_s20 + $0x1c] sm:$0x1] }
  0x33   : > { %v2532_v59 = vunpack.c.l.b16 %v1054_v28  ;;  %v917_v53 = vunpack.c.l.b16 %v906_v6  ;;  %v1514_v47 = vshll.u32 %v2617_v45, 16  ;;  %v1494_v19 = vrot.slane %v1492_v40, 5  ;;  %v2626_v28 = vld [vmem:[%s2597_s20 + $0x18] sm:$0xf] }
  0x34   : > { %v1416_v63 = vunpack.c.l.b16 %v2602_v23  ;;  %v1525_v2 = vshrl.u32 %v2626_v28, 16  ;;  %vm1813_vm7 = vcmask 60416  }
  0x35   : > { %v1062_v61 = vpack.c.b16 %v2532_v59, %v2437_v49  ;;  %v902_v49 = vsel %vm2430_vm6, %v2035_v14, %v901_v7  ;;  %v1256_v55 = vpack.c.b16 %v2439_v51, %v2532_v59  ;;  %v1392_v14 = vld [vmem:[%s2597_s20 + $0x14] sm:$0x1] }
  0x36   : > { %v916_v41 = vunpack.c.l.b16 %v902_v49  ;;  %v1520_v49 = vshll.u32 %v1392_v14, 16 }
  0x38   : > { %2053 = vmatmul.msk.bf16.vlgmr.msrb.gmra.mxu3 %vm755_vm2, %v982_v21  ;;  %v921_v16 = vpack.c.b16 %v917_v53, %v916_v41  ;;  %v981_v21 = vunpack.c.l.b16 %v2505_v27  ;;  %v1129_v5 = vpack.c.b16 %v916_v41, %v915_v56  ;;  %v1527_v41 = vrot.slane %v1525_v2, 4 }
  0x39   : > { %1698 = vmatpush.bf16.msrb.mxu3 %v2167_v52 }
  0x3a   : > { %v985_v22 = vpack.c.b16 %v981_v21, %v812_v4  ;;  %v1191_v38 = vpack.c.b16 %v2442_v54, %v981_v21  ;;  %v1522_v21 = vrot.slane %v1520_v49, 5 }
  0x3b   : > { %2063 = vmatmul.msk.bf16.vlgmr.msrb.gmra.mxu0 %vm755_vm2, %v1059_v8  ;;  %v1127_v8 = vpack.c.b16 %v912_v9, %v911_v1  ;;  %v1121_v1 = vrot.slane %v2517_v34, 5 }
  0x3c   : > { %1775 = vmatpush.bf16.msrb.mxu0 %v2168_v43 }
  0x3e   : > { %2026 = vmatmul.msk.bf16.gmra.mxu1 %vm755_vm2, %v2495_v26 }
  0x41   : > { %2044 = vmatmul.msk.bf16.gmra.mxu2 %vm755_vm2, %v2502_v10 }
  0x48   : > { %2054 = vmatmul.msk.bf16.gmra.mxu3 %vm755_vm2, %v983_v42 }
  0x4b   : > { %2064 = vmatmul.msk.bf16.gmra.mxu0 %vm755_vm2, %v1060_v50  ;;  %v1508_v50 = vrot.slane %v1506_v44, 5 }
  0x4e   : > { %2027 = vmatmul.msk.bf16.gmra.mxu1 %vm755_vm2, %v815_v25 }
  0x51   : > { %2045 = vmatmul.msk.bf16.gmra.mxu2 %vm755_vm2, %v920_v62 }
  0x58   : > { %2055 = vmatmul.msk.bf16.gmra.mxu3 %vm755_vm2, %v984_v3  ;;  %v1528_v3 = vshll.u32 %v2626_v28, 16 }
  0x5b   : > { %2065 = vmatmul.msk.bf16.gmra.mxu0 %vm755_vm2, %v1061_v13 }
  0x5e   : > { %2028 = vmatmul.msk.bf16.gmra.mxu1 %vm755_vm2, %v816_v15 }
  0x61   : > { %2046 = vmatmul.msk.bf16.gmra.mxu2 %vm755_vm2, %v921_v16 }
  0x68   : > { %2056 = vmatmul.msk.bf16.gmra.mxu3 %vm755_vm2, %v985_v22 }
  0x6b   : > { %2066 = vmatmul.msk.bf16.gmra.mxu0 %vm755_vm2, %v1062_v61  ;;  %v1516_v61 = vrot.slane %v1514_v47, 5 }
  0x6e   : > { %2074 = vmatmul.msk.bf16.vlgmr.msra.gmra.mxu1 %vm755_vm2, %v1127_v8  ;;  %v2649_v8 = vld [vmem:[%s2597_s20 + $0x20] sm:$0xf] }
  0x6f   : > { %v1419_v49 = vunpack.c.l.b16 %v2649_v8 }
  0x71   : > { %2084 = vmatmul.msk.bf16.vlgmr.msra.gmra.mxu2 %vm755_vm2, %v2495_v26  ;;  %v1497_v26 = vshrl.u32 %v2602_v23, 16 }
  0x73   : > { %v1499_v32 = vrot.slane %v1497_v26, 4  ;;  %v2659_v26 = vld [vmem:[%s2597_s20 + $0x28] sm:$0xf] }
  0x74   : > { %v1556_v40 = vshll.u32 %v2659_v26, 16 }
  0x78   : > { %2094 = vmatmul.msk.bf16.vlgmr.msra.gmra.mxu3 %vm755_vm2, %v2398_v12  ;;  %v2067_v12 = vrot.slane %v2505_v27, 9 }
  0x7a   : > { %v1122_v24 = vsel %vm2430_vm6, %v2067_v12, %v1121_v1  ;;  %v1417_v1 = vunpack.c.l.b16 %v2617_v45 }
  0x7b   : > { %2105 = vmatmul.msk.bf16.vlgmr.msra.gmra.mxu0 %vm755_vm2, %v2502_v10  ;;  %v1500_v10 = vshll.u32 %v2602_v23, 16  ;;  %v1126_v27 = vunpack.c.l.b16 %v1122_v24  ;;  %v1539_v23 = vshrl.u32 %v2649_v8, 16  ;;  %v1542_v24 = vshll.u32 %v2649_v8, 16 }
  0x7d   : > { %v1502_v33 = vrot.slane %v1500_v10, 5  ;;  %v1130_v34 = vpack.c.b16 %v1126_v27, %v917_v53  ;;  %v1312_v51 = vpack.c.b16 %v2467_v0, %v1126_v27  ;;  %v1530_v53 = vrot.slane %v1528_v3, 5 }
  0x7e   : > { %2075 = vmatmul.msk.bf16.gmra.mxu1 %vm755_vm2, %v1128_v57  ;;  %v1544_v20 = vrot.slane %v1542_v24, 5  ;;  %v1400_v24 = vld [vmem:[%s2597_s20 + $0x34] sm:$0x1] }
  0x7f   : > { %v1503_v42 = vor.u32 %v1502_v33, %v1499_v32  ;;  %v1531_v57 = vor.u32 %v1530_v53, %v1527_v41 }
  0x81   : > { %2085 = vmatmul.msk.bf16.gmra.mxu2 %vm755_vm2, %v815_v25  ;;  %v1504_v48 = vrot.slane %v1503_v42, 4  ;;  %v1418_v42 = vunpack.c.l.b16 %v2626_v28 }
  0x83   : > { %v1509_v60 = vsel %vm2360_vm3, %v1504_v48, %v1508_v50  ;;  %v1558_v50 = vrot.slane %v1556_v40, 5  ;;  %v1402_v40 = vld [vmem:[%s2597_s20 + $0x3c] sm:$0x1] }
  0x84   : > { %v1598_v13 = vunpack.c.l.b16 %v1509_v60 }
  0x88   : > { %2095 = vmatmul.msk.bf16.gmra.mxu3 %vm755_vm2, %v2416_v30  ;;  %v1387_v30 = vld [vmem:[%s2597_s20] sm:$0xf] }
  0x89   : > { %v1483_v9 = vshrl.u32 %v1387_v30, 16  ;;  %v1486_v11 = vshll.u32 %v1387_v30, 16  ;;  %v1415_v7 = vunpack.c.l.b16 %v1387_v30 }
  0x8b   : > { %2106 = vmatmul.msk.bf16.gmra.mxu0 %vm755_vm2, %v920_v62  ;;  %v1485_v29 = vrot.slane %v1483_v9, 4  ;;  %v1488_v31 = vrot.slane %v1486_v11, 5  ;;  %v1423_v35 = vpack.c.b16 %v1416_v63, %v1415_v7  ;;  %v1532_v9 = vrot.slane %v1531_v57, 4 }
  0x8d   : > { %v1489_v39 = vor.u32 %v1488_v31, %v1485_v29  ;;  %v1669_v31 = vpack.c.b16 %v1417_v1, %v1416_v63 }
  0x8e   : > { %2076 = vmatmul.msk.bf16.gmra.mxu1 %vm755_vm2, %v1129_v5  ;;  %v1534_v5 = vshll.u32 %v1394_v17, 16 }
  0x8f   : > { %v1490_v18 = vrot.slane %v1489_v39, 4  ;;  %v1553_v39 = vshrl.u32 %v2659_v26, 16 }
  0x90   : > { %v1536_v11 = vrot.slane %v1534_v5, 5 }
  0x91   : > { %2086 = vmatmul.msk.bf16.gmra.mxu2 %vm755_vm2, %v816_v15  ;;  %v1495_v62 = vsel %vm2360_vm3, %v1490_v18, %v1494_v19  ;;  %v1555_v48 = vrot.slane %v1553_v39, 4 }
  0x92   : > { %v1597_v6 = vunpack.c.l.b16 %v1495_v62  ;;  %v1537_v44 = vsel %vm2360_vm3, %v1532_v9, %v1536_v11  ;;  %v1420_v9 = vunpack.c.l.b16 %v2659_v26 }
  0x93   : > { %v1600_v19 = vunpack.c.l.b16 %v1537_v44 }
  0x94   : > { %v1605_v22 = vpack.c.b16 %v1598_v13, %v1597_v6 }
  0x98   : > { %2096 = vmatmul.msk.bf16.gmra.mxu3 %vm755_vm2, %v2452_v58  ;;  %v1511_v58 = vshrl.u32 %v2617_v45, 16 }
  0x9a   : > { %v1513_v25 = vrot.slane %v1511_v58, 4 }
  0x9b   : > { %2107 = vmatmul.msk.bf16.gmra.mxu0 %vm755_vm2, %v921_v16  ;;  %v2613_v46 = vpop.f32.mrf.mxu1 }
  0x9c   : > { %v1517_v4 = vor.u32 %v1516_v61, %v1513_v25  ;;  %v1398_v25 = vld [vmem:[%s2597_s20 + $0x2c] sm:$0x1] }
  0x9e   : > { %2077 = vmatmul.msk.bf16.gmra.mxu1 %vm755_vm2, %v1130_v34  ;;  %v1518_v16 = vrot.slane %v1517_v4, 4  ;;  %v1541_v34 = vrot.slane %v1539_v23, 4  ;;  %v2674_v4 = vld [vmem:[%s2597_s20 + $0x30] sm:$0xf] }
  0x9f   : > { %v1570_v41 = vshll.u32 %v2674_v4, 16 }
  0xa0   : > { %v1523_v30 = vsel %vm2360_vm3, %v1518_v16, %v1522_v21  ;;  %v1545_v47 = vor.u32 %v1544_v20, %v1541_v34  ;;  %v1425_v20 = vpack.c.b16 %v1420_v9, %v1419_v49 }
  0xa1   : > { %2087 = vmatmul.msk.bf16.gmra.mxu2 %vm755_vm2, %v1191_v38  ;;  %v1599_v27 = vunpack.c.l.b16 %v1523_v30  ;;  %v1396_v38 = vld [vmem:[%s2597_s20 + $0x24] sm:$0x1] }
  0xa2   : > { %v1548_v18 = vshll.u32 %v1396_v38, 16  ;;  %v1546_v7 = vrot.slane %v1545_v47, 4 }
  0xa3   : > { %v2623_v54 = vpop.f32.mrf.mxu1  ;;  %v1746_v45 = vpack.c.b16 %v1599_v27, %v1598_v13  ;;  %v1606_v3 = vpack.c.b16 %v1600_v19, %v1599_v27 }
  0xa4   : > { %v2630_v56 = vpop.f32.mrf.mxu2  ;;  %v1550_v63 = vrot.slane %v1548_v18, 5 }
  0xa8   : > { %v777_v59 = vpop.f32.mrf.mxu0  ;;  %2097 = vmatmul.msk.bf16.gmra.mxu3 %vm755_vm2, %v1256_v55  ;;  %v1424_v55 = vpack.c.b16 %v1418_v42, %v1417_v1  ;;  %v1572_v1 = vrot.slane %v1570_v41, 5  ;;  %v1404_v41 = vld [vmem:[%s2703_s24 + $0x4] sm:$0x1] }
  0xab   : > { %2108 = vmatmul.msk.bf16.gmra.mxu0 %vm755_vm2, %v1312_v51  ;;  %v2643_v15 = vpop.f32.mrf.mxu3  ;;  %v844_v52 = vpop.f32.mrf.mxu1  ;;  %v1559_v51 = vor.u32 %v1558_v50, %v1555_v48  ;;  %v1403_v48 = vld [vmem:[%s2703_s24] sm:$0xf] }
  0xac   : > { %v2646_v43 = vpop.f32.mrf.mxu2  ;;  %v845_v0 = vadd.f32 %v844_v52, %v777_v59  ;;  %v1562_v59 = vshll.u32 %v1398_v25, 16 }
  0xad   : > { %v1560_v53 = vrot.slane %v1559_v51, 4 }
  0xae   : > { %2113 = vmatmul.msk.bf16.vlgmr.msrb.gmra.mxu1 %vm755_vm2, %v1423_v35  ;;  %v1551_v35 = vsel %vm2360_vm3, %v1546_v7, %v1550_v63  ;;  %v1564_v52 = vrot.slane %v1562_v59, 5 }
  0xaf   : > { %v1601_v16 = vunpack.c.l.b16 %v1551_v35 }
  0xb0   : > { %v779_v12 = vpop.f32.mrf.mxu0  ;;  %v1565_v23 = vsel %vm2360_vm3, %v1560_v53, %v1564_v52 }
  0xb1   : > { %2123 = vmatmul.msk.bf16.vlgmr.msrb.gmra.mxu2 %vm755_vm2, %v1605_v22  ;;  %v2686_v22 = vld [vmem:[%s2597_s20 + $0x38] sm:$0xf]  ;;  %v1602_v34 = vunpack.c.l.b16 %v1565_v23 }
  0xb2   : > { %v1581_v11 = vshrl.u32 %v2686_v22, 16  ;;  %v1584_v27 = vshll.u32 %v2686_v22, 16  ;;  %v1422_v53 = vunpack.c.l.b16 %v2686_v22 }
  0xb3   : > { %v2661_v10 = vpop.f32.mrf.mxu3  ;;  %v846_v29 = vpop.f32.mrf.mxu1 }
  0xb4   : > { %v949_v32 = vpop.f32.mrf.mxu2  ;;  %v847_v33 = vadd.f32 %v846_v29, %v779_v12  ;;  %v1586_v38 = vrot.slane %v1584_v27, 5 }
  0xb5   : > { %v969_v37 = vadd.f32 %v949_v32, %v845_v0  ;;  %v1670_v0 = vpack.c.b16 %v1419_v49, %v1418_v42 }
  0xb8   : > { %v1090_v58 = vpop.f32.mrf.mxu0  ;;  %2133 = vmatmul.msk.bf16.vlgmr.msrb.gmra.mxu3 %vm755_vm2, %v1669_v31  ;;  %v1747_v31 = vpack.c.b16 %v1601_v16, %v1600_v19  ;;  %v1607_v19 = vpack.c.b16 %v1602_v34, %v1601_v16 }
  0xbb   : > { %2143 = vmatmul.msk.bf16.vlgmr.msrb.gmra.mxu0 %vm755_vm2, %v1746_v45  ;;  %v1013_v61 = vpop.f32.mrf.mxu3  ;;  %v849_v62 = vpop.f32.mrf.mxu1 }
  0xbc   : > { %v1033_v28 = vadd.f32 %v1013_v61, %v969_v37  ;;  %v951_v60 = vpop.f32.mrf.mxu2  ;;  %v850_v14 = vadd.f32 %v849_v62, %v2613_v46  ;;  %v1567_v46 = vshrl.u32 %v2674_v4, 16  ;;  %v1583_v37 = vrot.slane %v1581_v11, 4 }
  0xbd   : > { %v970_v2 = vadd.f32 %v951_v60, %v847_v33  ;;  %v1576_v33 = vshll.u32 %v1400_v24, 16  ;;  %v1421_v61 = vunpack.c.l.b16 %v2674_v4  ;;  %v1729_v60 = vshrl.u32 %v1403_v48, 16 }
  0xbe   : > { %2114 = vmatmul.msk.bf16.gmra.mxu1 %vm755_vm2, %v1424_v55  ;;  %v2678_v6 = vadd.f32 %v1090_v58, %v1033_v28  ;;  %v1569_v12 = vrot.slane %v1567_v46, 4  ;;  %v1587_v50 = vor.u32 %v1586_v38, %v1583_v37  ;;  %v1590_v55 = vshll.u32 %v1402_v40, 16 }
  0xbf   : > { %v1578_v47 = vrot.slane %v1576_v33, 5  ;;  %v1731_v4 = vrot.slane %v1729_v60, 4 }
  0xc0   : > { %v1092_v13 = vpop.f32.mrf.mxu0  ;;  %v1573_v32 = vor.u32 %v1572_v1, %v1569_v12  ;;  %v1592_v7 = vrot.slane %v1590_v55, 5 }
  0xc1   : > { %2124 = vmatmul.msk.bf16.gmra.mxu2 %vm755_vm2, %v1606_v3 }
  0xc2   : > { %v1574_v58 = vrot.slane %v1573_v32, 4 }
  0xc3   : > { %v1015_v17 = vpop.f32.mrf.mxu3  ;;  %v851_v21 = vpop.f32.mrf.mxu1 }
  0xc4   : > { %v1034_v8 = vadd.f32 %v1015_v17, %v970_v2  ;;  %v954_v57 = vpop.f32.mrf.mxu2  ;;  %v852_v5 = vadd.f32 %v851_v21, %v2623_v54  ;;  %v1579_v28 = vsel %vm2360_vm3, %v1574_v58, %v1578_v47  ;;  %v1671_v2 = vpack.c.b16 %v1421_v61, %v1420_v9 }
  0xc5   : > { %v971_v30 = vadd.f32 %v954_v57, %v850_v14  ;;  %v1588_v14 = vrot.slane %v1587_v50, 4  ;;  %v1603_v3 = vunpack.c.l.b16 %v1579_v28  ;;  %v1738_v21 = vshll.u32 %v1404_v41, 16 }
  0xc6   : > { %v2695_v29 = vadd.f32 %v1092_v13, %v1034_v8 }
  0xc7   : > { %v1593_v52 = vsel %vm2360_vm3, %v1588_v14, %v1592_v7  ;;  %v1740_v24 = vrot.slane %v1738_v21, 5 }
  0xc8   : > { %v1095_v54 = vpop.f32.mrf.mxu0  ;;  %2134 = vmatmul.msk.bf16.gmra.mxu3 %vm755_vm2, %v1670_v0  ;;  %v1748_v0 = vpack.c.b16 %v1603_v3, %v1602_v34  ;;  %v1604_v57 = vunpack.c.l.b16 %v1593_v52 }
  0xca   : > { %v1608_v11 = vpack.c.b16 %v1604_v57, %v1603_v3 }
  0xcb   : > { %2144 = vmatmul.msk.bf16.gmra.mxu0 %vm755_vm2, %v1747_v31  ;;  %v1018_v26 = vpop.f32.mrf.mxu3  ;;  %v854_v39 = vpop.f32.mrf.mxu1 }
  0xcc   : > { %v1035_v42 = vadd.f32 %v1018_v26, %v971_v30  ;;  %v956_v44 = vpop.f32.mrf.mxu2  ;;  %v855_v45 = vadd.f32 %v854_v39, %v2630_v56  ;;  %v1732_v56 = vshll.u32 %v1403_v48, 16 }
  0xcd   : > { %v972_v18 = vadd.f32 %v956_v44, %v852_v5  ;;  %v1426_v5 = vpack.c.b16 %v1422_v53, %v1421_v61 }
  0xce   : > { %2115 = vmatmul.msk.bf16.gmra.mxu1 %vm755_vm2, %v1425_v20  ;;  %v2710_v25 = vadd.f32 %v1095_v54, %v1035_v42  ;;  %v1734_v35 = vrot.slane %v1732_v56, 5  ;;  %v1668_v54 = vunpack.c.l.b16 %v1403_v48 }
  0xd0   : > { %v1097_v62 = vpop.f32.mrf.mxu0  ;;  %v1735_v8 = vor.u32 %v1734_v35, %v1731_v4 }
  0xd1   : > { %2125 = vmatmul.msk.bf16.gmra.mxu2 %vm755_vm2, %v1607_v19 }
  0xd2   : > { %v1736_v23 = vrot.slane %v1735_v8, 4 }
  0xd3   : > { %v1020_v63 = vpop.f32.mrf.mxu3  ;;  %v856_v51 = vpop.f32.mrf.mxu1 }
  0xd4   : > { %v1036_v59 = vadd.f32 %v1020_v63, %v972_v18  ;;  %v959_v49 = vpop.f32.mrf.mxu2  ;;  %v857_v13 = vadd.f32 %v856_v51, %v2646_v43  ;;  %v1741_v32 = vsel %vm2360_vm3, %v1736_v23, %v1740_v24 }
  0xd5   : > { %v973_v46 = vadd.f32 %v959_v49, %v855_v45  ;;  %v1745_v34 = vunpack.c.l.b16 %v1741_v32 }
  0xd6   : > { %v2721_v17 = vadd.f32 %v1097_v62, %v1036_v59 }
  0xd7   : > { %v1749_v42 = vpack.c.b16 %v1745_v34, %v1604_v57 }
  0xd8   : > { %v1100_v16 = vpop.f32.mrf.mxu0  ;;  %2135 = vmatmul.msk.bf16.gmra.mxu3 %vm755_vm2, %v1671_v2 }
  0xdb   : > { %2145 = vmatmul.msk.bf16.gmra.mxu0 %vm755_vm2, %v1748_v0  ;;  %v1023_v43 = vpop.f32.mrf.mxu3  ;;  %v859_v12 = vpop.f32.mrf.mxu1 }
  0xdc   : > { %v1037_v1 = vadd.f32 %v1023_v43, %v973_v46  ;;  %v961_v30 = vpop.f32.mrf.mxu2  ;;  %v860_v22 = vadd.f32 %v859_v12, %v2643_v15  ;;  %v1672_v15 = vpack.c.b16 %v1668_v54, %v1422_v53 }
  0xdd   : > { %v974_v9 = vadd.f32 %v961_v30, %v857_v13 }
  0xde   : > { %2116 = vmatmul.msk.bf16.gmra.mxu1 %vm755_vm2, %v1426_v5  ;;  %v2727_v27 = vadd.f32 %v1100_v16, %v1037_v1 }
  0xe0   : > { %v1102_v31 = vpop.f32.mrf.mxu0 }
  0xe1   : > { %2126 = vmatmul.msk.bf16.gmra.mxu2 %vm755_vm2, %v1608_v11 }
  0xe3   : > { %v1025_v33 = vpop.f32.mrf.mxu3  ;;  %v861_v20 = vpop.f32.mrf.mxu1 }
  0xe4   : > { %v1038_v37 = vadd.f32 %v1025_v33, %v974_v9  ;;  %v964_v38 = vpop.f32.mrf.mxu2  ;;  %v862_v26 = vadd.f32 %v861_v20, %v2661_v10 }
  0xe5   : > { %v975_v39 = vadd.f32 %v964_v38, %v860_v22 }
  0xe6   : > { %v2733_v40 = vadd.f32 %v1102_v31, %v1038_v37 }
  0xe8   : > { %v1105_v44 = vpop.f32.mrf.mxu0  ;;  %2136 = vmatmul.msk.bf16.gmra.mxu3 %vm755_vm2, %v1672_v15 }
  0xeb   : > { %2146 = vmatmul.msk.bf16.gmra.mxu0 %vm755_vm2, %v1749_v42  ;;  %v1028_v36 = vpop.f32.mrf.mxu3  ;;  %v1158_v45 = vpop.f32.mrf.mxu1 }
  0xec   : > { %v1039_v58 = vadd.f32 %v1028_v36, %v975_v39  ;;  %v966_v47 = vpop.f32.mrf.mxu2  ;;  %v1178_v21 = vadd.f32 %v1158_v45, %v2678_v6  ;;  %v2764_v6 = vld [vmem:[%s2839_s7] ss:$0 sm:$0xff] }
  0xed   : > { %v976_v18 = vadd.f32 %v966_v47, %v862_v26 }
  0xee   : > { %v2737_v19 = vadd.f32 %v1105_v44, %v1039_v58 }
  0xf0   : > { %v1107_v48 = vpop.f32.mrf.mxu0 }
  0xf3   : > { %v1030_v50 = vpop.f32.mrf.mxu3  ;;  %v1160_v55 = vpop.f32.mrf.mxu1 }
  0xf4   : > { %v1040_v10 = vadd.f32 %v1030_v50, %v976_v18  ;;  %v1210_v61 = vpop.f32.mrf.mxu2  ;;  %v1179_v30 = vadd.f32 %v1160_v55, %v2695_v29 }
  0xf5   : > { %v1230_v8 = vadd.f32 %v1210_v61, %v1178_v21 }
  0xf6   : > { %v2739_v62 = vadd.f32 %v1107_v48, %v1040_v10 }
  0xf8   : > { %v1331_v28 = vpop.f32.mrf.mxu0 }
  0xfb   : > { %v1275_v60 = vpop.f32.mrf.mxu3  ;;  %v1163_v56 = vpop.f32.mrf.mxu1 }
  0xfc   : > { %v1212_v14 = vpop.f32.mrf.mxu2  ;;  %v1295_v12 = vadd.f32 %v1275_v60, %v1230_v8  ;;  %v1180_v33 = vadd.f32 %v1163_v56, %v2710_v25 }
  0xfd   : > { %v1231_v23 = vadd.f32 %v1212_v14, %v1179_v30 }
  0xfe   : > { %v1351_v22 = vadd.f32 %v1331_v28, %v1295_v12 }
 0x100   : > { %v1333_v7 = vpop.f32.mrf.mxu0  ;;  %v1363_v32 = vadd.f32 %v2764_v6, %v1351_v22 }
 0x102   : > { %v1371_v37 = vmul.f32 0.2, %v1363_v32 }
 0x103   : > { %v1277_v63 = vpop.f32.mrf.mxu3  ;;  %v1165_v2 = vpop.f32.mrf.mxu1 }
 0x104   : > { %v1215_v3 = vpop.f32.mrf.mxu2  ;;  %v1296_v31 = vadd.f32 %v1277_v63, %v1231_v23  ;;  %v1379_v39 = vmax.f32 %v1363_v32, %v1371_v37  ;;  %v1181_v36 = vadd.f32 %v1165_v2, %v2721_v17 }
 0x105   : > { %v1232_v29 = vadd.f32 %v1215_v3, %v1180_v33 }
 0x106   : > { %v1352_v34 = vadd.f32 %v1333_v7, %v1296_v31 }
 0x108   : > { %v1336_v51 = vpop.f32.mrf.mxu0  ;;  %v1364_v44 = vadd.f32 %v2764_v6, %v1352_v34 }
 0x10a   : > { %v1372_v48 = vmul.f32 0.2, %v1364_v44 }
 0x10b   : > { %v1280_v59 = vpop.f32.mrf.mxu3  ;;  %v1168_v49 = vpop.f32.mrf.mxu1 }
 0x10c   : > { %v1217_v13 = vpop.f32.mrf.mxu2  ;;  %v1297_v15 = vadd.f32 %v1280_v59, %v1232_v29  ;;  %v1380_v60 = vmax.f32 %v1364_v44, %v1372_v48  ;;  %v1182_v14 = vadd.f32 %v1168_v49, %v2727_v27 }
 0x10d   : > { %v1233_v47 = vadd.f32 %v1217_v13, %v1181_v36 }
 0x10e   : > { %v1353_v58 = vadd.f32 %v1336_v51, %v1297_v15 }
 0x110   : > { %v1338_v4 = vpop.f32.mrf.mxu0  ;;  %v1365_v55 = vadd.f32 %v2764_v6, %v1353_v58 }
 0x112   : > { %v1373_v17 = vmul.f32 0.2, %v1365_v55 }
 0x113   : > { %v1282_v35 = vpop.f32.mrf.mxu3  ;;  %v2741_v46 = vpop.f32.mrf.mxu1 }
 0x114   : > { %v1220_v41 = vpop.f32.mrf.mxu2  ;;  %v1298_v61 = vadd.f32 %v1282_v35, %v1233_v47  ;;  %v1381_v8 = vmax.f32 %v1365_v55, %v1373_v17  ;;  %v1183_v22 = vadd.f32 %v2741_v46, %v2733_v40 }
 0x115   : > { %v1234_v3 = vadd.f32 %v1220_v41, %v1182_v14 }
 0x116   : > { %v1354_v2 = vadd.f32 %v1338_v4, %v1298_v61 }
 0x118   : > { %v2743_v53 = vpop.f32.mrf.mxu0  ;;  %v1366_v30 = vadd.f32 %v2764_v6, %v1354_v2 }
 0x11a   : > { %v1374_v29 = vmul.f32 0.2, %v1366_v30 }
 0x11b   : > { %v1285_v52 = vpop.f32.mrf.mxu3  ;;  %v2745_v0 = vpop.f32.mrf.mxu1 }
 0x11c   : > { %v2747_v16 = vpop.f32.mrf.mxu2  ;;  %v1299_v49 = vadd.f32 %v1285_v52, %v1234_v3  ;;  %v1382_v15 = vmax.f32 %v1366_v30, %v1374_v29 }
 0x11d   : > { %v1235_v41 = vadd.f32 %v2747_v16, %v1183_v22  ;;  %v1184_v16 = vadd.f32 %v2745_v0, %v2737_v19 }
 0x120   : > { %v2750_v57 = vpop.f32.mrf.mxu0 }
 0x123   : > { %v2752_v5 = vpop.f32.mrf.mxu3  ;;  %v2754_v43 = vpop.f32.mrf.mxu1 }
 0x124   : > { %v2756_v1 = vpop.f32.mrf.mxu2  ;;  %v1300_v52 = vadd.f32 %v2752_v5, %v1235_v41 }
 0x125   : > { %v1236_v44 = vadd.f32 %v2756_v1, %v1184_v16 }
 0x128   : > { %v2759_v24 = vpop.f32.mrf.mxu0 }
 0x12b   : > { %v2766_v9 = vpop.f32.mrf.mxu3  ;;  %v1454_v11 = vpop.f32.mrf.mxu1 }
 0x12c   : > { %v2768_v54 = vpop.f32.mrf.mxu2  ;;  %v1474_v45 = vadd.f32 %v1454_v11, %v1379_v39  ;;  %v1355_v11 = vadd.f32 %v2743_v53, %v1299_v49 }
 0x12e   : > { %v1367_v40 = vadd.f32 %v2764_v6, %v1355_v11 }
 0x130   : > { %v2772_v20 = vpop.f32.mrf.mxu0  ;;  %v1375_v58 = vmul.f32 0.2, %v1367_v40 }
 0x132   : > { %v1383_v19 = vmax.f32 %v1367_v40, %v1375_v58 }
 0x133   : > { %v2774_v38 = vpop.f32.mrf.mxu3  ;;  %v1456_v26 = vpop.f32.mrf.mxu1 }
 0x134   : > { %v1636_v42 = vpop.f32.mrf.mxu2  ;;  %v1475_v63 = vadd.f32 %v1456_v26, %v1380_v60 }
 0x135   : > { %v1656_v18 = vadd.f32 %v1636_v42, %v1474_v45  ;;  %v1356_v42 = vadd.f32 %v2750_v57, %v1300_v52  ;;  %v1185_v57 = vadd.f32 %v2754_v43, %v2739_v62 }
 0x138   : > { %v1777_v25 = vpop.f32.mrf.mxu0 }
 0x13b   : > { %v1700_v50 = vpop.f32.mrf.mxu3  ;;  %v1459_v10 = vpop.f32.mrf.mxu1 }
 0x13c   : > { %v1720_v28 = vadd.f32 %v1700_v50, %v1656_v18  ;;  %v1638_v56 = vpop.f32.mrf.mxu2  ;;  %v1476_v4 = vadd.f32 %v1459_v10, %v1381_v8  ;;  %v1301_v18 = vadd.f32 %v2766_v9, %v1236_v44 }
 0x13d   : > { %v1657_v13 = vadd.f32 %v1638_v56, %v1475_v63 }
 0x13e   : > { %v1797_v7 = vadd.f32 %v1777_v25, %v1720_v28  ;;  %v1368_v25 = vadd.f32 %v2764_v6, %v1356_v42  ;;  %v1357_v61 = vadd.f32 %v2759_v24, %v1301_v18  ;;  %v1237_v28 = vadd.f32 %v2768_v54, %v1185_v57 }
 0x140   : > { %v1805_v51 = vpack.c.bf16 %v1797_v7, %v1797_v7  ;;  %v1779_v59 = vpop.f32.mrf.mxu0  ;;  %v1376_v10 = vmul.f32 0.2, %v1368_v25  ;;  %v1302_v7 = vadd.f32 %v2774_v38, %v1237_v28  ;;  %v1369_v43 = vadd.f32 %v2764_v6, %v1357_v61 }
 0x142   : > { %1814 = vst.msk [vmem:[%s2784_s10] sm:$0xf] %vm1813_vm7, %v1805_v51  ;;  %v1384_v17 = vmax.f32 %v1368_v25, %v1376_v10  ;;  %v1358_v24 = vadd.f32 %v2772_v20, %v1302_v7 }
 0x143   : > { %v1702_v35 = vpop.f32.mrf.mxu3  ;;  %v1461_v27 = vpop.f32.mrf.mxu1 }
 0x144   : > { %v1721_v21 = vadd.f32 %v1702_v35, %v1657_v13  ;;  %v1641_v12 = vpop.f32.mrf.mxu2  ;;  %v1477_v39 = vadd.f32 %v1461_v27, %v1382_v15  ;;  %v1370_v8 = vadd.f32 %v2764_v6, %v1358_v24 }
 0x145   : > { %v1658_v33 = vadd.f32 %v1641_v12, %v1476_v4 }
 0x146   : > { %v1798_v23 = vadd.f32 %v1779_v59, %v1721_v21  ;;  %v1377_v59 = vmul.f32 0.2, %v1369_v43  ;;  %v1378_v20 = vmul.f32 0.2, %v1370_v8 }
 0x148   : > { %v1806_v31 = vpack.c.bf16 %v1798_v23, %v1798_v23  ;;  %v1782_v32 = vpop.f32.mrf.mxu0  ;;  %v1385_v38 = vmax.f32 %v1369_v43, %v1377_v59 }
 0x14a   : > { %1815 = vst.msk [vmem:[%s2784_s10 + $0x4] sm:$0xf] %vm1813_vm7, %v1806_v31 }
 0x14b   : > { %v1705_v34 = vpop.f32.mrf.mxu3  ;;  %v1464_v46 = vpop.f32.mrf.mxu1 }
 0x14c   : > { %v1722_v37 = vadd.f32 %v1705_v34, %v1658_v33  ;;  %v1643_v26 = vpop.f32.mrf.mxu2  ;;  %v1478_v1 = vadd.f32 %v1464_v46, %v1383_v19 }
 0x14d   : > { %v1659_v5 = vadd.f32 %v1643_v26, %v1477_v39 }
 0x14e   : > { %v1799_v53 = vadd.f32 %v1782_v32, %v1722_v37  ;;  %v1386_v32 = vmax.f32 %v1370_v8, %v1378_v20 }
 0x150   : > { %v1807_v36 = vpack.c.bf16 %v1799_v53, %v1799_v53  ;;  %v1784_v45 = vpop.f32.mrf.mxu0 }
 0x152   : > { %1816 = vst.msk [vmem:[%s2784_s10 + $0x8] sm:$0xf] %vm1813_vm7, %v1807_v36 }
 0x153   : > { %v1707_v47 = vpop.f32.mrf.mxu3  ;;  %v1466_v55 = vpop.f32.mrf.mxu1 }
 0x154   : > { %v1723_v48 = vadd.f32 %v1707_v47, %v1659_v5  ;;  %v1646_v0 = vpop.f32.mrf.mxu2  ;;  %v1479_v3 = vadd.f32 %v1466_v55, %v1384_v17 }
 0x155   : > { %v1660_v14 = vadd.f32 %v1646_v0, %v1478_v1 }
 0x156   : > { %v1800_v50 = vadd.f32 %v1784_v45, %v1723_v48 }
 0x158   : > { %v1808_v60 = vpack.c.bf16 %v1800_v50, %v1800_v50  ;;  %v1787_v56 = vpop.f32.mrf.mxu0 }
 0x15a   : > { %1817 = vst.msk [vmem:[%s2784_s10 + $0xc] sm:$0xf] %vm1813_vm7, %v1808_v60 }
 0x15b   : > { %v1710_v9 = vpop.f32.mrf.mxu3  ;;  %v1469_v13 = vpop.f32.mrf.mxu1 }
 0x15c   : > { %v1724_v63 = vadd.f32 %v1710_v9, %v1660_v14  ;;  %v1648_v62 = vpop.f32.mrf.mxu2  ;;  %v1480_v30 = vadd.f32 %v1469_v13, %v1385_v38 }
 0x15d   : > { %v1661_v54 = vadd.f32 %v1648_v62, %v1479_v3 }
 0x15e   : > { %v1801_v2 = vadd.f32 %v1787_v56, %v1724_v63 }
 0x160   : > { %v1809_v51 = vpack.c.bf16 %v1801_v2, %v1801_v2  ;;  %v1789_v35 = vpop.f32.mrf.mxu0 }
 0x162   : > { %1818 = vst.msk [vmem:[%s2784_s10 + $0x10] sm:$0xf] %vm1813_vm7, %v1809_v51 }
 0x163   : > { %v1712_v27 = vpop.f32.mrf.mxu3  ;;  %v1471_v4 = vpop.f32.mrf.mxu1 }
 0x164   : > { %v1725_v49 = vadd.f32 %v1712_v27, %v1661_v54  ;;  %v1651_v21 = vpop.f32.mrf.mxu2  ;;  %v1481_v52 = vadd.f32 %v1471_v4, %v1386_v32 }
 0x165   : > { %v1662_v23 = vadd.f32 %v1651_v21, %v1480_v30 }
 0x166   : > { %v1802_v12 = vadd.f32 %v1789_v35, %v1725_v49 }
 0x168   : > { %v1810_v22 = vpack.c.bf16 %v1802_v12, %v1802_v12  ;;  %v1792_v41 = vpop.f32.mrf.mxu0 }
 0x16a   : > { %1819 = vst.msk [vmem:[%s2784_s10 + $0x14] sm:$0xf] %vm1813_vm7, %v1810_v22 }
 0x16b   : > { %v1715_v11 = vpop.f32.mrf.mxu3 }
 0x16c   : > { %v1726_v31 = vadd.f32 %v1715_v11, %v1662_v23  ;;  %v1653_v33 = vpop.f32.mrf.mxu2 }
 0x16d   : > { %v1663_v37 = vadd.f32 %v1653_v33, %v1481_v52 }
 0x16e   : > { %v1803_v29 = vadd.f32 %v1792_v41, %v1726_v31 }
 0x170   : > { %v1811_v34 = vpack.c.bf16 %v1803_v29, %v1803_v29  ;;  %v1794_v26 = vpop.f32.mrf.mxu0 }
 0x172   : > { %1820 = vst.msk [vmem:[%s2784_s10 + $0x18] sm:$0xf] %vm1813_vm7, %v1811_v34 }
 0x173   : > { %v1717_v6 = vpop.f32.mrf.mxu3 }
 0x174   : > { %v1727_v15 = vadd.f32 %v1717_v6, %v1663_v37 }
 0x176   : > { %v1804_v40 = vadd.f32 %v1794_v26, %v1727_v15 }
 0x178   : > { %v1812_v46 = vpack.c.bf16 %v1804_v40, %v1804_v40 }
 0x17a   : > { %1821 = vst.msk [vmem:[%s2784_s10 + $0x1c] sm:$0xf] %vm1813_vm7, %v1812_v46 }
 0x17b PF: > { %s18_s27 = sadd.s32 1, %s2223_s27   ;;  %s2845_s26 = smov %s2219_s2 }
 0x17c   : > { %p15_p5 = scmp.ge.s32.totalorder %s18_s27, 4   ;;  %s2846_s2 = smov %s2848_s28 }
 0x17e   :  { %17 = sbr.rel (!%p15_p5) target bundleno = 2 (0x2), region = 105 }

// kernel: tile.8
= control target key start
LH: loop header
LB: loop body
LE: loop exit
PB: predicated region body
PF: predicated region fallthrough
CT: control target
= control target key end

     0   :  { %s22_s0 = inlined_call_operand.vmem [shape: f32[4], index: 0, kind: input, shape index: {}]   ;;  %s23_s1 = inlined_call_operand.vmem [shape: f32[4,4], index: 1, kind: output, shape index: {}]  }
   0x1   :  { %v4_v0 = vld [vmem:[%s22_s0] ss:$0 sm:$0xff] }
   0x2   :  { %5 = vst [vmem:[%s23_s1] sm:$0xf] %v4_v0 }

// kernel: tile.9
= control target key start
LH: loop header
LB: loop body
LE: loop exit
PB: predicated region body
PF: predicated region fallthrough
CT: control target
= control target key end

     0   :  { %s37_s8 = smov 4   ;;  %s38_s9 = smov 8   ;;  %vm7_vm0 = vcmask 31744   ;;  %vm13_vm1 = vcmask 130144   ;;  %vm19_vm2 = vcmask 97344   ;;  %vm25_vm3 = vcmask 64544   ;;  %s55_s0 = inlined_call_operand.vmem [shape: f32[4,4], index: 0, kind: input, shape index: {}]   ;;  %s56_s1 = inlined_call_operand.vmem [shape: f32[1,16], index: 1, kind: output, shape index: {}]  }
   0x1   :  { %v4_v0 = vld [vmem:[%s55_s0] sm:$0xf]  ;;  %s36_s0 = smov 12  }
   0x2   :  { %5 = vst [vmem:[#allocation1] sm:$0xf] %v4_v0 }
   0x9   :  { %v10_v1 = vld [vmem:[#allocation1 + $0x3] sm:$0x1]   ;;  %v22_v2 = vld [vmem:[#allocation1 + $0x1] sm:$0x1]   ;;  %v16_v3 = vld [vmem:[#allocation1 + $0x2] sm:$0x1]  }
   0xa   :  { %11 = vrot.lane.b32.xlu0 %v10_v1, %s36_s0  ;;  %23 = vrot.lane.b32.xlu1 %v22_v2, %s37_s8  ;;  %v6_v4 = vld [vmem:[#allocation1] sm:$0x1]  }
   0xb   :  { %8 = vst.msk [vmem:[#allocation0] sm:$0x1] %vm7_vm0, %v6_v4  }
  0x12   :  { %17 = vrot.lane.b32.xlu0 %v16_v3, %s38_s9 }
  0x7c   :  { %v12_v5 = vpop.permute.xlu0 %11   ;;  %v24_v6 = vpop.permute.xlu1 %23  }
  0x7d   :  { %14 = vst.msk [vmem:[#allocation0] sm:$0x1] %vm13_vm1, %v12_v5  }
  0x84   :  { %v18_v7 = vpop.permute.xlu0 %17  }
  0x85   :  { %20 = vst.msk [vmem:[#allocation0] sm:$0x1] %vm19_vm2, %v18_v7  }
  0x86   :  { %26 = vst.msk [vmem:[#allocation0] sm:$0x1] %vm25_vm3, %v24_v6  }
  0x8d   :  { %v29_v8 = vld [vmem:[#allocation0] sm:$0x1] }
  0x8e   :  { %32 = vst [vmem:[%s56_s1] sm:$0x1] %v29_v8 }

// kernel: resblock_pallas.2
= control target key start
LH: loop header
LB: loop body
LE: loop exit
PB: predicated region body
PF: predicated region fallthrough
CT: control target
= control target key end

     0   :  { %s1192_s15 = smov 0   ;;  %s1194_s16 = smov 0   ;;  %s1412_s0 = inlined_call_operand.vmem [shape: bf16[2,9,9,16], index: 0, kind: input, shape index: {}, may-alias: {0,1}]   ;;  %s1413_s1 = inlined_call_operand.vmem [shape: bf16[2,9,9,16], index: 1, kind: input, shape index: {}, may-alias: {0,1}]   ;;  %s1414_s2 = inlined_call_operand.vmem [shape: bf16[2,2,16,16], index: 2, kind: input, shape index: {}]   ;;  %s1415_s3 = inlined_call_operand.vmem [shape: f32[1,16], index: 3, kind: input, shape index: {}]   ;;  %s1416_s4 = inlined_call_operand.vmem [shape: bf16[2,8,10,16], index: 4, kind: output, shape index: {}]  }
   0x1   :  { %s1196_s17 = smov 0  }
   0x2 LB: > { %s26_s18 = sadd.s32 1, %s1161_s16  ;;  %p1063_p0 = scmp.ge.s32.totalorder %s1165_s17, 1  ;;  %s1165_s17 = sphi %s1196_s17, %s14_s17   ;;  %s1161_s16 = sphi %s1194_s16, %s1424_s16   ;;  %s1157_s15 = sphi %s1192_s15, %s1423_s15  }
   0x3   : > { %p28_p1 = scmp.ge.s32.totalorder %s26_s18, 2  ;;  %p218_p2 = scmp.lt.s32.totalorder %s1165_s17, 3 }
   0x5   : > { %s1426_s18 = smov (%p28_p1, %s26_s18), 0  ;;  %p219_p3 = pnand %p1063_p0, %p218_p2 }
   0x6   : > { %p276_p4 = scmp.lt.s32.totalorder (!%p219_p3), %s1157_s15, 1 }
   0x7   : > { %222 = sbr.rel (%p219_p3) target bundleno = 247 (0xf7), region = 36 }
   0xc   : > { %v1113_v0 = vld [vmem:[%s1414_s2 + $0x10] sm:$0xff]  ;;  %v1111_v1 = vld [vmem:[%s1414_s2] sm:$0xff]  ;;  %v1112_v2 = vld [vmem:[%s1414_s2 + $0x8] sm:$0xff]  ;;  %s1428_s15 = smov (!%p276_p4, %s1157_s15), 1  ;;  %vm472_vm0 = vcmask 130048   ;;  %vm846_vm4 = vcmask 1040384  }
   0xd   : > { %v1114_v3 = vld [vmem:[%s1414_s2 + $0x18] sm:$0xff]  ;;  %615 = vmatpush.bf16.msra.mxu2 %v1113_v0  ;;  %559 = vmatpush.bf16.msra.mxu1 %v1111_v1  ;;  %s1115_s27 = smul.u32 72, %s1428_s15  ;;  %vm336_vm1 = vsmask.f32 3328  ;;  %vm337_vm2 = vsmask.f32 7440 }
   0xe   : > { %492 = vmatpush.bf16.msra.mxu0 %v1112_v2  ;;  %692 = vmatpush.bf16.msra.mxu3 %v1114_v3  ;;  %vm1249_vm3 = vmor %vm336_vm1, %vm337_vm2  ;;  %vm847_vm5 = vsmask.f32 256  ;;  %vm857_vm6 = vcmask 1044480   ;;  %vm858_vm7 = vsmask.f32 4352  ;;  %s1110_s11 = sshll.u32 %s1428_s15, 6 }
   0xf   : > { %s1230_s30 = scalar_lea.vmem %s1412_s0, %s1115_s27  ;;  %s1109_s5 = sadd.s32 64, %s1115_s27  ;;  %vm1319_vm8 = vmand %vm846_vm4, %vm847_vm5  ;;  %vm924_vm10 = vcmask 125952   ;;  %vm926_vm11 = vcmask 122880  }
  0x10   : > { %v318_v4 = vld [vmem:[%s1230_s30 + $0x8] sm:$0xf]  ;;  %v1234_v5 = vld [vmem:[%s1230_s30 + $0x10] sm:$0xf]  ;;  %v316_v6 = vld [vmem:[%s1230_s30] sm:$0xf]  ;;  %s301_s8 = scalar_lea.vmem %s1413_s1, %s1109_s5  ;;  %s1336_s14 = scalar_lea.vmem %s1416_s4, %s1110_s11 }
  0x11   : > { %v354_v7 = vshrl.u32 %v318_v4, 16  ;;  %v357_v8 = vshll.u32 %v318_v4, 16  ;;  %v368_v9 = vshrl.u32 %v1234_v5, 16  ;;  %v371_v10 = vshll.u32 %v1234_v5, 16  ;;  %v317_v11 = vld [vmem:[%s1230_s30 + $0x4] sm:$0x1]  ;;  %vm1323_vm9 = vmand %vm857_vm6, %vm858_vm7 }
  0x12   : > { %v523_v12 = vunpack.c.l.b16 %v318_v4  ;;  %v524_v13 = vunpack.c.l.b16 %v1234_v5  ;;  %v340_v14 = vshrl.u32 %v316_v6, 16  ;;  %v343_v15 = vshll.u32 %v316_v6, 16  ;;  %v319_v16 = vld [vmem:[%s1230_s30 + $0xc] sm:$0x1]  ;;  %v321_v17 = vld [vmem:[%s1230_s30 + $0x14] sm:$0x1] }
  0x13   : > { %v356_v18 = vrot.slane %v354_v7, 4  ;;  %v359_v19 = vrot.slane %v357_v8, 5  ;;  %v370_v20 = vrot.slane %v368_v9, 4  ;;  %v373_v21 = vrot.slane %v371_v10, 5  ;;  %v322_v22 = vld [vmem:[%s1230_s30 + $0x18] sm:$0xf] }
  0x14   : > { %v586_v23 = vpack.c.b16 %v524_v13, %v523_v12  ;;  %v342_v24 = vrot.slane %v340_v14, 4  ;;  %v345_v25 = vrot.slane %v343_v15, 5  ;;  %v522_v26 = vunpack.c.l.b16 %v316_v6  ;;  %v1254_v35 = vld [vmem:[%s1230_s30 + $0x20] sm:$0xf]  ;;  %v323_v48 = vld [vmem:[%s1230_s30 + $0x1c] sm:$0x1] }
  0x15   : > { %v349_v27 = vshll.u32 %v317_v11, 16  ;;  %v360_v28 = vor.u32 %v359_v19, %v356_v18  ;;  %v363_v29 = vshll.u32 %v319_v16, 16  ;;  %v374_v30 = vor.u32 %v373_v21, %v370_v20  ;;  %v325_v53 = vld [vmem:[%s1230_s30 + $0x24] sm:$0x1]  ;;  %v326_v7 = vld [vmem:[%s1230_s30 + $0x28] sm:$0xf] }
  0x16   : > { %1092 = vmatmul.msk.bf16.vlgmr.msra.gmra.mxu2 %vm472_vm0, %v586_v23  ;;  %v530_v31 = vpack.c.b16 %v523_v12, %v522_v26  ;;  %v346_v33 = vor.u32 %v345_v25, %v342_v24  ;;  %v377_v34 = vshll.u32 %v321_v17, 16  ;;  %v382_v36 = vshrl.u32 %v322_v22, 16  ;;  %v1272_v8 = vld [vmem:[%s1230_s30 + $0x30] sm:$0xf]  ;;  %v329_v23 = vld [vmem:[%s1230_s30 + $0x34] sm:$0x1] }
  0x17   : > { %v351_v37 = vrot.slane %v349_v27, 5  ;;  %v361_v38 = vrot.slane %v360_v28, 4  ;;  %v365_v39 = vrot.slane %v363_v29, 5  ;;  %v375_v40 = vrot.slane %v374_v30, 4 }
  0x18   : > { %1082 = vmatmul.msk.bf16.vlgmr.msra.gmra.mxu1 %vm472_vm0, %v530_v31  ;;  %v347_v41 = vrot.slane %v346_v33, 4  ;;  %v379_v42 = vrot.slane %v377_v34, 5  ;;  %v384_v43 = vrot.slane %v382_v36, 4  ;;  %v385_v44 = vshll.u32 %v322_v22, 16 }
  0x19   : > { %v366_v45 = vsel %vm1249_vm3, %v361_v38, %v365_v39  ;;  %v396_v46 = vshrl.u32 %v1254_v35, 16  ;;  %v399_v47 = vshll.u32 %v1254_v35, 16  ;;  %v391_v59 = vshll.u32 %v323_v48, 16  ;;  %v332_v38 = vld [vmem:[%s301_s8] sm:$0xf] }
  0x1a   : > { %v352_v49 = vsel %vm1249_vm3, %v347_v41, %v351_v37  ;;  %v455_v50 = vunpack.c.l.b16 %v366_v45  ;;  %v380_v51 = vsel %vm1249_vm3, %v375_v40, %v379_v42  ;;  %v387_v52 = vrot.slane %v385_v44, 5  ;;  %v330_v37 = vld [vmem:[%s1230_s30 + $0x38] sm:$0xf] }
  0x1b   : > { %v454_v54 = vunpack.c.l.b16 %v352_v49  ;;  %v456_v55 = vunpack.c.l.b16 %v380_v51  ;;  %v398_v56 = vrot.slane %v396_v46, 4  ;;  %v401_v57 = vrot.slane %v399_v47, 5 }
  0x1c   : > { %v388_v58 = vor.u32 %v387_v52, %v384_v43  ;;  %v405_v63 = vshll.u32 %v325_v53, 16  ;;  %v525_v0 = vunpack.c.l.b16 %v322_v22  ;;  %v526_v1 = vunpack.c.l.b16 %v1254_v35  ;;  %v327_v22 = vld [vmem:[%s1230_s30 + $0x2c] sm:$0x1]  ;;  %v333_v53 = vld [vmem:[%s301_s8 + $0x4] sm:$0x1] }
  0x1d   : > { %v462_v60 = vpack.c.b16 %v455_v50, %v454_v54  ;;  %v663_v61 = vpack.c.b16 %v456_v55, %v455_v50  ;;  %v402_v62 = vor.u32 %v401_v57, %v398_v56  ;;  %v393_v3 = vrot.slane %v391_v59, 5  ;;  %v331_v54 = vld [vmem:[%s1230_s30 + $0x3c] sm:$0x1] }
  0x1e   : > { %v389_v2 = vrot.slane %v388_v58, 4  ;;  %v407_v6 = vrot.slane %v405_v63, 5  ;;  %v587_v9 = vpack.c.b16 %v526_v1, %v525_v0  ;;  %v531_v10 = vpack.c.b16 %v525_v0, %v524_v13 }
  0x1f   : > { %1074 = vmatmul.msk.bf16.vlgmr.msra.gmra.mxu0 %vm472_vm0, %v462_v60  ;;  %1102 = vmatmul.msk.bf16.vlgmr.msra.gmra.mxu3 %vm472_vm0, %v663_v61  ;;  %v403_v4 = vrot.slane %v402_v62, 4  ;;  %v410_v11 = vshrl.u32 %v326_v7, 16  ;;  %v413_v12 = vshll.u32 %v326_v7, 16  ;;  %v424_v16 = vshrl.u32 %v1272_v8, 16 }
  0x20   : > { %v394_v14 = vsel %vm1249_vm3, %v389_v2, %v393_v3  ;;  %v427_v17 = vshll.u32 %v1272_v8, 16  ;;  %v419_v27 = vshll.u32 %v327_v22, 16  ;;  %v433_v29 = vshll.u32 %v329_v23, 16 }
  0x21   : > { %v408_v15 = vsel %vm1249_vm3, %v403_v4, %v407_v6  ;;  %v457_v18 = vunpack.c.l.b16 %v394_v14  ;;  %v412_v13 = vrot.slane %v410_v11, 4  ;;  %v415_v19 = vrot.slane %v413_v12, 5 }
  0x22   : > { %v458_v5 = vunpack.c.l.b16 %v408_v15  ;;  %v426_v20 = vrot.slane %v424_v16, 4  ;;  %v429_v21 = vrot.slane %v427_v17, 5  ;;  %v527_v30 = vunpack.c.l.b16 %v326_v7 }
  0x23   : > { %v463_v24 = vpack.c.b16 %v457_v18, %v456_v55  ;;  %v416_v26 = vor.u32 %v415_v19, %v412_v13  ;;  %v528_v31 = vunpack.c.l.b16 %v1272_v8  ;;  %v421_v34 = vrot.slane %v419_v27, 5 }
  0x24   : > { %v664_v25 = vpack.c.b16 %v458_v5, %v457_v18  ;;  %v430_v28 = vor.u32 %v429_v21, %v426_v20  ;;  %v435_v36 = vrot.slane %v433_v29, 5  ;;  %v532_v40 = vpack.c.b16 %v527_v30, %v526_v1 }
  0x25   : > { %v417_v33 = vrot.slane %v416_v26, 4  ;;  %v588_v39 = vpack.c.b16 %v528_v31, %v527_v30  ;;  %v438_v41 = vshrl.u32 %v330_v37, 16  ;;  %v441_v42 = vshll.u32 %v330_v37, 16 }
  0x26   : > { %1093 = vmatmul.msk.bf16.gmra.mxu2 %vm472_vm0, %v587_v9  ;;  %v431_v35 = vrot.slane %v430_v28, 4  ;;  %v646_v45 = vshrl.u32 %v332_v38, 16  ;;  %v649_v46 = vshll.u32 %v332_v38, 16  ;;  %v655_v57 = vshll.u32 %v333_v53, 16 }
  0x27   : > { %v422_v43 = vsel %vm1249_vm3, %v417_v33, %v421_v34  ;;  %v440_v49 = vrot.slane %v438_v41, 4  ;;  %v443_v50 = vrot.slane %v441_v42, 5  ;;  %v447_v59 = vshll.u32 %v331_v54, 16 }
  0x28   : > { %1083 = vmatmul.msk.bf16.gmra.mxu1 %vm472_vm0, %v531_v10  ;;  %v436_v44 = vsel %vm1249_vm3, %v431_v35, %v435_v36  ;;  %v459_v47 = vunpack.c.l.b16 %v422_v43  ;;  %v648_v51 = vrot.slane %v646_v45, 4  ;;  %v651_v52 = vrot.slane %v649_v46, 5 }
  0x29   : > { %v460_v48 = vunpack.c.l.b16 %v436_v44  ;;  %v444_v58 = vor.u32 %v443_v50, %v440_v49  ;;  %v529_v61 = vunpack.c.l.b16 %v330_v37  ;;  %v585_v62 = vunpack.c.l.b16 %v332_v38 }
  0x2a   : > { %v464_v55 = vpack.c.b16 %v459_v47, %v458_v5  ;;  %v652_v60 = vor.u32 %v651_v52, %v648_v51  ;;  %v449_v0 = vrot.slane %v447_v59, 5  ;;  %v657_v2 = vrot.slane %v655_v57, 5  ;;  %v1315_v5 = vld [vmem:[%s1415_s3] ss:$0 sm:$0xff] }
  0x2b   : > { %v665_v56 = vpack.c.b16 %v460_v48, %v459_v47  ;;  %v445_v63 = vrot.slane %v444_v58, 4  ;;  %v589_v3 = vpack.c.b16 %v585_v62, %v529_v61  ;;  %v533_v4 = vpack.c.b16 %v529_v61, %v528_v31 }
  0x2c   : > { %v653_v1 = vrot.slane %v652_v60, 4 }
  0x2d   : > { %v450_v6 = vsel %vm1249_vm3, %v445_v63, %v449_v0 }
  0x2e   : > { %v658_v7 = vsel %vm1249_vm3, %v653_v1, %v657_v2  ;;  %v461_v8 = vunpack.c.l.b16 %v450_v6 }
  0x2f   : > { %1075 = vmatmul.msk.bf16.gmra.mxu0 %vm472_vm0, %v463_v24  ;;  %1103 = vmatmul.msk.bf16.gmra.mxu3 %vm472_vm0, %v664_v25  ;;  %v662_v9 = vunpack.c.l.b16 %v658_v7 }
  0x30   : > { %v465_v10 = vpack.c.b16 %v461_v8, %v460_v48 }
  0x31   : > { %v666_v11 = vpack.c.b16 %v662_v9, %v461_v8 }
  0x36   : > { %1094 = vmatmul.msk.bf16.gmra.mxu2 %vm472_vm0, %v588_v39 }
  0x38   : > { %1084 = vmatmul.msk.bf16.gmra.mxu1 %vm472_vm0, %v532_v40 }
  0x3f   : > { %1076 = vmatmul.msk.bf16.gmra.mxu0 %vm472_vm0, %v464_v55  ;;  %1104 = vmatmul.msk.bf16.gmra.mxu3 %vm472_vm0, %v665_v56 }
  0x46   : > { %1095 = vmatmul.msk.bf16.gmra.mxu2 %vm472_vm0, %v589_v3 }
  0x48   : > { %1085 = vmatmul.msk.bf16.gmra.mxu1 %vm472_vm0, %v533_v4 }
  0x4f   : > { %1077 = vmatmul.msk.bf16.gmra.mxu0 %vm472_vm0, %v465_v10  ;;  %1105 = vmatmul.msk.bf16.gmra.mxu3 %vm472_vm0, %v666_v11 }
  0x95   : > { %v561_v12 = vpop.f32.mrf.mxu1 }
  0x99   : > { %v617_v14 = vpop.f32.mrf.mxu2 }
  0x9c   : > { %v494_v15 = vpop.f32.mrf.mxu0 }
  0x9d   : > { %v562_v16 = vadd.f32 %v561_v12, %v494_v15  ;;  %v563_v17 = vpop.f32.mrf.mxu1 }
  0x9f   : > { %v637_v18 = vadd.f32 %v617_v14, %v562_v16 }
  0xa1   : > { %v619_v32 = vpop.f32.mrf.mxu2 }
  0xa2   : > { %v694_v13 = vpop.f32.mrf.mxu3 }
  0xa3   : > { %v714_v19 = vadd.f32 %v694_v13, %v637_v18 }
  0xa4   : > { %v496_v20 = vpop.f32.mrf.mxu0 }
  0xa5   : > { %v726_v21 = vadd.f32 %v1315_v5, %v714_v19  ;;  %v564_v22 = vadd.f32 %v563_v17, %v496_v20  ;;  %v566_v23 = vpop.f32.mrf.mxu1 }
  0xa7   : > { %v734_v24 = vmul.f32 0.2, %v726_v21  ;;  %v638_v27 = vadd.f32 %v619_v32, %v564_v22 }
  0xa9   : > { %v742_v25 = vmax.f32 %v726_v21, %v734_v24  ;;  %v622_v26 = vpop.f32.mrf.mxu2 }
  0xaa   : > { %v696_v28 = vpop.f32.mrf.mxu3 }
  0xab   : > { %v750_v29 = vpack.c.bf16 %v742_v25, %v742_v25  ;;  %v715_v30 = vadd.f32 %v696_v28, %v638_v27 }
  0xac   : > { %v499_v31 = vpop.f32.mrf.mxu0 }
  0xad   : > { %v766_v33 = vunpack.c.l.b16 %v750_v29  ;;  %v727_v34 = vadd.f32 %v1315_v5, %v715_v30  ;;  %v567_v35 = vadd.f32 %v566_v23, %v499_v31  ;;  %v568_v36 = vpop.f32.mrf.mxu1 }
  0xaf   : > { %v774_v37 = vpack.c.b16 %v766_v33, %v766_v33  ;;  %v735_v38 = vmul.f32 0.2, %v727_v34  ;;  %v639_v39 = vadd.f32 %v622_v26, %v567_v35 }
  0xb1   : > { %v783_v40 = vshrl.u32 %v774_v37, 16  ;;  %v743_v41 = vmax.f32 %v727_v34, %v735_v38  ;;  %v624_v42 = vpop.f32.mrf.mxu2  ;;  %v786_v45 = vshll.u32 %v774_v37, 16 }
  0xb2   : > { %v699_v43 = vpop.f32.mrf.mxu3 }
  0xb3   : > { %v785_v44 = vrot.slane %v783_v40, 7  ;;  %v751_v46 = vpack.c.bf16 %v743_v41, %v743_v41  ;;  %v716_v47 = vadd.f32 %v699_v43, %v639_v39 }
  0xb4   : > { %v501_v49 = vpop.f32.mrf.mxu0 }
  0xb5   : > { %v788_v50 = vor.u32 %v786_v45, %v785_v44  ;;  %v767_v52 = vunpack.c.l.b16 %v751_v46  ;;  %v728_v53 = vadd.f32 %v1315_v5, %v716_v47  ;;  %v569_v54 = vadd.f32 %v568_v36, %v501_v49  ;;  %v571_v55 = vpop.f32.mrf.mxu1 }
  0xb7   : > { %v849_v56 = vsel %vm1319_vm8, 0, %v788_v50  ;;  %v775_v57 = vpack.c.b16 %v767_v52, %v767_v52  ;;  %v736_v58 = vmul.f32 0.2, %v728_v53  ;;  %v640_v63 = vadd.f32 %v624_v42, %v569_v54 }
  0xb8   : > { %v860_v59 = vsel %vm1323_vm9, %v849_v56, 0 }
  0xb9   : > { %v876_v60 = vunpack.c.l.b16 %v860_v59  ;;  %v877_v61 = vunpack.c.h.b16 %v860_v59  ;;  %v790_v62 = vshrl.u32 %v775_v57, 16  ;;  %v793_v0 = vshll.u32 %v775_v57, 16  ;;  %v627_v2 = vpop.f32.mrf.mxu2 }
  0xba   : > { %v744_v1 = vmax.f32 %v728_v53, %v736_v58  ;;  %v701_v3 = vpop.f32.mrf.mxu3 }
  0xbb   : > { %v892_v4 = vpack.c.b16 %v876_v60, %v876_v60  ;;  %v893_v6 = vpack.c.b16 %v877_v61, %v877_v61  ;;  %v792_v7 = vrot.slane %v790_v62, 7  ;;  %v717_v8 = vadd.f32 %v701_v3, %v640_v63 }
  0xbc   : > { %v752_v9 = vpack.c.bf16 %v744_v1, %v744_v1  ;;  %v504_v10 = vpop.f32.mrf.mxu0 }
  0xbd   : > { %925 = vst.msk [vmem:[%s1336_s14] sm:$0xf] %vm924_vm10, %v892_v4  ;;  %v795_v11 = vor.u32 %v793_v0, %v792_v7  ;;  %v729_v12 = vadd.f32 %v1315_v5, %v717_v8  ;;  %v572_v14 = vadd.f32 %v571_v55, %v504_v10  ;;  %v573_v19 = vpop.f32.mrf.mxu1 }
  0xbe   : > { %927 = vst.msk [vmem:[%s1336_s14 + $0x4] sm:$0x1] %vm926_vm11, %v893_v6  ;;  %v768_v15 = vunpack.c.l.b16 %v752_v9 }
  0xbf   : > { %v850_v16 = vsel %vm1319_vm8, 0, %v795_v11  ;;  %v737_v17 = vmul.f32 0.2, %v729_v12  ;;  %v641_v18 = vadd.f32 %v627_v2, %v572_v14 }
  0xc0   : > { %v861_v32 = vsel %vm1323_vm9, %v850_v16, 0  ;;  %v776_v13 = vpack.c.b16 %v768_v15, %v768_v15 }
  0xc1   : > { %v878_v20 = vunpack.c.l.b16 %v861_v32  ;;  %v879_v21 = vunpack.c.h.b16 %v861_v32  ;;  %v745_v22 = vmax.f32 %v729_v12, %v737_v17  ;;  %v629_v31 = vpop.f32.mrf.mxu2 }
  0xc2   : > { %v797_v23 = vshrl.u32 %v776_v13, 16  ;;  %v704_v24 = vpop.f32.mrf.mxu3  ;;  %v800_v30 = vshll.u32 %v776_v13, 16 }
  0xc3   : > { %v894_v25 = vpack.c.b16 %v878_v20, %v878_v20  ;;  %v895_v26 = vpack.c.b16 %v879_v21, %v879_v21  ;;  %v753_v27 = vpack.c.bf16 %v745_v22, %v745_v22  ;;  %v718_v28 = vadd.f32 %v704_v24, %v641_v18 }
  0xc4   : > { %v799_v29 = vrot.slane %v797_v23, 7  ;;  %v506_v33 = vpop.f32.mrf.mxu0 }
  0xc5   : > { %928 = vst.msk [vmem:[%s1336_s14 + $0x8] sm:$0xf] %vm924_vm10, %v894_v25  ;;  %v769_v34 = vunpack.c.l.b16 %v753_v27  ;;  %v730_v35 = vadd.f32 %v1315_v5, %v718_v28  ;;  %v574_v36 = vadd.f32 %v573_v19, %v506_v33  ;;  %v576_v47 = vpop.f32.mrf.mxu1 }
  0xc6   : > { %929 = vst.msk [vmem:[%s1336_s14 + $0xc] sm:$0x1] %vm926_vm11, %v895_v26  ;;  %v802_v37 = vor.u32 %v800_v30, %v799_v29 }
  0xc7   : > { %v777_v38 = vpack.c.b16 %v769_v34, %v769_v34  ;;  %v738_v39 = vmul.f32 0.2, %v730_v35  ;;  %v642_v44 = vadd.f32 %v629_v31, %v574_v36 }
  0xc8   : > { %v851_v40 = vsel %vm1319_vm8, 0, %v802_v37 }
  0xc9   : > { %v862_v41 = vsel %vm1323_vm9, %v851_v40, 0  ;;  %v804_v42 = vshrl.u32 %v777_v38, 16  ;;  %v746_v43 = vmax.f32 %v730_v35, %v738_v39  ;;  %v807_v52 = vshll.u32 %v777_v38, 16  ;;  %v632_v62 = vpop.f32.mrf.mxu2 }
  0xca   : > { %v880_v45 = vunpack.c.l.b16 %v862_v41  ;;  %v881_v46 = vunpack.c.h.b16 %v862_v41  ;;  %v706_v49 = vpop.f32.mrf.mxu3 }
  0xcb   : > { %v806_v50 = vrot.slane %v804_v42, 7  ;;  %v754_v53 = vpack.c.bf16 %v746_v43, %v746_v43  ;;  %v719_v54 = vadd.f32 %v706_v49, %v642_v44 }
  0xcc   : > { %v896_v55 = vpack.c.b16 %v880_v45, %v880_v45  ;;  %v897_v56 = vpack.c.b16 %v881_v46, %v881_v46  ;;  %v509_v57 = vpop.f32.mrf.mxu0 }
  0xcd   : > { %v809_v58 = vor.u32 %v807_v52, %v806_v50  ;;  %v770_v59 = vunpack.c.l.b16 %v754_v53  ;;  %v731_v60 = vadd.f32 %v1315_v5, %v719_v54  ;;  %v577_v61 = vadd.f32 %v576_v47, %v509_v57  ;;  %v578_v17 = vpop.f32.mrf.mxu1 }
  0xce   : > { %930 = vst.msk [vmem:[%s1336_s14 + $0x10] sm:$0xf] %vm924_vm10, %v896_v55 }
  0xcf   : > { %931 = vst.msk [vmem:[%s1336_s14 + $0x14] sm:$0x1] %vm926_vm11, %v897_v56  ;;  %v852_v63 = vsel %vm1319_vm8, 0, %v809_v58  ;;  %v778_v0 = vpack.c.b16 %v770_v59, %v770_v59  ;;  %v739_v1 = vmul.f32 0.2, %v731_v60  ;;  %v643_v2 = vadd.f32 %v632_v62, %v577_v61 }
  0xd0   : > { %v863_v3 = vsel %vm1323_vm9, %v852_v63, 0 }
  0xd1   : > { %v882_v4 = vunpack.c.l.b16 %v863_v3  ;;  %v883_v6 = vunpack.c.h.b16 %v863_v3  ;;  %v811_v7 = vshrl.u32 %v778_v0, 16  ;;  %v814_v8 = vshll.u32 %v778_v0, 16  ;;  %v634_v25 = vpop.f32.mrf.mxu2 }
  0xd2   : > { %v747_v9 = vmax.f32 %v731_v60, %v739_v1  ;;  %v709_v10 = vpop.f32.mrf.mxu3 }
  0xd3   : > { %v898_v11 = vpack.c.b16 %v882_v4, %v882_v4  ;;  %v899_v12 = vpack.c.b16 %v883_v6, %v883_v6  ;;  %v813_v14 = vrot.slane %v811_v7, 7  ;;  %v720_v15 = vadd.f32 %v709_v10, %v643_v2 }
  0xd4   : > { %v755_v16 = vpack.c.bf16 %v747_v9, %v747_v9  ;;  %v511_v18 = vpop.f32.mrf.mxu0 }
  0xd5   : > { %932 = vst.msk [vmem:[%s1336_s14 + $0x18] sm:$0xf] %vm924_vm10, %v898_v11  ;;  %v816_v32 = vor.u32 %v814_v8, %v813_v14  ;;  %v732_v13 = vadd.f32 %v1315_v5, %v720_v15  ;;  %v579_v19 = vadd.f32 %v578_v17, %v511_v18 }
  0xd6   : > { %933 = vst.msk [vmem:[%s1336_s14 + $0x1c] sm:$0x1] %vm926_vm11, %v899_v12  ;;  %v771_v20 = vunpack.c.l.b16 %v755_v16 }
  0xd7   : > { %v853_v21 = vsel %vm1319_vm8, 0, %v816_v32  ;;  %v740_v22 = vmul.f32 0.2, %v732_v13  ;;  %v644_v29 = vadd.f32 %v634_v25, %v579_v19 }
  0xd8   : > { %v864_v23 = vsel %vm1323_vm9, %v853_v21, 0  ;;  %v779_v24 = vpack.c.b16 %v771_v20, %v771_v20 }
  0xd9   : > { %v884_v26 = vunpack.c.l.b16 %v864_v23  ;;  %v885_v27 = vunpack.c.h.b16 %v864_v23  ;;  %v748_v28 = vmax.f32 %v732_v13, %v740_v22 }
  0xda   : > { %v818_v30 = vshrl.u32 %v779_v24, 16  ;;  %v711_v31 = vpop.f32.mrf.mxu3  ;;  %v821_v38 = vshll.u32 %v779_v24, 16 }
  0xdb   : > { %v900_v33 = vpack.c.b16 %v884_v26, %v884_v26  ;;  %v901_v34 = vpack.c.b16 %v885_v27, %v885_v27  ;;  %v756_v35 = vpack.c.bf16 %v748_v28, %v748_v28  ;;  %v721_v36 = vadd.f32 %v711_v31, %v644_v29 }
  0xdc   : > { %v820_v37 = vrot.slane %v818_v30, 7 }
  0xdd   : > { %934 = vst.msk [vmem:[%s1336_s14 + $0x20] sm:$0xf] %vm924_vm10, %v900_v33  ;;  %v772_v39 = vunpack.c.l.b16 %v756_v35  ;;  %v733_v40 = vadd.f32 %v1315_v5, %v721_v36 }
  0xde   : > { %935 = vst.msk [vmem:[%s1336_s14 + $0x24] sm:$0x1] %vm926_vm11, %v901_v34  ;;  %v823_v41 = vor.u32 %v821_v38, %v820_v37 }
  0xdf   : > { %v780_v42 = vpack.c.b16 %v772_v39, %v772_v39  ;;  %v741_v43 = vmul.f32 0.2, %v733_v40 }
  0xe0   : > { %v854_v44 = vsel %vm1319_vm8, 0, %v823_v41 }
  0xe1   : > { %v865_v45 = vsel %vm1323_vm9, %v854_v44, 0  ;;  %v825_v46 = vshrl.u32 %v780_v42, 16  ;;  %v749_v47 = vmax.f32 %v733_v40, %v741_v43  ;;  %v828_v53 = vshll.u32 %v780_v42, 16 }
  0xe2   : > { %v886_v49 = vunpack.c.l.b16 %v865_v45  ;;  %v887_v50 = vunpack.c.h.b16 %v865_v45 }
  0xe3   : > { %v827_v52 = vrot.slane %v825_v46, 7  ;;  %v757_v5 = vpack.c.bf16 %v749_v47, %v749_v47 }
  0xe4   : > { %v902_v54 = vpack.c.b16 %v886_v49, %v886_v49  ;;  %v903_v55 = vpack.c.b16 %v887_v50, %v887_v50 }
  0xe5   : > { %v830_v56 = vor.u32 %v828_v53, %v827_v52  ;;  %v773_v57 = vunpack.c.l.b16 %v757_v5 }
  0xe6   : > { %936 = vst.msk [vmem:[%s1336_s14 + $0x28] sm:$0xf] %vm924_vm10, %v902_v54 }
  0xe7   : > { %937 = vst.msk [vmem:[%s1336_s14 + $0x2c] sm:$0x1] %vm926_vm11, %v903_v55  ;;  %v855_v58 = vsel %vm1319_vm8, 0, %v830_v56  ;;  %v781_v59 = vpack.c.b16 %v773_v57, %v773_v57 }
  0xe8   : > { %v866_v60 = vsel %vm1323_vm9, %v855_v58, 0 }
  0xe9   : > { %v888_v61 = vunpack.c.l.b16 %v866_v60  ;;  %v889_v62 = vunpack.c.h.b16 %v866_v60  ;;  %v832_v63 = vshrl.u32 %v781_v59, 16  ;;  %v835_v3 = vshll.u32 %v781_v59, 16 }
  0xeb   : > { %v904_v0 = vpack.c.b16 %v888_v61, %v888_v61  ;;  %v905_v1 = vpack.c.b16 %v889_v62, %v889_v62  ;;  %v834_v2 = vrot.slane %v832_v63, 7 }
  0xed   : > { %938 = vst.msk [vmem:[%s1336_s14 + $0x30] sm:$0xf] %vm924_vm10, %v904_v0  ;;  %v837_v4 = vor.u32 %v835_v3, %v834_v2 }
  0xee   : > { %939 = vst.msk [vmem:[%s1336_s14 + $0x34] sm:$0x1] %vm926_vm11, %v905_v1 }
  0xef   : > { %v856_v6 = vsel %vm1319_vm8, 0, %v837_v4 }
  0xf0   : > { %v867_v7 = vsel %vm1323_vm9, %v856_v6, 0 }
  0xf1   : > { %v890_v8 = vunpack.c.l.b16 %v867_v7  ;;  %v891_v9 = vunpack.c.h.b16 %v867_v7 }
  0xf3   : > { %v906_v10 = vpack.c.b16 %v890_v8, %v890_v8  ;;  %v907_v11 = vpack.c.b16 %v891_v9, %v891_v9 }
  0xf5   : > { %940 = vst.msk [vmem:[%s1336_s14 + $0x38] sm:$0xf] %vm924_vm10, %v906_v10 }
  0xf6   : > { %941 = vst.msk [vmem:[%s1336_s14 + $0x3c] sm:$0x1] %vm926_vm11, %v907_v11 }
  0xf7 PF: > { %s14_s17 = sadd.s32 1, %s1165_s17   ;;  %s1423_s15 = smov %s1161_s16 }
  0xf8   : > { %p11_p5 = scmp.ge.s32.totalorder %s14_s17, 4   ;;  %s1424_s16 = smov %s1426_s18 }
  0xfa   :  { %13 = sbr.rel (!%p11_p5) target bundleno = 2 (0x2), region = 72 }

// kernel: resblock_pallas.3
= control target key start
LH: loop header
LB: loop body
LE: loop exit
PB: predicated region body
PF: predicated region fallthrough
CT: control target
= control target key end

     0   :  { %s2271_s26 = smov 0   ;;  %s2273_s2 = smov 0   ;;  %s2832_s0 = inlined_call_operand.vmem [shape: bf16[2,8,10,16], index: 0, kind: input, shape index: {}, may-alias: {0,1,2}]   ;;  %s2833_s1 = inlined_call_operand.vmem [shape: bf16[2,8,10,16], index: 1, kind: input, shape index: {}, may-alias: {0,1,2}]   ;;  %s2834_s2 = inlined_call_operand.vmem [shape: bf16[2,8,10,16], index: 2, kind: input, shape index: {}, may-alias: {0,1,2}]   ;;  %s2835_s3 = inlined_call_operand.vmem [shape: bf16[2,9,9,16], index: 3, kind: input, shape index: {}, may-alias: {3,4}]   ;;  %s2836_s4 = inlined_call_operand.vmem [shape: bf16[2,9,9,16], index: 4, kind: input, shape index: {}, may-alias: {3,4}]   ;;  %s2837_s5 = inlined_call_operand.vmem [shape: bf16[3,3,16,8], index: 5, kind: input, shape index: {}]   ;;  %s2838_s6 = inlined_call_operand.vmem [shape: bf16[2,2,16,8], index: 6, kind: input, shape index: {}]   ;;  %s2839_s7 = inlined_call_operand.vmem [shape: f32[1,8], index: 7, kind: input, shape index: {}]   ;;  %s2840_s8 = inlined_call_operand.vmem [shape: bf16[2,8,8,8], index: 8, kind: output, shape index: {}]  }
   0x1   :  { %s2275_s27 = smov 0  }
   0x2 LB: > { %s30_s28 = sadd.s32 1, %s2219_s2  ;;  %p2000_p0 = scmp.ge.s32.totalorder %s2223_s27, 1  ;;  %s2223_s27 = sphi %s2275_s27, %s18_s27   ;;  %s2219_s2 = sphi %s2273_s2, %s2846_s2   ;;  %s2215_s26 = sphi %s2271_s26, %s2845_s26  }
   0x3   : > { %p32_p1 = scmp.ge.s32.totalorder %s30_s28, 2  ;;  %p400_p2 = scmp.lt.s32.totalorder %s2223_s27, 3 }
   0x5   : > { %s2848_s28 = smov (%p32_p1, %s30_s28), 0  ;;  %p401_p3 = pnand %p2000_p0, %p400_p2 }
   0x6   : > { %p496_p4 = scmp.lt.s32.totalorder (!%p401_p3), %s2215_s26, 1 }
   0x7   : > { %404 = sbr.rel (%p401_p3) target bundleno = 379 (0x17b), region = 52 }
   0xc   : > { %v2157_v0 = vld [vmem:[%s2837_s5 + $0x8] sm:$0xff]  ;;  %v2158_v1 = vld [vmem:[%s2837_s5 + $0x10] sm:$0xff]  ;;  %s2850_s26 = smov (!%p496_p4, %s2215_s26), 1  ;;  %v2159_v2 = vld [vmem:[%s2837_s5 + $0x18] sm:$0xff]  ;;  %v2225_v5 = vmov 0   ;;  %vm755_vm2 = vcmask 130048  }
   0xd   : > { %2169 = vmatpush.bf16.msra.mxu1 %v2157_v0  ;;  %2170 = vmatpush.bf16.msra.mxu2 %v2157_v0  ;;  %v2156_v3 = vld [vmem:[%s2837_s5] sm:$0xff]  ;;  %s2149_s17 = sshll.u32 %s2850_s26, 6  ;;  %v2308_v6 = vrot.slane %v2225_v5, 4  ;;  %v2311_v7 = vrot.slane %v2225_v5, 5  ;;  %vm619_vm0 = vsmask.f32 3328 }
   0xe   : > { %v2160_v4 = vld [vmem:[%s2837_s5 + $0x20] sm:$0xff]  ;;  %2171 = vmatpush.bf16.msra.mxu3 %v2157_v0  ;;  %775 = vmatpush.bf16.msra.mxu0 %v2157_v0  ;;  %s2316_s20 = scalar_lea.vmem %s2832_s0, %s2149_s17  ;;  %vm620_vm1 = vsmask.f32 7440  ;;  %vm872_vm4 = vcmask 1042432   ;;  %vm873_vm5 = vcmask 1046532   ;;  %s2172_s17 = smul.u32 72, %s2850_s26 }
   0xf   : > { %v2319_v8 = vld [vmem:[%s2316_s20 + $0x8] sm:$0xf]  ;;  %v2322_v9 = vld [vmem:[%s2316_s20 + $0xc] sm:$0x1]  ;;  %v2325_v10 = vld [vmem:[%s2316_s20 + $0x10] sm:$0xf]  ;;  %v629_v20 = vor.u32 %v2311_v7, %v2308_v6 }
  0x10   : > { %v2328_v11 = vld [vmem:[%s2316_s20 + $0x14] sm:$0x1]  ;;  %v651_v12 = vshrl.u32 %v2319_v8, 16  ;;  %v654_v13 = vshll.u32 %v2319_v8, 16  ;;  %v660_v14 = vshll.u32 %v2322_v9, 16  ;;  %v665_v15 = vshrl.u32 %v2325_v10, 16  ;;  %vm2360_vm3 = vmor %vm619_vm0, %vm620_vm1 }
  0x11   : > { %947 = vmatpush.bf16.msrb.mxu2 %v2158_v1  ;;  %842 = vmatpush.bf16.msrb.mxu1 %v2156_v3  ;;  %v668_v16 = vshll.u32 %v2325_v10, 16  ;;  %v674_v17 = vshll.u32 %v2328_v11, 16  ;;  %v2337_v18 = vld [vmem:[%s2316_s20 + $0x18] sm:$0xf]  ;;  %v2340_v19 = vld [vmem:[%s2316_s20 + $0x1c] sm:$0x1]  ;;  %vm2430_vm6 = vmor %vm872_vm4, %vm873_vm5 }
  0x12   : > { %1011 = vmatpush.bf16.msrb.mxu3 %v2159_v2  ;;  %1088 = vmatpush.bf16.msrb.mxu0 %v2160_v4  ;;  %v653_v21 = vrot.slane %v651_v12, 4  ;;  %v656_v22 = vrot.slane %v654_v13, 5  ;;  %v662_v23 = vrot.slane %v660_v14, 5  ;;  %v667_v24 = vrot.slane %v665_v15, 4  ;;  %v2345_v25 = vld [vmem:[%s2316_s20 + $0x20] sm:$0xf] }
  0x13   : > { %v670_v26 = vrot.slane %v668_v16, 5  ;;  %v676_v27 = vrot.slane %v674_v17, 5  ;;  %v2348_v28 = vld [vmem:[%s2316_s20 + $0x24] sm:$0x1]  ;;  %v679_v29 = vshrl.u32 %v2337_v18, 16  ;;  %v682_v30 = vshll.u32 %v2337_v18, 16 }
  0x14   : > { %v657_v31 = vor.u32 %v656_v22, %v653_v21  ;;  %v688_v32 = vshll.u32 %v2340_v19, 16  ;;  %v693_v33 = vshrl.u32 %v2345_v25, 16  ;;  %v696_v34 = vshll.u32 %v2345_v25, 16  ;;  %v2356_v35 = vld [vmem:[%s2316_s20 + $0x28] sm:$0xf]  ;;  %s2154_s21 = sadd.s32 64, %s2172_s17 }
  0x15   : > { %v671_v37 = vor.u32 %v670_v26, %v667_v24  ;;  %v681_v38 = vrot.slane %v679_v29, 4  ;;  %v684_v39 = vrot.slane %v682_v30, 5  ;;  %v702_v40 = vshll.u32 %v2348_v28, 16  ;;  %v2366_v41 = vld [vmem:[%s2316_s20 + $0x2c] sm:$0x1]  ;;  %v2162_v29 = vld [vmem:[%s2837_s5 + $0x30] sm:$0xff]  ;;  %s2703_s24 = scalar_lea.vmem %s2836_s4, %s2154_s21 }
  0x16   : > { %v658_v42 = vrot.slane %v657_v31, 4  ;;  %v690_v43 = vrot.slane %v688_v32, 5  ;;  %v695_v44 = vrot.slane %v693_v33, 4  ;;  %v698_v45 = vrot.slane %v696_v34, 5  ;;  %v2372_v52 = vld [vmem:[%s2316_s20 + $0x30] sm:$0xf] }
  0x17   : > { %v672_v46 = vrot.slane %v671_v37, 4  ;;  %v685_v47 = vor.u32 %v684_v39, %v681_v38  ;;  %v704_v48 = vrot.slane %v702_v40, 5  ;;  %v707_v49 = vshrl.u32 %v2356_v35, 16  ;;  %v2375_v53 = vld [vmem:[%s2316_s20 + $0x34] sm:$0x1]  ;;  %v2161_v6 = vld [vmem:[%s2837_s5 + $0x28] sm:$0xff] }
  0x18   : > { %v663_v50 = vsel %vm2360_vm3, %v658_v42, %v662_v23  ;;  %v699_v51 = vor.u32 %v698_v45, %v695_v44  ;;  %v710_v54 = vshll.u32 %v2356_v35, 16  ;;  %v716_v55 = vshll.u32 %v2366_v41, 16  ;;  %v2391_v4 = vld [vmem:[%s2316_s20] sm:$0xf]  ;;  %v602_v16 = vld [vmem:[%s2316_s20 + $0x4] sm:$0x1] }
  0x19   : > { %v677_v56 = vsel %vm2360_vm3, %v672_v46, %v676_v27  ;;  %v2381_v57 = vunpack.c.l.b16 %v663_v50  ;;  %v686_v58 = vrot.slane %v685_v47, 4  ;;  %v709_v59 = vrot.slane %v707_v49, 4  ;;  %s2155_s29 = sshll.u32 %s2850_s26, 5 }
  0x1a   : > { %v2383_v60 = vunpack.c.l.b16 %v677_v56  ;;  %v700_v61 = vrot.slane %v699_v51, 4  ;;  %v712_v62 = vrot.slane %v710_v54, 5  ;;  %v718_v63 = vrot.slane %v716_v55, 5  ;;  %v2163_v56 = vld [vmem:[%s2837_s5 + $0x38] sm:$0xff]  ;;  %s2784_s10 = scalar_lea.vmem %s2840_s8, %s2155_s29 }
  0x1b   : > { %v691_v0 = vsel %vm2360_vm3, %v686_v58, %v690_v43  ;;  %v721_v1 = vshrl.u32 %v2372_v52, 16  ;;  %v724_v2 = vshll.u32 %v2372_v52, 16  ;;  %v730_v3 = vshll.u32 %v2375_v53, 16 }
  0x1c   : > { %v2398_v12 = vpack.c.b16 %v2383_v60, %v2381_v57  ;;  %v705_v13 = vsel %vm2360_vm3, %v700_v61, %v704_v48  ;;  %v2402_v14 = vunpack.c.l.b16 %v691_v0  ;;  %v713_v15 = vor.u32 %v712_v62, %v709_v59 }
  0x1d   : > { %v2405_v17 = vunpack.c.l.b16 %v705_v13  ;;  %v723_v21 = vrot.slane %v721_v1, 4  ;;  %v726_v22 = vrot.slane %v724_v2, 5  ;;  %v630_v24 = vrot.slane %v629_v20, 4 }
  0x1e   : > { %2018 = vmatmul.msk.bf16.vlgmr.msra.gmra.mxu1 %vm755_vm2, %v2398_v12  ;;  %v714_v23 = vrot.slane %v713_v15, 4  ;;  %v637_v26 = vshrl.u32 %v2391_v4, 16  ;;  %v640_v27 = vshll.u32 %v2391_v4, 16  ;;  %v732_v32 = vrot.slane %v730_v3, 5 }
  0x1f   : > { %v2416_v30 = vpack.c.b16 %v2405_v17, %v2402_v14  ;;  %v727_v31 = vor.u32 %v726_v22, %v723_v21  ;;  %v646_v33 = vshll.u32 %v602_v16, 16  ;;  %1156 = vmatpush.bf16.msra.mxu1 %v2161_v6  ;;  %v635_v39 = vsel %vm2360_vm3, %v630_v24, %v2311_v7 }
  0x20   : > { %v719_v34 = vsel %vm2360_vm3, %v714_v23, %v718_v63  ;;  %v639_v20 = vrot.slane %v637_v26, 4  ;;  %v642_v37 = vrot.slane %v640_v27, 5  ;;  %v881_v40 = vrot.slane %v602_v16, 5  ;;  %v2505_v27 = vld [vmem:[%s2316_s20 + $0x38] sm:$0xf] }
  0x21   : > { %2019 = vmatmul.msk.bf16.vlgmr.msra.gmra.mxu2 %vm755_vm2, %v2416_v30  ;;  %v728_v38 = vrot.slane %v727_v31, 4  ;;  %v2029_v42 = vrot.slane %v2225_v5, 9  ;;  %v2426_v43 = vunpack.c.l.b16 %v719_v34  ;;  %v648_v45 = vrot.slane %v646_v33, 5  ;;  %v2517_v34 = vld [vmem:[%s2316_s20 + $0x3c] sm:$0x1]  ;;  %s2597_s20 = scalar_lea.vmem %s2835_s3, %s2172_s17 }
  0x22   : > { %v643_v44 = vor.u32 %v642_v37, %v639_v20  ;;  %v2030_v47 = vrot.slane %v2391_v4, 9  ;;  %1208 = vmatpush.bf16.msra.mxu2 %v2162_v29  ;;  %v2439_v51 = vunpack.c.l.b16 %v635_v39  ;;  %v2442_v54 = vunpack.c.l.b16 %v2225_v5 }
  0x23   : > { %v733_v48 = vsel %vm2360_vm3, %v728_v38, %v732_v32  ;;  %v878_v55 = vsel %vm2430_vm6, %v2029_v42, %v2311_v7  ;;  %v806_v61 = vunpack.c.l.b16 %v2391_v4  ;;  %v2164_v7 = vld [vmem:[%s2837_s5 + $0x40] sm:$0xff]  ;;  %v807_v4 = vunpack.c.l.b16 %v2319_v8 }
  0x24   : > { %v2437_v49 = vunpack.c.l.b16 %v733_v48  ;;  %v644_v50 = vrot.slane %v643_v44, 4  ;;  %v2459_v5 = vsel %vm2430_vm6, %v2030_v47, %v881_v40  ;;  %v2467_v0 = vunpack.c.l.b16 %v878_v55 }
  0x25   : > { %v911_v1 = vunpack.c.l.b16 %v2459_v5  ;;  %v813_v2 = vpack.c.b16 %v806_v61, %v2442_v54  ;;  %v2031_v6 = vrot.slane %v2319_v8, 9  ;;  %v885_v13 = vrot.slane %v2322_v9, 5 }
  0x26   : > { %v2452_v58 = vpack.c.b16 %v2437_v49, %v2426_v43  ;;  %v649_v59 = vsel %vm2360_vm3, %v644_v50, %v648_v45  ;;  %v2032_v15 = vrot.slane %v2325_v10, 9  ;;  %v889_v16 = vrot.slane %v2328_v11, 5 }
  0x27   : > { %v738_v62 = vunpack.c.l.b16 %v649_v59  ;;  %v918_v3 = vpack.c.b16 %v911_v1, %v2467_v0  ;;  %v982_v21 = vpack.c.b16 %v807_v4, %v806_v61  ;;  %v808_v22 = vunpack.c.l.b16 %v2325_v10 }
  0x28   : > { %2020 = vmatmul.msk.bf16.vlgmr.msra.gmra.mxu3 %vm755_vm2, %v2452_v58  ;;  %v2485_v23 = vsel %vm2430_vm6, %v2031_v6, %v885_v13  ;;  %v2489_v24 = vsel %vm2430_vm6, %v2032_v15, %v889_v16  ;;  %v1045_v29 = vshll.u32 %v2505_v27, 16  ;;  %v809_v31 = vunpack.c.l.b16 %v2337_v18 }
  0x29   : > { %v745_v63 = vpack.c.b16 %v738_v62, %v2439_v51  ;;  %1273 = vmatpush.bf16.msra.mxu3 %v2163_v56  ;;  %v1059_v8 = vpack.c.b16 %v2381_v57, %v738_v62  ;;  %v912_v9 = vunpack.c.l.b16 %v2485_v23  ;;  %v913_v11 = vunpack.c.l.b16 %v2489_v24  ;;  %v2602_v23 = vld [vmem:[%s2597_s20 + $0x8] sm:$0xf] }
  0x2a   : > { %v2495_v26 = vpack.c.b16 %v808_v22, %v807_v4  ;;  %v1042_v57 = vshrl.u32 %v2505_v27, 16  ;;  %v2033_v32 = vrot.slane %v2337_v18, 9  ;;  %v893_v33 = vrot.slane %v2340_v19, 5 }
  0x2b   : > { %2017 = vmatmul.msk.bf16.vlgmr.msra.gmra.mxu0 %vm755_vm2, %v745_v63  ;;  %v2502_v10 = vpack.c.b16 %v913_v11, %v912_v9  ;;  %v2034_v37 = vrot.slane %v2345_v25, 9  ;;  %v897_v38 = vrot.slane %v2348_v28, 5  ;;  %v1047_v39 = vrot.slane %v1045_v29, 5 }
  0x2c   : > { %1329 = vmatpush.bf16.msra.mxu0 %v2164_v7  ;;  %v1044_v20 = vrot.slane %v1042_v57, 4  ;;  %v1051_v40 = vshll.u32 %v2517_v34, 16  ;;  %v983_v42 = vpack.c.b16 %v809_v31, %v808_v22  ;;  %v810_v47 = vunpack.c.l.b16 %v2345_v25 }
  0x2d   : > { %v894_v18 = vsel %vm2430_vm6, %v2033_v32, %v893_v33  ;;  %v898_v19 = vsel %vm2430_vm6, %v2034_v37, %v897_v38  ;;  %v1060_v50 = vpack.c.b16 %v2402_v14, %v2383_v60  ;;  %v811_v60 = vunpack.c.l.b16 %v2356_v35  ;;  %v1390_v37 = vld [vmem:[%s2597_s20 + $0xc] sm:$0x1] }
  0x2e   : > { %2025 = vmatmul.msk.bf16.vlgmr.msrb.gmra.mxu1 %vm755_vm2, %v813_v2  ;;  %v1048_v44 = vor.u32 %v1047_v39, %v1044_v20  ;;  %v1053_v45 = vrot.slane %v1051_v40, 5  ;;  %v914_v55 = vunpack.c.l.b16 %v894_v18  ;;  %v915_v56 = vunpack.c.l.b16 %v898_v19  ;;  %v1388_v20 = vld [vmem:[%s2597_s20 + $0x4] sm:$0x1] }
  0x2f   : > { %v815_v25 = vpack.c.b16 %v810_v47, %v809_v31  ;;  %v2035_v14 = vrot.slane %v2356_v35, 9  ;;  %v901_v7 = vrot.slane %v2366_v41, 5  ;;  %v2036_v63 = vrot.slane %v2372_v52, 9  ;;  %v2166_v35 = vld [vmem:[%s2838_s6 + $0x8] sm:$0xff] }
  0x30   : > { %v1049_v48 = vrot.slane %v1048_v44, 4  ;;  %v920_v62 = vpack.c.b16 %v915_v56, %v914_v55  ;;  %v905_v2 = vrot.slane %v2375_v53, 5  ;;  %v812_v4 = vunpack.c.l.b16 %v2372_v52  ;;  %v2167_v52 = vld [vmem:[%s2838_s6 + $0x10] sm:$0xff] }
  0x31   : > { %2043 = vmatmul.msk.bf16.vlgmr.msrb.gmra.mxu2 %vm755_vm2, %v918_v3  ;;  %v984_v3 = vpack.c.b16 %v811_v60, %v810_v47  ;;  %v1061_v13 = vpack.c.b16 %v2426_v43, %v2405_v17  ;;  %v2165_v17 = vld [vmem:[%s2838_s6] sm:$0xff]  ;;  %v2168_v43 = vld [vmem:[%s2838_s6 + $0x18] sm:$0xff]  ;;  %v1128_v57 = vpack.c.b16 %v914_v55, %v913_v11  ;;  %v1492_v40 = vshll.u32 %v1388_v20, 16 }
  0x32   : > { %v1054_v28 = vsel %vm2360_vm3, %v1049_v48, %v1053_v45  ;;  %v906_v6 = vsel %vm2430_vm6, %v2036_v63, %v905_v2  ;;  %v816_v15 = vpack.c.b16 %v812_v4, %v811_v60  ;;  %1634 = vmatpush.bf16.msrb.mxu2 %v2166_v35  ;;  %1452 = vmatpush.bf16.msrb.mxu1 %v2165_v17  ;;  %v1506_v44 = vshll.u32 %v1390_v37, 16  ;;  %v2617_v45 = vld [vmem:[%s2597_s20 + $0x10] sm:$0xf]  ;;  %v1394_v17 = vld [vmem:[%s2597_s20 + $0x1c] sm:$0x1] }
  0x33   : > { %v2532_v59 = vunpack.c.l.b16 %v1054_v28  ;;  %v917_v53 = vunpack.c.l.b16 %v906_v6  ;;  %v1514_v47 = vshll.u32 %v2617_v45, 16  ;;  %v1494_v19 = vrot.slane %v1492_v40, 5  ;;  %v2626_v28 = vld [vmem:[%s2597_s20 + $0x18] sm:$0xf] }
  0x34   : > { %v1416_v63 = vunpack.c.l.b16 %v2602_v23  ;;  %v1525_v2 = vshrl.u32 %v2626_v28, 16  ;;  %vm1813_vm7 = vcmask 60416  }
  0x35   : > { %v1062_v61 = vpack.c.b16 %v2532_v59, %v2437_v49  ;;  %v902_v49 = vsel %vm2430_vm6, %v2035_v14, %v901_v7  ;;  %v1256_v55 = vpack.c.b16 %v2439_v51, %v2532_v59  ;;  %v1392_v14 = vld [vmem:[%s2597_s20 + $0x14] sm:$0x1] }
  0x36   : > { %v916_v41 = vunpack.c.l.b16 %v902_v49  ;;  %v1520_v49 = vshll.u32 %v1392_v14, 16 }
  0x38   : > { %2053 = vmatmul.msk.bf16.vlgmr.msrb.gmra.mxu3 %vm755_vm2, %v982_v21  ;;  %v921_v16 = vpack.c.b16 %v917_v53, %v916_v41  ;;  %v981_v21 = vunpack.c.l.b16 %v2505_v27  ;;  %v1129_v5 = vpack.c.b16 %v916_v41, %v915_v56  ;;  %v1527_v41 = vrot.slane %v1525_v2, 4 }
  0x39   : > { %1698 = vmatpush.bf16.msrb.mxu3 %v2167_v52 }
  0x3a   : > { %v985_v22 = vpack.c.b16 %v981_v21, %v812_v4  ;;  %v1191_v38 = vpack.c.b16 %v2442_v54, %v981_v21  ;;  %v1522_v21 = vrot.slane %v1520_v49, 5 }
  0x3b   : > { %2063 = vmatmul.msk.bf16.vlgmr.msrb.gmra.mxu0 %vm755_vm2, %v1059_v8  ;;  %v1127_v8 = vpack.c.b16 %v912_v9, %v911_v1  ;;  %v1121_v1 = vrot.slane %v2517_v34, 5 }
  0x3c   : > { %1775 = vmatpush.bf16.msrb.mxu0 %v2168_v43 }
  0x3e   : > { %2026 = vmatmul.msk.bf16.gmra.mxu1 %vm755_vm2, %v2495_v26 }
  0x41   : > { %2044 = vmatmul.msk.bf16.gmra.mxu2 %vm755_vm2, %v2502_v10 }
  0x48   : > { %2054 = vmatmul.msk.bf16.gmra.mxu3 %vm755_vm2, %v983_v42 }
  0x4b   : > { %2064 = vmatmul.msk.bf16.gmra.mxu0 %vm755_vm2, %v1060_v50  ;;  %v1508_v50 = vrot.slane %v1506_v44, 5 }
  0x4e   : > { %2027 = vmatmul.msk.bf16.gmra.mxu1 %vm755_vm2, %v815_v25 }
  0x51   : > { %2045 = vmatmul.msk.bf16.gmra.mxu2 %vm755_vm2, %v920_v62 }
  0x58   : > { %2055 = vmatmul.msk.bf16.gmra.mxu3 %vm755_vm2, %v984_v3  ;;  %v1528_v3 = vshll.u32 %v2626_v28, 16 }
  0x5b   : > { %2065 = vmatmul.msk.bf16.gmra.mxu0 %vm755_vm2, %v1061_v13 }
  0x5e   : > { %2028 = vmatmul.msk.bf16.gmra.mxu1 %vm755_vm2, %v816_v15 }
  0x61   : > { %2046 = vmatmul.msk.bf16.gmra.mxu2 %vm755_vm2, %v921_v16 }
  0x68   : > { %2056 = vmatmul.msk.bf16.gmra.mxu3 %vm755_vm2, %v985_v22 }
  0x6b   : > { %2066 = vmatmul.msk.bf16.gmra.mxu0 %vm755_vm2, %v1062_v61  ;;  %v1516_v61 = vrot.slane %v1514_v47, 5 }
  0x6e   : > { %2074 = vmatmul.msk.bf16.vlgmr.msra.gmra.mxu1 %vm755_vm2, %v1127_v8  ;;  %v2649_v8 = vld [vmem:[%s2597_s20 + $0x20] sm:$0xf] }
  0x6f   : > { %v1419_v49 = vunpack.c.l.b16 %v2649_v8 }
  0x71   : > { %2084 = vmatmul.msk.bf16.vlgmr.msra.gmra.mxu2 %vm755_vm2, %v2495_v26  ;;  %v1497_v26 = vshrl.u32 %v2602_v23, 16 }
  0x73   : > { %v1499_v32 = vrot.slane %v1497_v26, 4  ;;  %v2659_v26 = vld [vmem:[%s2597_s20 + $0x28] sm:$0xf] }
  0x74   : > { %v1556_v40 = vshll.u32 %v2659_v26, 16 }
  0x78   : > { %2094 = vmatmul.msk.bf16.vlgmr.msra.gmra.mxu3 %vm755_vm2, %v2398_v12  ;;  %v2067_v12 = vrot.slane %v2505_v27, 9 }
  0x7a   : > { %v1122_v24 = vsel %vm2430_vm6, %v2067_v12, %v1121_v1  ;;  %v1417_v1 = vunpack.c.l.b16 %v2617_v45 }
  0x7b   : > { %2105 = vmatmul.msk.bf16.vlgmr.msra.gmra.mxu0 %vm755_vm2, %v2502_v10  ;;  %v1500_v10 = vshll.u32 %v2602_v23, 16  ;;  %v1126_v27 = vunpack.c.l.b16 %v1122_v24  ;;  %v1539_v23 = vshrl.u32 %v2649_v8, 16  ;;  %v1542_v24 = vshll.u32 %v2649_v8, 16 }
  0x7d   : > { %v1502_v33 = vrot.slane %v1500_v10, 5  ;;  %v1130_v34 = vpack.c.b16 %v1126_v27, %v917_v53  ;;  %v1312_v51 = vpack.c.b16 %v2467_v0, %v1126_v27  ;;  %v1530_v53 = vrot.slane %v1528_v3, 5 }
  0x7e   : > { %2075 = vmatmul.msk.bf16.gmra.mxu1 %vm755_vm2, %v1128_v57  ;;  %v1544_v20 = vrot.slane %v1542_v24, 5  ;;  %v1400_v24 = vld [vmem:[%s2597_s20 + $0x34] sm:$0x1] }
  0x7f   : > { %v1503_v42 = vor.u32 %v1502_v33, %v1499_v32  ;;  %v1531_v57 = vor.u32 %v1530_v53, %v1527_v41 }
  0x81   : > { %2085 = vmatmul.msk.bf16.gmra.mxu2 %vm755_vm2, %v815_v25  ;;  %v1504_v48 = vrot.slane %v1503_v42, 4  ;;  %v1418_v42 = vunpack.c.l.b16 %v2626_v28 }
  0x83   : > { %v1509_v60 = vsel %vm2360_vm3, %v1504_v48, %v1508_v50  ;;  %v1558_v50 = vrot.slane %v1556_v40, 5  ;;  %v1402_v40 = vld [vmem:[%s2597_s20 + $0x3c] sm:$0x1] }
  0x84   : > { %v1598_v13 = vunpack.c.l.b16 %v1509_v60 }
  0x88   : > { %2095 = vmatmul.msk.bf16.gmra.mxu3 %vm755_vm2, %v2416_v30  ;;  %v1387_v30 = vld [vmem:[%s2597_s20] sm:$0xf] }
  0x89   : > { %v1483_v9 = vshrl.u32 %v1387_v30, 16  ;;  %v1486_v11 = vshll.u32 %v1387_v30, 16  ;;  %v1415_v7 = vunpack.c.l.b16 %v1387_v30 }
  0x8b   : > { %2106 = vmatmul.msk.bf16.gmra.mxu0 %vm755_vm2, %v920_v62  ;;  %v1485_v29 = vrot.slane %v1483_v9, 4  ;;  %v1488_v31 = vrot.slane %v1486_v11, 5  ;;  %v1423_v35 = vpack.c.b16 %v1416_v63, %v1415_v7  ;;  %v1532_v9 = vrot.slane %v1531_v57, 4 }
  0x8d   : > { %v1489_v39 = vor.u32 %v1488_v31, %v1485_v29  ;;  %v1669_v31 = vpack.c.b16 %v1417_v1, %v1416_v63 }
  0x8e   : > { %2076 = vmatmul.msk.bf16.gmra.mxu1 %vm755_vm2, %v1129_v5  ;;  %v1534_v5 = vshll.u32 %v1394_v17, 16 }
  0x8f   : > { %v1490_v18 = vrot.slane %v1489_v39, 4  ;;  %v1553_v39 = vshrl.u32 %v2659_v26, 16 }
  0x90   : > { %v1536_v11 = vrot.slane %v1534_v5, 5 }
  0x91   : > { %2086 = vmatmul.msk.bf16.gmra.mxu2 %vm755_vm2, %v816_v15  ;;  %v1495_v62 = vsel %vm2360_vm3, %v1490_v18, %v1494_v19  ;;  %v1555_v48 = vrot.slane %v1553_v39, 4 }
  0x92   : > { %v1597_v6 = vunpack.c.l.b16 %v1495_v62  ;;  %v1537_v44 = vsel %vm2360_vm3, %v1532_v9, %v1536_v11  ;;  %v1420_v9 = vunpack.c.l.b16 %v2659_v26 }
  0x93   : > { %v1600_v19 = vunpack.c.l.b16 %v1537_v44 }
  0x94   : > { %v1605_v22 = vpack.c.b16 %v1598_v13, %v1597_v6 }
  0x98   : > { %2096 = vmatmul.msk.bf16.gmra.mxu3 %vm755_vm2, %v2452_v58  ;;  %v1511_v58 = vshrl.u32 %v2617_v45, 16 }
  0x9a   : > { %v1513_v25 = vrot.slane %v1511_v58, 4 }
  0x9b   : > { %2107 = vmatmul.msk.bf16.gmra.mxu0 %vm755_vm2, %v921_v16  ;;  %v2613_v46 = vpop.f32.mrf.mxu1 }
  0x9c   : > { %v1517_v4 = vor.u32 %v1516_v61, %v1513_v25  ;;  %v1398_v25 = vld [vmem:[%s2597_s20 + $0x2c] sm:$0x1] }
  0x9e   : > { %2077 = vmatmul.msk.bf16.gmra.mxu1 %vm755_vm2, %v1130_v34  ;;  %v1518_v16 = vrot.slane %v1517_v4, 4  ;;  %v1541_v34 = vrot.slane %v1539_v23, 4  ;;  %v2674_v4 = vld [vmem:[%s2597_s20 + $0x30] sm:$0xf] }
  0x9f   : > { %v1570_v41 = vshll.u32 %v2674_v4, 16 }
  0xa0   : > { %v1523_v30 = vsel %vm2360_vm3, %v1518_v16, %v1522_v21  ;;  %v1545_v47 = vor.u32 %v1544_v20, %v1541_v34  ;;  %v1425_v20 = vpack.c.b16 %v1420_v9, %v1419_v49 }
  0xa1   : > { %2087 = vmatmul.msk.bf16.gmra.mxu2 %vm755_vm2, %v1191_v38  ;;  %v1599_v27 = vunpack.c.l.b16 %v1523_v30  ;;  %v1396_v38 = vld [vmem:[%s2597_s20 + $0x24] sm:$0x1] }
  0xa2   : > { %v1548_v18 = vshll.u32 %v1396_v38, 16  ;;  %v1546_v7 = vrot.slane %v1545_v47, 4 }
  0xa3   : > { %v2623_v54 = vpop.f32.mrf.mxu1  ;;  %v1746_v45 = vpack.c.b16 %v1599_v27, %v1598_v13  ;;  %v1606_v3 = vpack.c.b16 %v1600_v19, %v1599_v27 }
  0xa4   : > { %v2630_v56 = vpop.f32.mrf.mxu2  ;;  %v1550_v63 = vrot.slane %v1548_v18, 5 }
  0xa8   : > { %v777_v59 = vpop.f32.mrf.mxu0  ;;  %2097 = vmatmul.msk.bf16.gmra.mxu3 %vm755_vm2, %v1256_v55  ;;  %v1424_v55 = vpack.c.b16 %v1418_v42, %v1417_v1  ;;  %v1572_v1 = vrot.slane %v1570_v41, 5  ;;  %v1404_v41 = vld [vmem:[%s2703_s24 + $0x4] sm:$0x1] }
  0xab   : > { %2108 = vmatmul.msk.bf16.gmra.mxu0 %vm755_vm2, %v1312_v51  ;;  %v2643_v15 = vpop.f32.mrf.mxu3  ;;  %v844_v52 = vpop.f32.mrf.mxu1  ;;  %v1559_v51 = vor.u32 %v1558_v50, %v1555_v48  ;;  %v1403_v48 = vld [vmem:[%s2703_s24] sm:$0xf] }
  0xac   : > { %v2646_v43 = vpop.f32.mrf.mxu2  ;;  %v845_v0 = vadd.f32 %v844_v52, %v777_v59  ;;  %v1562_v59 = vshll.u32 %v1398_v25, 16 }
  0xad   : > { %v1560_v53 = vrot.slane %v1559_v51, 4 }
  0xae   : > { %2113 = vmatmul.msk.bf16.vlgmr.msrb.gmra.mxu1 %vm755_vm2, %v1423_v35  ;;  %v1551_v35 = vsel %vm2360_vm3, %v1546_v7, %v1550_v63  ;;  %v1564_v52 = vrot.slane %v1562_v59, 5 }
  0xaf   : > { %v1601_v16 = vunpack.c.l.b16 %v1551_v35 }
  0xb0   : > { %v779_v12 = vpop.f32.mrf.mxu0  ;;  %v1565_v23 = vsel %vm2360_vm3, %v1560_v53, %v1564_v52 }
  0xb1   : > { %2123 = vmatmul.msk.bf16.vlgmr.msrb.gmra.mxu2 %vm755_vm2, %v1605_v22  ;;  %v2686_v22 = vld [vmem:[%s2597_s20 + $0x38] sm:$0xf]  ;;  %v1602_v34 = vunpack.c.l.b16 %v1565_v23 }
  0xb2   : > { %v1581_v11 = vshrl.u32 %v2686_v22, 16  ;;  %v1584_v27 = vshll.u32 %v2686_v22, 16  ;;  %v1422_v53 = vunpack.c.l.b16 %v2686_v22 }
  0xb3   : > { %v2661_v10 = vpop.f32.mrf.mxu3  ;;  %v846_v29 = vpop.f32.mrf.mxu1 }
  0xb4   : > { %v949_v32 = vpop.f32.mrf.mxu2  ;;  %v847_v33 = vadd.f32 %v846_v29, %v779_v12  ;;  %v1586_v38 = vrot.slane %v1584_v27, 5 }
  0xb5   : > { %v969_v37 = vadd.f32 %v949_v32, %v845_v0  ;;  %v1670_v0 = vpack.c.b16 %v1419_v49, %v1418_v42 }
  0xb8   : > { %v1090_v58 = vpop.f32.mrf.mxu0  ;;  %2133 = vmatmul.msk.bf16.vlgmr.msrb.gmra.mxu3 %vm755_vm2, %v1669_v31  ;;  %v1747_v31 = vpack.c.b16 %v1601_v16, %v1600_v19  ;;  %v1607_v19 = vpack.c.b16 %v1602_v34, %v1601_v16 }
  0xbb   : > { %2143 = vmatmul.msk.bf16.vlgmr.msrb.gmra.mxu0 %vm755_vm2, %v1746_v45  ;;  %v1013_v61 = vpop.f32.mrf.mxu3  ;;  %v849_v62 = vpop.f32.mrf.mxu1 }
  0xbc   : > { %v1033_v28 = vadd.f32 %v1013_v61, %v969_v37  ;;  %v951_v60 = vpop.f32.mrf.mxu2  ;;  %v850_v14 = vadd.f32 %v849_v62, %v2613_v46  ;;  %v1567_v46 = vshrl.u32 %v2674_v4, 16  ;;  %v1583_v37 = vrot.slane %v1581_v11, 4 }
  0xbd   : > { %v970_v2 = vadd.f32 %v951_v60, %v847_v33  ;;  %v1576_v33 = vshll.u32 %v1400_v24, 16  ;;  %v1421_v61 = vunpack.c.l.b16 %v2674_v4  ;;  %v1729_v60 = vshrl.u32 %v1403_v48, 16 }
  0xbe   : > { %2114 = vmatmul.msk.bf16.gmra.mxu1 %vm755_vm2, %v1424_v55  ;;  %v2678_v6 = vadd.f32 %v1090_v58, %v1033_v28  ;;  %v1569_v12 = vrot.slane %v1567_v46, 4  ;;  %v1587_v50 = vor.u32 %v1586_v38, %v1583_v37  ;;  %v1590_v55 = vshll.u32 %v1402_v40, 16 }
  0xbf   : > { %v1578_v47 = vrot.slane %v1576_v33, 5  ;;  %v1731_v4 = vrot.slane %v1729_v60, 4 }
  0xc0   : > { %v1092_v13 = vpop.f32.mrf.mxu0  ;;  %v1573_v32 = vor.u32 %v1572_v1, %v1569_v12  ;;  %v1592_v7 = vrot.slane %v1590_v55, 5 }
  0xc1   : > { %2124 = vmatmul.msk.bf16.gmra.mxu2 %vm755_vm2, %v1606_v3 }
  0xc2   : > { %v1574_v58 = vrot.slane %v1573_v32, 4 }
  0xc3   : > { %v1015_v17 = vpop.f32.mrf.mxu3  ;;  %v851_v21 = vpop.f32.mrf.mxu1 }
  0xc4   : > { %v1034_v8 = vadd.f32 %v1015_v17, %v970_v2  ;;  %v954_v57 = vpop.f32.mrf.mxu2  ;;  %v852_v5 = vadd.f32 %v851_v21, %v2623_v54  ;;  %v1579_v28 = vsel %vm2360_vm3, %v1574_v58, %v1578_v47  ;;  %v1671_v2 = vpack.c.b16 %v1421_v61, %v1420_v9 }
  0xc5   : > { %v971_v30 = vadd.f32 %v954_v57, %v850_v14  ;;  %v1588_v14 = vrot.slane %v1587_v50, 4  ;;  %v1603_v3 = vunpack.c.l.b16 %v1579_v28  ;;  %v1738_v21 = vshll.u32 %v1404_v41, 16 }
  0xc6   : > { %v2695_v29 = vadd.f32 %v1092_v13, %v1034_v8 }
  0xc7   : > { %v1593_v52 = vsel %vm2360_vm3, %v1588_v14, %v1592_v7  ;;  %v1740_v24 = vrot.slane %v1738_v21, 5 }
  0xc8   : > { %v1095_v54 = vpop.f32.mrf.mxu0  ;;  %2134 = vmatmul.msk.bf16.gmra.mxu3 %vm755_vm2, %v1670_v0  ;;  %v1748_v0 = vpack.c.b16 %v1603_v3, %v1602_v34  ;;  %v1604_v57 = vunpack.c.l.b16 %v1593_v52 }
  0xca   : > { %v1608_v11 = vpack.c.b16 %v1604_v57, %v1603_v3 }
  0xcb   : > { %2144 = vmatmul.msk.bf16.gmra.mxu0 %vm755_vm2, %v1747_v31  ;;  %v1018_v26 = vpop.f32.mrf.mxu3  ;;  %v854_v39 = vpop.f32.mrf.mxu1 }
  0xcc   : > { %v1035_v42 = vadd.f32 %v1018_v26, %v971_v30  ;;  %v956_v44 = vpop.f32.mrf.mxu2  ;;  %v855_v45 = vadd.f32 %v854_v39, %v2630_v56  ;;  %v1732_v56 = vshll.u32 %v1403_v48, 16 }
  0xcd   : > { %v972_v18 = vadd.f32 %v956_v44, %v852_v5  ;;  %v1426_v5 = vpack.c.b16 %v1422_v53, %v1421_v61 }
  0xce   : > { %2115 = vmatmul.msk.bf16.gmra.mxu1 %vm755_vm2, %v1425_v20  ;;  %v2710_v25 = vadd.f32 %v1095_v54, %v1035_v42  ;;  %v1734_v35 = vrot.slane %v1732_v56, 5  ;;  %v1668_v54 = vunpack.c.l.b16 %v1403_v48 }
  0xd0   : > { %v1097_v62 = vpop.f32.mrf.mxu0  ;;  %v1735_v8 = vor.u32 %v1734_v35, %v1731_v4 }
  0xd1   : > { %2125 = vmatmul.msk.bf16.gmra.mxu2 %vm755_vm2, %v1607_v19 }
  0xd2   : > { %v1736_v23 = vrot.slane %v1735_v8, 4 }
  0xd3   : > { %v1020_v63 = vpop.f32.mrf.mxu3  ;;  %v856_v51 = vpop.f32.mrf.mxu1 }
  0xd4   : > { %v1036_v59 = vadd.f32 %v1020_v63, %v972_v18  ;;  %v959_v49 = vpop.f32.mrf.mxu2  ;;  %v857_v13 = vadd.f32 %v856_v51, %v2646_v43  ;;  %v1741_v32 = vsel %vm2360_vm3, %v1736_v23, %v1740_v24 }
  0xd5   : > { %v973_v46 = vadd.f32 %v959_v49, %v855_v45  ;;  %v1745_v34 = vunpack.c.l.b16 %v1741_v32 }
  0xd6   : > { %v2721_v17 = vadd.f32 %v1097_v62, %v1036_v59 }
  0xd7   : > { %v1749_v42 = vpack.c.b16 %v1745_v34, %v1604_v57 }
  0xd8   : > { %v1100_v16 = vpop.f32.mrf.mxu0  ;;  %2135 = vmatmul.msk.bf16.gmra.mxu3 %vm755_vm2, %v1671_v2 }
  0xdb   : > { %2145 = vmatmul.msk.bf16.gmra.mxu0 %vm755_vm2, %v1748_v0  ;;  %v1023_v43 = vpop.f32.mrf.mxu3  ;;  %v859_v12 = vpop.f32.mrf.mxu1 }
  0xdc   : > { %v1037_v1 = vadd.f32 %v1023_v43, %v973_v46  ;;  %v961_v30 = vpop.f32.mrf.mxu2  ;;  %v860_v22 = vadd.f32 %v859_v12, %v2643_v15  ;;  %v1672_v15 = vpack.c.b16 %v1668_v54, %v1422_v53 }
  0xdd   : > { %v974_v9 = vadd.f32 %v961_v30, %v857_v13 }
  0xde   : > { %2116 = vmatmul.msk.bf16.gmra.mxu1 %vm755_vm2, %v1426_v5  ;;  %v2727_v27 = vadd.f32 %v1100_v16, %v1037_v1 }
  0xe0   : > { %v1102_v31 = vpop.f32.mrf.mxu0 }
  0xe1   : > { %2126 = vmatmul.msk.bf16.gmra.mxu2 %vm755_vm2, %v1608_v11 }
  0xe3   : > { %v1025_v33 = vpop.f32.mrf.mxu3  ;;  %v861_v20 = vpop.f32.mrf.mxu1 }
  0xe4   : > { %v1038_v37 = vadd.f32 %v1025_v33, %v974_v9  ;;  %v964_v38 = vpop.f32.mrf.mxu2  ;;  %v862_v26 = vadd.f32 %v861_v20, %v2661_v10 }
  0xe5   : > { %v975_v39 = vadd.f32 %v964_v38, %v860_v22 }
  0xe6   : > { %v2733_v40 = vadd.f32 %v1102_v31, %v1038_v37 }
  0xe8   : > { %v1105_v44 = vpop.f32.mrf.mxu0  ;;  %2136 = vmatmul.msk.bf16.gmra.mxu3 %vm755_vm2, %v1672_v15 }
  0xeb   : > { %2146 = vmatmul.msk.bf16.gmra.mxu0 %vm755_vm2, %v1749_v42  ;;  %v1028_v36 = vpop.f32.mrf.mxu3  ;;  %v1158_v45 = vpop.f32.mrf.mxu1 }
  0xec   : > { %v1039_v58 = vadd.f32 %v1028_v36, %v975_v39  ;;  %v966_v47 = vpop.f32.mrf.mxu2  ;;  %v1178_v21 = vadd.f32 %v1158_v45, %v2678_v6  ;;  %v2764_v6 = vld [vmem:[%s2839_s7] ss:$0 sm:$0xff] }
  0xed   : > { %v976_v18 = vadd.f32 %v966_v47, %v862_v26 }
  0xee   : > { %v2737_v19 = vadd.f32 %v1105_v44, %v1039_v58 }
  0xf0   : > { %v1107_v48 = vpop.f32.mrf.mxu0 }
  0xf3   : > { %v1030_v50 = vpop.f32.mrf.mxu3  ;;  %v1160_v55 = vpop.f32.mrf.mxu1 }
  0xf4   : > { %v1040_v10 = vadd.f32 %v1030_v50, %v976_v18  ;;  %v1210_v61 = vpop.f32.mrf.mxu2  ;;  %v1179_v30 = vadd.f32 %v1160_v55, %v2695_v29 }
  0xf5   : > { %v1230_v8 = vadd.f32 %v1210_v61, %v1178_v21 }
  0xf6   : > { %v2739_v62 = vadd.f32 %v1107_v48, %v1040_v10 }
  0xf8   : > { %v1331_v28 = vpop.f32.mrf.mxu0 }
  0xfb   : > { %v1275_v60 = vpop.f32.mrf.mxu3  ;;  %v1163_v56 = vpop.f32.mrf.mxu1 }
  0xfc   : > { %v1212_v14 = vpop.f32.mrf.mxu2  ;;  %v1295_v12 = vadd.f32 %v1275_v60, %v1230_v8  ;;  %v1180_v33 = vadd.f32 %v1163_v56, %v2710_v25 }
  0xfd   : > { %v1231_v23 = vadd.f32 %v1212_v14, %v1179_v30 }
  0xfe   : > { %v1351_v22 = vadd.f32 %v1331_v28, %v1295_v12 }
 0x100   : > { %v1333_v7 = vpop.f32.mrf.mxu0  ;;  %v1363_v32 = vadd.f32 %v2764_v6, %v1351_v22 }
 0x102   : > { %v1371_v37 = vmul.f32 0.2, %v1363_v32 }
 0x103   : > { %v1277_v63 = vpop.f32.mrf.mxu3  ;;  %v1165_v2 = vpop.f32.mrf.mxu1 }
 0x104   : > { %v1215_v3 = vpop.f32.mrf.mxu2  ;;  %v1296_v31 = vadd.f32 %v1277_v63, %v1231_v23  ;;  %v1379_v39 = vmax.f32 %v1363_v32, %v1371_v37  ;;  %v1181_v36 = vadd.f32 %v1165_v2, %v2721_v17 }
 0x105   : > { %v1232_v29 = vadd.f32 %v1215_v3, %v1180_v33 }
 0x106   : > { %v1352_v34 = vadd.f32 %v1333_v7, %v1296_v31 }
 0x108   : > { %v1336_v51 = vpop.f32.mrf.mxu0  ;;  %v1364_v44 = vadd.f32 %v2764_v6, %v1352_v34 }
 0x10a   : > { %v1372_v48 = vmul.f32 0.2, %v1364_v44 }
 0x10b   : > { %v1280_v59 = vpop.f32.mrf.mxu3  ;;  %v1168_v49 = vpop.f32.mrf.mxu1 }
 0x10c   : > { %v1217_v13 = vpop.f32.mrf.mxu2  ;;  %v1297_v15 = vadd.f32 %v1280_v59, %v1232_v29  ;;  %v1380_v60 = vmax.f32 %v1364_v44, %v1372_v48  ;;  %v1182_v14 = vadd.f32 %v1168_v49, %v2727_v27 }
 0x10d   : > { %v1233_v47 = vadd.f32 %v1217_v13, %v1181_v36 }
 0x10e   : > { %v1353_v58 = vadd.f32 %v1336_v51, %v1297_v15 }
 0x110   : > { %v1338_v4 = vpop.f32.mrf.mxu0  ;;  %v1365_v55 = vadd.f32 %v2764_v6, %v1353_v58 }
 0x112   : > { %v1373_v17 = vmul.f32 0.2, %v1365_v55 }
 0x113   : > { %v1282_v35 = vpop.f32.mrf.mxu3  ;;  %v2741_v46 = vpop.f32.mrf.mxu1 }
 0x114   : > { %v1220_v41 = vpop.f32.mrf.mxu2  ;;  %v1298_v61 = vadd.f32 %v1282_v35, %v1233_v47  ;;  %v1381_v8 = vmax.f32 %v1365_v55, %v1373_v17  ;;  %v1183_v22 = vadd.f32 %v2741_v46, %v2733_v40 }
 0x115   : > { %v1234_v3 = vadd.f32 %v1220_v41, %v1182_v14 }
 0x116   : > { %v1354_v2 = vadd.f32 %v1338_v4, %v1298_v61 }
 0x118   : > { %v2743_v53 = vpop.f32.mrf.mxu0  ;;  %v1366_v30 = vadd.f32 %v2764_v6, %v1354_v2 }
 0x11a   : > { %v1374_v29 = vmul.f32 0.2, %v1366_v30 }
 0x11b   : > { %v1285_v52 = vpop.f32.mrf.mxu3  ;;  %v2745_v0 = vpop.f32.mrf.mxu1 }
 0x11c   : > { %v2747_v16 = vpop.f32.mrf.mxu2  ;;  %v1299_v49 = vadd.f32 %v1285_v52, %v1234_v3  ;;  %v1382_v15 = vmax.f32 %v1366_v30, %v1374_v29 }
 0x11d   : > { %v1235_v41 = vadd.f32 %v2747_v16, %v1183_v22  ;;  %v1184_v16 = vadd.f32 %v2745_v0, %v2737_v19 }
 0x120   : > { %v2750_v57 = vpop.f32.mrf.mxu0 }
 0x123   : > { %v2752_v5 = vpop.f32.mrf.mxu3  ;;  %v2754_v43 = vpop.f32.mrf.mxu1 }
 0x124   : > { %v2756_v1 = vpop.f32.mrf.mxu2  ;;  %v1300_v52 = vadd.f32 %v2752_v5, %v1235_v41 }
 0x125   : > { %v1236_v44 = vadd.f32 %v2756_v1, %v1184_v16 }
 0x128   : > { %v2759_v24 = vpop.f32.mrf.mxu0 }
 0x12b   : > { %v2766_v9 = vpop.f32.mrf.mxu3  ;;  %v1454_v11 = vpop.f32.mrf.mxu1 }
 0x12c   : > { %v2768_v54 = vpop.f32.mrf.mxu2  ;;  %v1474_v45 = vadd.f32 %v1454_v11, %v1379_v39  ;;  %v1355_v11 = vadd.f32 %v2743_v53, %v1299_v49 }
 0x12e   : > { %v1367_v40 = vadd.f32 %v2764_v6, %v1355_v11 }
 0x130   : > { %v2772_v20 = vpop.f32.mrf.mxu0  ;;  %v1375_v58 = vmul.f32 0.2, %v1367_v40 }
 0x132   : > { %v1383_v19 = vmax.f32 %v1367_v40, %v1375_v58 }
 0x133   : > { %v2774_v38 = vpop.f32.mrf.mxu3  ;;  %v1456_v26 = vpop.f32.mrf.mxu1 }
 0x134   : > { %v1636_v42 = vpop.f32.mrf.mxu2  ;;  %v1475_v63 = vadd.f32 %v1456_v26, %v1380_v60 }
 0x135   : > { %v1656_v18 = vadd.f32 %v1636_v42, %v1474_v45  ;;  %v1356_v42 = vadd.f32 %v2750_v57, %v1300_v52  ;;  %v1185_v57 = vadd.f32 %v2754_v43, %v2739_v62 }
 0x138   : > { %v1777_v25 = vpop.f32.mrf.mxu0 }
 0x13b   : > { %v1700_v50 = vpop.f32.mrf.mxu3  ;;  %v1459_v10 = vpop.f32.mrf.mxu1 }
 0x13c   : > { %v1720_v28 = vadd.f32 %v1700_v50, %v1656_v18  ;;  %v1638_v56 = vpop.f32.mrf.mxu2  ;;  %v1476_v4 = vadd.f32 %v1459_v10, %v1381_v8  ;;  %v1301_v18 = vadd.f32 %v2766_v9, %v1236_v44 }
 0x13d   : > { %v1657_v13 = vadd.f32 %v1638_v56, %v1475_v63 }
 0x13e   : > { %v1797_v7 = vadd.f32 %v1777_v25, %v1720_v28  ;;  %v1368_v25 = vadd.f32 %v2764_v6, %v1356_v42  ;;  %v1357_v61 = vadd.f32 %v2759_v24, %v1301_v18  ;;  %v1237_v28 = vadd.f32 %v2768_v54, %v1185_v57 }
 0x140   : > { %v1805_v51 = vpack.c.bf16 %v1797_v7, %v1797_v7  ;;  %v1779_v59 = vpop.f32.mrf.mxu0  ;;  %v1376_v10 = vmul.f32 0.2, %v1368_v25  ;;  %v1302_v7 = vadd.f32 %v2774_v38, %v1237_v28  ;;  %v1369_v43 = vadd.f32 %v2764_v6, %v1357_v61 }
 0x142   : > { %1814 = vst.msk [vmem:[%s2784_s10] sm:$0xf] %vm1813_vm7, %v1805_v51  ;;  %v1384_v17 = vmax.f32 %v1368_v25, %v1376_v10  ;;  %v1358_v24 = vadd.f32 %v2772_v20, %v1302_v7 }
 0x143   : > { %v1702_v35 = vpop.f32.mrf.mxu3  ;;  %v1461_v27 = vpop.f32.mrf.mxu1 }
 0x144   : > { %v1721_v21 = vadd.f32 %v1702_v35, %v1657_v13  ;;  %v1641_v12 = vpop.f32.mrf.mxu2  ;;  %v1477_v39 = vadd.f32 %v1461_v27, %v1382_v15  ;;  %v1370_v8 = vadd.f32 %v2764_v6, %v1358_v24 }
 0x145   : > { %v1658_v33 = vadd.f32 %v1641_v12, %v1476_v4 }
 0x146   : > { %v1798_v23 = vadd.f32 %v1779_v59, %v1721_v21  ;;  %v1377_v59 = vmul.f32 0.2, %v1369_v43  ;;  %v1378_v20 = vmul.f32 0.2, %v1370_v8 }
 0x148   : > { %v1806_v31 = vpack.c.bf16 %v1798_v23, %v1798_v23  ;;  %v1782_v32 = vpop.f32.mrf.mxu0  ;;  %v1385_v38 = vmax.f32 %v1369_v43, %v1377_v59 }
 0x14a   : > { %1815 = vst.msk [vmem:[%s2784_s10 + $0x4] sm:$0xf] %vm1813_vm7, %v1806_v31 }
 0x14b   : > { %v1705_v34 = vpop.f32.mrf.mxu3  ;;  %v1464_v46 = vpop.f32.mrf.mxu1 }
 0x14c   : > { %v1722_v37 = vadd.f32 %v1705_v34, %v1658_v33  ;;  %v1643_v26 = vpop.f32.mrf.mxu2  ;;  %v1478_v1 = vadd.f32 %v1464_v46, %v1383_v19 }
 0x14d   : > { %v1659_v5 = vadd.f32 %v1643_v26, %v1477_v39 }
 0x14e   : > { %v1799_v53 = vadd.f32 %v1782_v32, %v1722_v37  ;;  %v1386_v32 = vmax.f32 %v1370_v8, %v1378_v20 }
 0x150   : > { %v1807_v36 = vpack.c.bf16 %v1799_v53, %v1799_v53  ;;  %v1784_v45 = vpop.f32.mrf.mxu0 }
 0x152   : > { %1816 = vst.msk [vmem:[%s2784_s10 + $0x8] sm:$0xf] %vm1813_vm7, %v1807_v36 }
 0x153   : > { %v1707_v47 = vpop.f32.mrf.mxu3  ;;  %v1466_v55 = vpop.f32.mrf.mxu1 }
 0x154   : > { %v1723_v48 = vadd.f32 %v1707_v47, %v1659_v5  ;;  %v1646_v0 = vpop.f32.mrf.mxu2  ;;  %v1479_v3 = vadd.f32 %v1466_v55, %v1384_v17 }
 0x155   : > { %v1660_v14 = vadd.f32 %v1646_v0, %v1478_v1 }
 0x156   : > { %v1800_v50 = vadd.f32 %v1784_v45, %v1723_v48 }
 0x158   : > { %v1808_v60 = vpack.c.bf16 %v1800_v50, %v1800_v50  ;;  %v1787_v56 = vpop.f32.mrf.mxu0 }
 0x15a   : > { %1817 = vst.msk [vmem:[%s2784_s10 + $0xc] sm:$0xf] %vm1813_vm7, %v1808_v60 }
 0x15b   : > { %v1710_v9 = vpop.f32.mrf.mxu3  ;;  %v1469_v13 = vpop.f32.mrf.mxu1 }
 0x15c   : > { %v1724_v63 = vadd.f32 %v1710_v9, %v1660_v14  ;;  %v1648_v62 = vpop.f32.mrf.mxu2  ;;  %v1480_v30 = vadd.f32 %v1469_v13, %v1385_v38 }
 0x15d   : > { %v1661_v54 = vadd.f32 %v1648_v62, %v1479_v3 }
 0x15e   : > { %v1801_v2 = vadd.f32 %v1787_v56, %v1724_v63 }
 0x160   : > { %v1809_v51 = vpack.c.bf16 %v1801_v2, %v1801_v2  ;;  %v1789_v35 = vpop.f32.mrf.mxu0 }
 0x162   : > { %1818 = vst.msk [vmem:[%s2784_s10 + $0x10] sm:$0xf] %vm1813_vm7, %v1809_v51 }
 0x163   : > { %v1712_v27 = vpop.f32.mrf.mxu3  ;;  %v1471_v4 = vpop.f32.mrf.mxu1 }
 0x164   : > { %v1725_v49 = vadd.f32 %v1712_v27, %v1661_v54  ;;  %v1651_v21 = vpop.f32.mrf.mxu2  ;;  %v1481_v52 = vadd.f32 %v1471_v4, %v1386_v32 }
 0x165   : > { %v1662_v23 = vadd.f32 %v1651_v21, %v1480_v30 }
 0x166   : > { %v1802_v12 = vadd.f32 %v1789_v35, %v1725_v49 }
 0x168   : > { %v1810_v22 = vpack.c.bf16 %v1802_v12, %v1802_v12  ;;  %v1792_v41 = vpop.f32.mrf.mxu0 }
 0x16a   : > { %1819 = vst.msk [vmem:[%s2784_s10 + $0x14] sm:$0xf] %vm1813_vm7, %v1810_v22 }
 0x16b   : > { %v1715_v11 = vpop.f32.mrf.mxu3 }
 0x16c   : > { %v1726_v31 = vadd.f32 %v1715_v11, %v1662_v23  ;;  %v1653_v33 = vpop.f32.mrf.mxu2 }
 0x16d   : > { %v1663_v37 = vadd.f32 %v1653_v33, %v1481_v52 }
 0x16e   : > { %v1803_v29 = vadd.f32 %v1792_v41, %v1726_v31 }
 0x170   : > { %v1811_v34 = vpack.c.bf16 %v1803_v29, %v1803_v29  ;;  %v1794_v26 = vpop.f32.mrf.mxu0 }
 0x172   : > { %1820 = vst.msk [vmem:[%s2784_s10 + $0x18] sm:$0xf] %vm1813_vm7, %v1811_v34 }
 0x173   : > { %v1717_v6 = vpop.f32.mrf.mxu3 }
 0x174   : > { %v1727_v15 = vadd.f32 %v1717_v6, %v1663_v37 }
 0x176   : > { %v1804_v40 = vadd.f32 %v1794_v26, %v1727_v15 }
 0x178   : > { %v1812_v46 = vpack.c.bf16 %v1804_v40, %v1804_v40 }
 0x17a   : > { %1821 = vst.msk [vmem:[%s2784_s10 + $0x1c] sm:$0xf] %vm1813_vm7, %v1812_v46 }
 0x17b PF: > { %s18_s27 = sadd.s32 1, %s2223_s27   ;;  %s2845_s26 = smov %s2219_s2 }
 0x17c   : > { %p15_p5 = scmp.ge.s32.totalorder %s18_s27, 4   ;;  %s2846_s2 = smov %s2848_s28 }
 0x17e   :  { %17 = sbr.rel (!%p15_p5) target bundleno = 2 (0x2), region = 105 }

</bundles_post_ra>
